<compile_context>
chip_gen: v7x
topology: tpu7x:2x2x1
jax: 0.10.0
libtpu: 0.0.40
codegen_flags: <defaults>
</compile_context>

<pallas_src>
import functools

import jax
import jax.numpy as jnp
from jax.experimental import pallas as pl
from jax.experimental.pallas import tpu as pltpu

KERNEL_SIZE = 7


def _spatial_attention_kernel(wmap_ref, x_ref, o_ref, *, W, K):
    """One grid step: nb batch rows, all channels, full (padded) spatial axis.

    wmap_ref: VMEM (2*K*K, HWp) f32 masked conv weights
              rows [0 : K*K]     -> 'avg' channel, row index = ky*K + kx
              rows [K*K : 2*K*K] -> 'max' channel
    x_ref:    VMEM (nb, C, HWp) input block  (lane-dense spatial axis)
    o_ref:    VMEM (nb, C, HWp) output block
    """
    pad = K // 2
    xv = x_ref[...]                                     # native dtype, no f32 copy
    nb, C, HWp = xv.shape

    # Channel reductions (the 2 conv input channels) with f32 accumulation.
    avg = jnp.sum(xv, axis=1, dtype=jnp.float32) * jnp.float32(1.0 / C)  # (nb, HWp)
    mx = jnp.max(xv, axis=1).astype(jnp.float32)                         # (nb, HWp)

    # 49-tap "same" conv: one lane roll + one FMA per (channel, tap).  Lanes
    # that wrap around (or sit in the HW->HWp padding) read garbage that is
    # multiplied by an exact 0.0 in the masked weight map.
    acc = jnp.zeros((nb, HWp), jnp.float32)
    for ky in range(K):
        dy = ky - pad
        for kx in range(K):
            dx = kx - pad
            off = dy * W + dx
            if off == 0:
                a_r, m_r = avg, mx
            else:
                shift = (-off) % HWp
                a_r = pltpu.roll(avg, shift=shift, axis=1)
                m_r = pltpu.roll(mx, shift=shift, axis=1)
            idx = ky * K + kx
            w_a = wmap_ref[idx:idx + 1, :]                      # (1, HWp)
            w_m = wmap_ref[K * K + idx:K * K + idx + 1, :]      # (1, HWp)
            acc = acc + a_r * w_a + m_r * w_m

    # sigmoid on the EUP: exp + approximate reciprocal.
    attn = pl.reciprocal(1.0 + jnp.exp(-acc), approx=True)      # (nb, HWp) f32
    o_ref[...] = (xv * attn[:, None, :].astype(xv.dtype)).astype(o_ref.dtype)


def _build_weight_map(weight, H, W, HWp):
    """(1, 2, K, K) OIHW conv weight -> (2*K*K, HWp) per-lane masked weights."""
    K = weight.shape[-1]
    pad = K // 2
    HW = H * W
    p = jnp.arange(HWp, dtype=jnp.int32)
    row = p // W
    col = p % W
    in_img = p < HW
    masks = []
    for ky in range(K):
        dy = ky - pad
        row_ok = (row + dy >= 0) & (row + dy < H)
        for kx in range(K):
            dx = kx - pad
            col_ok = (col + dx >= 0) & (col + dx < W)
            masks.append((in_img & row_ok & col_ok).astype(jnp.float32))
    mask = jnp.stack(masks, axis=0)                       # (K*K, HWp)
    w = weight.reshape(2, K * K).astype(jnp.float32)      # [channel][ky*K + kx]
    return (w[:, :, None] * mask[None, :, :]).reshape(2 * K * K, HWp)


def _is_multi_tensorcore():
    # v7x has 2 TensorCores per chip (and only 64 MiB VMEM per TC).
    try:
        kind = jax.devices()[0].device_kind.lower()
    except Exception:
        return False
    return ("v7" in kind) or ("7x" in kind)


def _pick_batch_block(N, C, HWp, itemsize, multi_tc):
    # Pallas double-buffers the in/out blocks (~4 * nb*C*HWp*itemsize bytes),
    # plus the in-kernel f32 intermediates (avg/max/acc/attn ~ 4*nb*HWp*4) and
    # the small resident weight map.  Target a few-MiB input block per step.
    per_batch = max(1, C * HWp * itemsize)
    budget = (3 << 20) if multi_tc else (6 << 20)
    nb = max(1, min(N, budget // per_batch))
    if multi_tc:
        # Keep >= 4 grid steps (>= 2 per TensorCore) when the batch allows, so
        # the 'parallel' batch axis shards evenly across both TCs.
        if N >= 4:
            nb = min(nb, max(1, N // 4))
        elif N >= 2:
            nb = min(nb, max(1, N // 2))
    if nb >= 4:
        nb -= nb % 4                 # 2*nb multiple of 8 -> sublane-full tiles
    while N % nb:
        nb -= 1                      # exact tiling (no partial last block)
    return max(1, nb)


def spatial_attention(x, weight, *, batch_block=None):
    """x: (N, C, H, W); weight: (1, 2, K, K) PyTorch OIHW conv weight."""
    N, C, H, W = x.shape
    K = weight.shape[-1]
    HW = H * W
    HWp = ((HW + 127) // 128) * 128           # lane-dense last dim

    x_flat = x.reshape(N, C, HW)
    if HWp != HW:
        x_flat = jnp.pad(x_flat, ((0, 0), (0, 0), (0, HWp - HW)))
    wmap = _build_weight_map(weight, H, W, HWp)           # (2*K*K, HWp) f32

    multi_tc = _is_multi_tensorcore()
    nb = batch_block or _pick_batch_block(N, C, HWp, x.dtype.itemsize, multi_tc)
    grid = (N // nb,)
    vmem_limit = (48 << 20) if multi_tc else (64 << 20)

    kernel = functools.partial(_spatial_attention_kernel, W=W, K=K)
    out_flat = pl.pallas_call(
        kernel,
        out_shape=jax.ShapeDtypeStruct((N, C, HWp), x.dtype),
        grid_spec=pltpu.PrefetchScalarGridSpec(
            num_scalar_prefetch=0,
            grid=grid,
            in_specs=[
                # Masked weight map: full block, same index every step (resident).
                pl.BlockSpec((2 * K * K, HWp), lambda n: (0, 0)),
                pl.BlockSpec((nb, C, HWp), lambda n: (n, 0, 0)),
            ],
            out_specs=pl.BlockSpec((nb, C, HWp), lambda n: (n, 0, 0)),
        ),
        compiler_params=pltpu.CompilerParams(
            dimension_semantics=("parallel",),
            vmem_limit_bytes=vmem_limit),
    )(wmap, x_flat)
    return out_flat[:, :, :HW].reshape(N, C, H, W)


def _reference(x, weight):
    avg = jnp.mean(x, axis=1, keepdims=True)
    mx = jnp.max(x, axis=1, keepdims=True)
    cat = jnp.concatenate([avg, mx], axis=1)
    conv = jax.lax.conv_general_dilated(
        cat, weight, window_strides=(1, 1), padding="SAME",
        dimension_numbers=("NCHW", "OIHW", "NCHW"))
    return jax.nn.sigmoid(conv) * x


if __name__ == "__main__":
    key = jax.random.PRNGKey(0)
    k_x, k_w = jax.random.split(key)

    N, C, H, W = 2, 4, 16, 16
    x = jax.random.normal(k_x, (N, C, H, W), dtype=jnp.float32)
    # Deterministic synthetic conv weight, PyTorch shape (out=1, in=2, K, K).
    weight = jax.random.normal(k_w, (1, 2, KERNEL_SIZE, KERNEL_SIZE),
                               dtype=jnp.float32) * 0.1

    out = jax.block_until_ready(spatial_attention(x, weight))
    ref = _reference(x, weight)

    assert out.shape == (N, C, H, W)
    # pl.reciprocal(approx=True) inside the sigmoid contributes ~1e-4 relative
    # error on the attention map, hence the slightly relaxed tolerance.
    max_err = float(jnp.max(jnp.abs(out - ref)))
    assert jnp.allclose(out, ref, atol=5e-3, rtol=5e-3), max_err
    print("KERNEL_OK")
</pallas_src>

<mosaic_0001>
module attributes {stable_mosaic.version = 11 : i64} {
  func.func @_spatial_attention_kernel(%arg0: i32, %arg1: memref<98x256xf32, #tpu.memory_space<vmem>>, %arg2: memref<2x4x256xf32, #tpu.memory_space<vmem>>, %arg3: memref<2x4x256xf32, #tpu.memory_space<vmem>>) attributes {dimension_semantics = [#tpu.dimension_semantics<parallel>], iteration_bounds = array<i64: 1>, scalar_prefetch = 0 : i64, scratch_operands = 0 : i64, tpu.core_type = #tpu.core_type<tc>, window_params = [{pipeline_mode = #tpu.pipeline_mode<synchronous>, transform_indices = @transform_0, window_bounds = array<i64: 98, 256>}, {transform_indices = @transform_1, window_bounds = array<i64: 2, 4, 256>}, {transform_indices = @transform_2, window_bounds = array<i64: 2, 4, 256>}]} {
    %c0 = arith.constant 0 : index
    %c0_0 = arith.constant 0 : index
    %c0_1 = arith.constant 0 : index
    %0 = vector.load %arg2[%c0, %c0_0, %c0_1] : memref<2x4x256xf32, #tpu.memory_space<vmem>>, vector<2x4x256xf32>
    %cst = arith.constant dense<0.000000e+00> : vector<2x256xf32>
    %1 = vector.multi_reduction <add>, %0, %cst [1] : vector<2x4x256xf32> to vector<2x256xf32>
    %cst_2 = arith.constant 2.500000e-01 : f32
    %2 = vector.broadcast %cst_2 : f32 to vector<2x256xf32>
    %3 = arith.mulf %1, %2 : vector<2x256xf32>
    %cst_3 = arith.constant dense<0xFF800000> : vector<2x256xf32>
    %4 = vector.multi_reduction <maximumf>, %0, %cst_3 [1] : vector<2x4x256xf32> to vector<2x256xf32>
    %cst_4 = arith.constant 0.000000e+00 : f32
    %5 = vector.broadcast %cst_4 : f32 to vector<2x256xf32>
    %c51_i32 = arith.constant 51 : i32
    %6 = tpu.dynamic_rotate %3 by %c51_i32 dim 1 : vector<2x256xf32>, i32 -> vector<2x256xf32>
    %c51_i32_5 = arith.constant 51 : i32
    %7 = tpu.dynamic_rotate %4 by %c51_i32_5 dim 1 : vector<2x256xf32>, i32 -> vector<2x256xf32>
    %c0_6 = arith.constant 0 : index
    %c0_7 = arith.constant 0 : index
    %8 = vector.load %arg1[%c0_6, %c0_7] : memref<98x256xf32, #tpu.memory_space<vmem>>, vector<1x256xf32>
    %c49 = arith.constant 49 : index
    %c0_8 = arith.constant 0 : index
    %9 = vector.load %arg1[%c49, %c0_8] : memref<98x256xf32, #tpu.memory_space<vmem>>, vector<1x256xf32>
    %10 = vector.broadcast %8 : vector<1x256xf32> to vector<2x256xf32>
    %11 = arith.mulf %6, %10 : vector<2x256xf32>
    %12 = arith.addf %5, %11 : vector<2x256xf32>
    %13 = vector.broadcast %9 : vector<1x256xf32> to vector<2x256xf32>
    %14 = arith.mulf %7, %13 : vector<2x256xf32>
    %15 = arith.addf %12, %14 : vector<2x256xf32>
    %c50_i32 = arith.constant 50 : i32
    %16 = tpu.dynamic_rotate %3 by %c50_i32 dim 1 : vector<2x256xf32>, i32 -> vector<2x256xf32>
    %c50_i32_9 = arith.constant 50 : i32
    %17 = tpu.dynamic_rotate %4 by %c50_i32_9 dim 1 : vector<2x256xf32>, i32 -> vector<2x256xf32>
    %c1 = arith.constant 1 : index
    %c0_10 = arith.constant 0 : index
    %18 = vector.load %arg1[%c1, %c0_10] : memref<98x256xf32, #tpu.memory_space<vmem>>, vector<1x256xf32>
    %c50 = arith.constant 50 : index
    %c0_11 = arith.constant 0 : index
    %19 = vector.load %arg1[%c50, %c0_11] : memref<98x256xf32, #tpu.memory_space<vmem>>, vector<1x256xf32>
    %20 = vector.broadcast %18 : vector<1x256xf32> to vector<2x256xf32>
    %21 = arith.mulf %16, %20 : vector<2x256xf32>
    %22 = arith.addf %15, %21 : vector<2x256xf32>
    %23 = vector.broadcast %19 : vector<1x256xf32> to vector<2x256xf32>
    %24 = arith.mulf %17, %23 : vector<2x256xf32>
    %25 = arith.addf %22, %24 : vector<2x256xf32>
    %c49_i32 = arith.constant 49 : i32
    %26 = tpu.dynamic_rotate %3 by %c49_i32 dim 1 : vector<2x256xf32>, i32 -> vector<2x256xf32>
    %c49_i32_12 = arith.constant 49 : i32
    %27 = tpu.dynamic_rotate %4 by %c49_i32_12 dim 1 : vector<2x256xf32>, i32 -> vector<2x256xf32>
    %c2 = arith.constant 2 : index
    %c0_13 = arith.constant 0 : index
    %28 = vector.load %arg1[%c2, %c0_13] : memref<98x256xf32, #tpu.memory_space<vmem>>, vector<1x256xf32>
    %c51 = arith.constant 51 : index
    %c0_14 = arith.constant 0 : index
    %29 = vector.load %arg1[%c51, %c0_14] : memref<98x256xf32, #tpu.memory_space<vmem>>, vector<1x256xf32>
    %30 = vector.broadcast %28 : vector<1x256xf32> to vector<2x256xf32>
    %31 = arith.mulf %26, %30 : vector<2x256xf32>
    %32 = arith.addf %25, %31 : vector<2x256xf32>
    %33 = vector.broadcast %29 : vector<1x256xf32> to vector<2x256xf32>
    %34 = arith.mulf %27, %33 : vector<2x256xf32>
    %35 = arith.addf %32, %34 : vector<2x256xf32>
    %c48_i32 = arith.constant 48 : i32
    %36 = tpu.dynamic_rotate %3 by %c48_i32 dim 1 : vector<2x256xf32>, i32 -> vector<2x256xf32>
    %c48_i32_15 = arith.constant 48 : i32
    %37 = tpu.dynamic_rotate %4 by %c48_i32_15 dim 1 : vector<2x256xf32>, i32 -> vector<2x256xf32>
    %c3 = arith.constant 3 : index
    %c0_16 = arith.constant 0 : index
    %38 = vector.load %arg1[%c3, %c0_16] : memref<98x256xf32, #tpu.memory_space<vmem>>, vector<1x256xf32>
    %c52 = arith.constant 52 : index
    %c0_17 = arith.constant 0 : index
    %39 = vector.load %arg1[%c52, %c0_17] : memref<98x256xf32, #tpu.memory_space<vmem>>, vector<1x256xf32>
    %40 = vector.broadcast %38 : vector<1x256xf32> to vector<2x256xf32>
    %41 = arith.mulf %36, %40 : vector<2x256xf32>
    %42 = arith.addf %35, %41 : vector<2x256xf32>
    %43 = vector.broadcast %39 : vector<1x256xf32> to vector<2x256xf32>
    %44 = arith.mulf %37, %43 : vector<2x256xf32>
    %45 = arith.addf %42, %44 : vector<2x256xf32>
    %c47_i32 = arith.constant 47 : i32
    %46 = tpu.dynamic_rotate %3 by %c47_i32 dim 1 : vector<2x256xf32>, i32 -> vector<2x256xf32>
    %c47_i32_18 = arith.constant 47 : i32
    %47 = tpu.dynamic_rotate %4 by %c47_i32_18 dim 1 : vector<2x256xf32>, i32 -> vector<2x256xf32>
    %c4 = arith.constant 4 : index
    %c0_19 = arith.constant 0 : index
    %48 = vector.load %arg1[%c4, %c0_19] : memref<98x256xf32, #tpu.memory_space<vmem>>, vector<1x256xf32>
    %c53 = arith.constant 53 : index
    %c0_20 = arith.constant 0 : index
    %49 = vector.load %arg1[%c53, %c0_20] : memref<98x256xf32, #tpu.memory_space<vmem>>, vector<1x256xf32>
    %50 = vector.broadcast %48 : vector<1x256xf32> to vector<2x256xf32>
    %51 = arith.mulf %46, %50 : vector<2x256xf32>
    %52 = arith.addf %45, %51 : vector<2x256xf32>
    %53 = vector.broadcast %49 : vector<1x256xf32> to vector<2x256xf32>
    %54 = arith.mulf %47, %53 : vector<2x256xf32>
    %55 = arith.addf %52, %54 : vector<2x256xf32>
    %c46_i32 = arith.constant 46 : i32
    %56 = tpu.dynamic_rotate %3 by %c46_i32 dim 1 : vector<2x256xf32>, i32 -> vector<2x256xf32>
    %c46_i32_21 = arith.constant 46 : i32
    %57 = tpu.dynamic_rotate %4 by %c46_i32_21 dim 1 : vector<2x256xf32>, i32 -> vector<2x256xf32>
    %c5 = arith.constant 5 : index
    %c0_22 = arith.constant 0 : index
    %58 = vector.load %arg1[%c5, %c0_22] : memref<98x256xf32, #tpu.memory_space<vmem>>, vector<1x256xf32>
    %c54 = arith.constant 54 : index
    %c0_23 = arith.constant 0 : index
    %59 = vector.load %arg1[%c54, %c0_23] : memref<98x256xf32, #tpu.memory_space<vmem>>, vector<1x256xf32>
    %60 = vector.broadcast %58 : vector<1x256xf32> to vector<2x256xf32>
    %61 = arith.mulf %56, %60 : vector<2x256xf32>
    %62 = arith.addf %55, %61 : vector<2x256xf32>
    %63 = vector.broadcast %59 : vector<1x256xf32> to vector<2x256xf32>
    %64 = arith.mulf %57, %63 : vector<2x256xf32>
    %65 = arith.addf %62, %64 : vector<2x256xf32>
    %c45_i32 = arith.constant 45 : i32
    %66 = tpu.dynamic_rotate %3 by %c45_i32 dim 1 : vector<2x256xf32>, i32 -> vector<2x256xf32>
    %c45_i32_24 = arith.constant 45 : i32
    %67 = tpu.dynamic_rotate %4 by %c45_i32_24 dim 1 : vector<2x256xf32>, i32 -> vector<2x256xf32>
    %c6 = arith.constant 6 : index
    %c0_25 = arith.constant 0 : index
    %68 = vector.load %arg1[%c6, %c0_25] : memref<98x256xf32, #tpu.memory_space<vmem>>, vector<1x256xf32>
    %c55 = arith.constant 55 : index
    %c0_26 = arith.constant 0 : index
    %69 = vector.load %arg1[%c55, %c0_26] : memref<98x256xf32, #tpu.memory_space<vmem>>, vector<1x256xf32>
    %70 = vector.broadcast %68 : vector<1x256xf32> to vector<2x256xf32>
    %71 = arith.mulf %66, %70 : vector<2x256xf32>
    %72 = arith.addf %65, %71 : vector<2x256xf32>
    %73 = vector.broadcast %69 : vector<1x256xf32> to vector<2x256xf32>
    %74 = arith.mulf %67, %73 : vector<2x256xf32>
    %75 = arith.addf %72, %74 : vector<2x256xf32>
    %c35_i32 = arith.constant 35 : i32
    %76 = tpu.dynamic_rotate %3 by %c35_i32 dim 1 : vector<2x256xf32>, i32 -> vector<2x256xf32>
    %c35_i32_27 = arith.constant 35 : i32
    %77 = tpu.dynamic_rotate %4 by %c35_i32_27 dim 1 : vector<2x256xf32>, i32 -> vector<2x256xf32>
    %c7 = arith.constant 7 : index
    %c0_28 = arith.constant 0 : index
    %78 = vector.load %arg1[%c7, %c0_28] : memref<98x256xf32, #tpu.memory_space<vmem>>, vector<1x256xf32>
    %c56 = arith.constant 56 : index
    %c0_29 = arith.constant 0 : index
    %79 = vector.load %arg1[%c56, %c0_29] : memref<98x256xf32, #tpu.memory_space<vmem>>, vector<1x256xf32>
    %80 = vector.broadcast %78 : vector<1x256xf32> to vector<2x256xf32>
    %81 = arith.mulf %76, %80 : vector<2x256xf32>
    %82 = arith.addf %75, %81 : vector<2x256xf32>
    %83 = vector.broadcast %79 : vector<1x256xf32> to vector<2x256xf32>
    %84 = arith.mulf %77, %83 : vector<2x256xf32>
    %85 = arith.addf %82, %84 : vector<2x256xf32>
    %c34_i32 = arith.constant 34 : i32
    %86 = tpu.dynamic_rotate %3 by %c34_i32 dim 1 : vector<2x256xf32>, i32 -> vector<2x256xf32>
    %c34_i32_30 = arith.constant 34 : i32
    %87 = tpu.dynamic_rotate %4 by %c34_i32_30 dim 1 : vector<2x256xf32>, i32 -> vector<2x256xf32>
    %c8 = arith.constant 8 : index
    %c0_31 = arith.constant 0 : index
    %88 = vector.load %arg1[%c8, %c0_31] : memref<98x256xf32, #tpu.memory_space<vmem>>, vector<1x256xf32>
    %c57 = arith.constant 57 : index
    %c0_32 = arith.constant 0 : index
    %89 = vector.load %arg1[%c57, %c0_32] : memref<98x256xf32, #tpu.memory_space<vmem>>, vector<1x256xf32>
    %90 = vector.broadcast %88 : vector<1x256xf32> to vector<2x256xf32>
    %91 = arith.mulf %86, %90 : vector<2x256xf32>
    %92 = arith.addf %85, %91 : vector<2x256xf32>
    %93 = vector.broadcast %89 : vector<1x256xf32> to vector<2x256xf32>
    %94 = arith.mulf %87, %93 : vector<2x256xf32>
    %95 = arith.addf %92, %94 : vector<2x256xf32>
    %c33_i32 = arith.constant 33 : i32
    %96 = tpu.dynamic_rotate %3 by %c33_i32 dim 1 : vector<2x256xf32>, i32 -> vector<2x256xf32>
    %c33_i32_33 = arith.constant 33 : i32
    %97 = tpu.dynamic_rotate %4 by %c33_i32_33 dim 1 : vector<2x256xf32>, i32 -> vector<2x256xf32>
    %c9 = arith.constant 9 : index
    %c0_34 = arith.constant 0 : index
    %98 = vector.load %arg1[%c9, %c0_34] : memref<98x256xf32, #tpu.memory_space<vmem>>, vector<1x256xf32>
    %c58 = arith.constant 58 : index
    %c0_35 = arith.constant 0 : index
    %99 = vector.load %arg1[%c58, %c0_35] : memref<98x256xf32, #tpu.memory_space<vmem>>, vector<1x256xf32>
    %100 = vector.broadcast %98 : vector<1x256xf32> to vector<2x256xf32>
    %101 = arith.mulf %96, %100 : vector<2x256xf32>
    %102 = arith.addf %95, %101 : vector<2x256xf32>
    %103 = vector.broadcast %99 : vector<1x256xf32> to vector<2x256xf32>
    %104 = arith.mulf %97, %103 : vector<2x256xf32>
    %105 = arith.addf %102, %104 : vector<2x256xf32>
    %c32_i32 = arith.constant 32 : i32
    %106 = tpu.dynamic_rotate %3 by %c32_i32 dim 1 : vector<2x256xf32>, i32 -> vector<2x256xf32>
    %c32_i32_36 = arith.constant 32 : i32
    %107 = tpu.dynamic_rotate %4 by %c32_i32_36 dim 1 : vector<2x256xf32>, i32 -> vector<2x256xf32>
    %c10 = arith.constant 10 : index
    %c0_37 = arith.constant 0 : index
    %108 = vector.load %arg1[%c10, %c0_37] : memref<98x256xf32, #tpu.memory_space<vmem>>, vector<1x256xf32>
    %c59 = arith.constant 59 : index
    %c0_38 = arith.constant 0 : index
    %109 = vector.load %arg1[%c59, %c0_38] : memref<98x256xf32, #tpu.memory_space<vmem>>, vector<1x256xf32>
    %110 = vector.broadcast %108 : vector<1x256xf32> to vector<2x256xf32>
    %111 = arith.mulf %106, %110 : vector<2x256xf32>
    %112 = arith.addf %105, %111 : vector<2x256xf32>
    %113 = vector.broadcast %109 : vector<1x256xf32> to vector<2x256xf32>
    %114 = arith.mulf %107, %113 : vector<2x256xf32>
    %115 = arith.addf %112, %114 : vector<2x256xf32>
    %c31_i32 = arith.constant 31 : i32
    %116 = tpu.dynamic_rotate %3 by %c31_i32 dim 1 : vector<2x256xf32>, i32 -> vector<2x256xf32>
    %c31_i32_39 = arith.constant 31 : i32
    %117 = tpu.dynamic_rotate %4 by %c31_i32_39 dim 1 : vector<2x256xf32>, i32 -> vector<2x256xf32>
    %c11 = arith.constant 11 : index
    %c0_40 = arith.constant 0 : index
    %118 = vector.load %arg1[%c11, %c0_40] : memref<98x256xf32, #tpu.memory_space<vmem>>, vector<1x256xf32>
    %c60 = arith.constant 60 : index
    %c0_41 = arith.constant 0 : index
    %119 = vector.load %arg1[%c60, %c0_41] : memref<98x256xf32, #tpu.memory_space<vmem>>, vector<1x256xf32>
    %120 = vector.broadcast %118 : vector<1x256xf32> to vector<2x256xf32>
    %121 = arith.mulf %116, %120 : vector<2x256xf32>
    %122 = arith.addf %115, %121 : vector<2x256xf32>
    %123 = vector.broadcast %119 : vector<1x256xf32> to vector<2x256xf32>
    %124 = arith.mulf %117, %123 : vector<2x256xf32>
    %125 = arith.addf %122, %124 : vector<2x256xf32>
    %c30_i32 = arith.constant 30 : i32
    %126 = tpu.dynamic_rotate %3 by %c30_i32 dim 1 : vector<2x256xf32>, i32 -> vector<2x256xf32>
    %c30_i32_42 = arith.constant 30 : i32
    %127 = tpu.dynamic_rotate %4 by %c30_i32_42 dim 1 : vector<2x256xf32>, i32 -> vector<2x256xf32>
    %c12 = arith.constant 12 : index
    %c0_43 = arith.constant 0 : index
    %128 = vector.load %arg1[%c12, %c0_43] : memref<98x256xf32, #tpu.memory_space<vmem>>, vector<1x256xf32>
    %c61 = arith.constant 61 : index
    %c0_44 = arith.constant 0 : index
    %129 = vector.load %arg1[%c61, %c0_44] : memref<98x256xf32, #tpu.memory_space<vmem>>, vector<1x256xf32>
    %130 = vector.broadcast %128 : vector<1x256xf32> to vector<2x256xf32>
    %131 = arith.mulf %126, %130 : vector<2x256xf32>
    %132 = arith.addf %125, %131 : vector<2x256xf32>
    %133 = vector.broadcast %129 : vector<1x256xf32> to vector<2x256xf32>
    %134 = arith.mulf %127, %133 : vector<2x256xf32>
    %135 = arith.addf %132, %134 : vector<2x256xf32>
    %c29_i32 = arith.constant 29 : i32
    %136 = tpu.dynamic_rotate %3 by %c29_i32 dim 1 : vector<2x256xf32>, i32 -> vector<2x256xf32>
    %c29_i32_45 = arith.constant 29 : i32
    %137 = tpu.dynamic_rotate %4 by %c29_i32_45 dim 1 : vector<2x256xf32>, i32 -> vector<2x256xf32>
    %c13 = arith.constant 13 : index
    %c0_46 = arith.constant 0 : index
    %138 = vector.load %arg1[%c13, %c0_46] : memref<98x256xf32, #tpu.memory_space<vmem>>, vector<1x256xf32>
    %c62 = arith.constant 62 : index
    %c0_47 = arith.constant 0 : index
    %139 = vector.load %arg1[%c62, %c0_47] : memref<98x256xf32, #tpu.memory_space<vmem>>, vector<1x256xf32>
    %140 = vector.broadcast %138 : vector<1x256xf32> to vector<2x256xf32>
    %141 = arith.mulf %136, %140 : vector<2x256xf32>
    %142 = arith.addf %135, %141 : vector<2x256xf32>
    %143 = vector.broadcast %139 : vector<1x256xf32> to vector<2x256xf32>
    %144 = arith.mulf %137, %143 : vector<2x256xf32>
    %145 = arith.addf %142, %144 : vector<2x256xf32>
    %c19_i32 = arith.constant 19 : i32
    %146 = tpu.dynamic_rotate %3 by %c19_i32 dim 1 : vector<2x256xf32>, i32 -> vector<2x256xf32>
    %c19_i32_48 = arith.constant 19 : i32
    %147 = tpu.dynamic_rotate %4 by %c19_i32_48 dim 1 : vector<2x256xf32>, i32 -> vector<2x256xf32>
    %c14 = arith.constant 14 : index
    %c0_49 = arith.constant 0 : index
    %148 = vector.load %arg1[%c14, %c0_49] : memref<98x256xf32, #tpu.memory_space<vmem>>, vector<1x256xf32>
    %c63 = arith.constant 63 : index
    %c0_50 = arith.constant 0 : index
    %149 = vector.load %arg1[%c63, %c0_50] : memref<98x256xf32, #tpu.memory_space<vmem>>, vector<1x256xf32>
    %150 = vector.broadcast %148 : vector<1x256xf32> to vector<2x256xf32>
    %151 = arith.mulf %146, %150 : vector<2x256xf32>
    %152 = arith.addf %145, %151 : vector<2x256xf32>
    %153 = vector.broadcast %149 : vector<1x256xf32> to vector<2x256xf32>
    %154 = arith.mulf %147, %153 : vector<2x256xf32>
    %155 = arith.addf %152, %154 : vector<2x256xf32>
    %c18_i32 = arith.constant 18 : i32
    %156 = tpu.dynamic_rotate %3 by %c18_i32 dim 1 : vector<2x256xf32>, i32 -> vector<2x256xf32>
    %c18_i32_51 = arith.constant 18 : i32
    %157 = tpu.dynamic_rotate %4 by %c18_i32_51 dim 1 : vector<2x256xf32>, i32 -> vector<2x256xf32>
    %c15 = arith.constant 15 : index
    %c0_52 = arith.constant 0 : index
    %158 = vector.load %arg1[%c15, %c0_52] : memref<98x256xf32, #tpu.memory_space<vmem>>, vector<1x256xf32>
    %c64 = arith.constant 64 : index
    %c0_53 = arith.constant 0 : index
    %159 = vector.load %arg1[%c64, %c0_53] : memref<98x256xf32, #tpu.memory_space<vmem>>, vector<1x256xf32>
    %160 = vector.broadcast %158 : vector<1x256xf32> to vector<2x256xf32>
    %161 = arith.mulf %156, %160 : vector<2x256xf32>
    %162 = arith.addf %155, %161 : vector<2x256xf32>
    %163 = vector.broadcast %159 : vector<1x256xf32> to vector<2x256xf32>
    %164 = arith.mulf %157, %163 : vector<2x256xf32>
    %165 = arith.addf %162, %164 : vector<2x256xf32>
    %c17_i32 = arith.constant 17 : i32
    %166 = tpu.dynamic_rotate %3 by %c17_i32 dim 1 : vector<2x256xf32>, i32 -> vector<2x256xf32>
    %c17_i32_54 = arith.constant 17 : i32
    %167 = tpu.dynamic_rotate %4 by %c17_i32_54 dim 1 : vector<2x256xf32>, i32 -> vector<2x256xf32>
    %c16 = arith.constant 16 : index
    %c0_55 = arith.constant 0 : index
    %168 = vector.load %arg1[%c16, %c0_55] : memref<98x256xf32, #tpu.memory_space<vmem>>, vector<1x256xf32>
    %c65 = arith.constant 65 : index
    %c0_56 = arith.constant 0 : index
    %169 = vector.load %arg1[%c65, %c0_56] : memref<98x256xf32, #tpu.memory_space<vmem>>, vector<1x256xf32>
    %170 = vector.broadcast %168 : vector<1x256xf32> to vector<2x256xf32>
    %171 = arith.mulf %166, %170 : vector<2x256xf32>
    %172 = arith.addf %165, %171 : vector<2x256xf32>
    %173 = vector.broadcast %169 : vector<1x256xf32> to vector<2x256xf32>
    %174 = arith.mulf %167, %173 : vector<2x256xf32>
    %175 = arith.addf %172, %174 : vector<2x256xf32>
    %c16_i32 = arith.constant 16 : i32
    %176 = tpu.dynamic_rotate %3 by %c16_i32 dim 1 : vector<2x256xf32>, i32 -> vector<2x256xf32>
    %c16_i32_57 = arith.constant 16 : i32
    %177 = tpu.dynamic_rotate %4 by %c16_i32_57 dim 1 : vector<2x256xf32>, i32 -> vector<2x256xf32>
    %c17 = arith.constant 17 : index
    %c0_58 = arith.constant 0 : index
    %178 = vector.load %arg1[%c17, %c0_58] : memref<98x256xf32, #tpu.memory_space<vmem>>, vector<1x256xf32>
    %c66 = arith.constant 66 : index
    %c0_59 = arith.constant 0 : index
    %179 = vector.load %arg1[%c66, %c0_59] : memref<98x256xf32, #tpu.memory_space<vmem>>, vector<1x256xf32>
    %180 = vector.broadcast %178 : vector<1x256xf32> to vector<2x256xf32>
    %181 = arith.mulf %176, %180 : vector<2x256xf32>
    %182 = arith.addf %175, %181 : vector<2x256xf32>
    %183 = vector.broadcast %179 : vector<1x256xf32> to vector<2x256xf32>
    %184 = arith.mulf %177, %183 : vector<2x256xf32>
    %185 = arith.addf %182, %184 : vector<2x256xf32>
    %c15_i32 = arith.constant 15 : i32
    %186 = tpu.dynamic_rotate %3 by %c15_i32 dim 1 : vector<2x256xf32>, i32 -> vector<2x256xf32>
    %c15_i32_60 = arith.constant 15 : i32
    %187 = tpu.dynamic_rotate %4 by %c15_i32_60 dim 1 : vector<2x256xf32>, i32 -> vector<2x256xf32>
    %c18 = arith.constant 18 : index
    %c0_61 = arith.constant 0 : index
    %188 = vector.load %arg1[%c18, %c0_61] : memref<98x256xf32, #tpu.memory_space<vmem>>, vector<1x256xf32>
    %c67 = arith.constant 67 : index
    %c0_62 = arith.constant 0 : index
    %189 = vector.load %arg1[%c67, %c0_62] : memref<98x256xf32, #tpu.memory_space<vmem>>, vector<1x256xf32>
    %190 = vector.broadcast %188 : vector<1x256xf32> to vector<2x256xf32>
    %191 = arith.mulf %186, %190 : vector<2x256xf32>
    %192 = arith.addf %185, %191 : vector<2x256xf32>
    %193 = vector.broadcast %189 : vector<1x256xf32> to vector<2x256xf32>
    %194 = arith.mulf %187, %193 : vector<2x256xf32>
    %195 = arith.addf %192, %194 : vector<2x256xf32>
    %c14_i32 = arith.constant 14 : i32
    %196 = tpu.dynamic_rotate %3 by %c14_i32 dim 1 : vector<2x256xf32>, i32 -> vector<2x256xf32>
    %c14_i32_63 = arith.constant 14 : i32
    %197 = tpu.dynamic_rotate %4 by %c14_i32_63 dim 1 : vector<2x256xf32>, i32 -> vector<2x256xf32>
    %c19 = arith.constant 19 : index
    %c0_64 = arith.constant 0 : index
    %198 = vector.load %arg1[%c19, %c0_64] : memref<98x256xf32, #tpu.memory_space<vmem>>, vector<1x256xf32>
    %c68 = arith.constant 68 : index
    %c0_65 = arith.constant 0 : index
    %199 = vector.load %arg1[%c68, %c0_65] : memref<98x256xf32, #tpu.memory_space<vmem>>, vector<1x256xf32>
    %200 = vector.broadcast %198 : vector<1x256xf32> to vector<2x256xf32>
    %201 = arith.mulf %196, %200 : vector<2x256xf32>
    %202 = arith.addf %195, %201 : vector<2x256xf32>
    %203 = vector.broadcast %199 : vector<1x256xf32> to vector<2x256xf32>
    %204 = arith.mulf %197, %203 : vector<2x256xf32>
    %205 = arith.addf %202, %204 : vector<2x256xf32>
    %c13_i32 = arith.constant 13 : i32
    %206 = tpu.dynamic_rotate %3 by %c13_i32 dim 1 : vector<2x256xf32>, i32 -> vector<2x256xf32>
    %c13_i32_66 = arith.constant 13 : i32
    %207 = tpu.dynamic_rotate %4 by %c13_i32_66 dim 1 : vector<2x256xf32>, i32 -> vector<2x256xf32>
    %c20 = arith.constant 20 : index
    %c0_67 = arith.constant 0 : index
    %208 = vector.load %arg1[%c20, %c0_67] : memref<98x256xf32, #tpu.memory_space<vmem>>, vector<1x256xf32>
    %c69 = arith.constant 69 : index
    %c0_68 = arith.constant 0 : index
    %209 = vector.load %arg1[%c69, %c0_68] : memref<98x256xf32, #tpu.memory_space<vmem>>, vector<1x256xf32>
    %210 = vector.broadcast %208 : vector<1x256xf32> to vector<2x256xf32>
    %211 = arith.mulf %206, %210 : vector<2x256xf32>
    %212 = arith.addf %205, %211 : vector<2x256xf32>
    %213 = vector.broadcast %209 : vector<1x256xf32> to vector<2x256xf32>
    %214 = arith.mulf %207, %213 : vector<2x256xf32>
    %215 = arith.addf %212, %214 : vector<2x256xf32>
    %c3_i32 = arith.constant 3 : i32
    %216 = tpu.dynamic_rotate %3 by %c3_i32 dim 1 : vector<2x256xf32>, i32 -> vector<2x256xf32>
    %c3_i32_69 = arith.constant 3 : i32
    %217 = tpu.dynamic_rotate %4 by %c3_i32_69 dim 1 : vector<2x256xf32>, i32 -> vector<2x256xf32>
    %c21 = arith.constant 21 : index
    %c0_70 = arith.constant 0 : index
    %218 = vector.load %arg1[%c21, %c0_70] : memref<98x256xf32, #tpu.memory_space<vmem>>, vector<1x256xf32>
    %c70 = arith.constant 70 : index
    %c0_71 = arith.constant 0 : index
    %219 = vector.load %arg1[%c70, %c0_71] : memref<98x256xf32, #tpu.memory_space<vmem>>, vector<1x256xf32>
    %220 = vector.broadcast %218 : vector<1x256xf32> to vector<2x256xf32>
    %221 = arith.mulf %216, %220 : vector<2x256xf32>
    %222 = arith.addf %215, %221 : vector<2x256xf32>
    %223 = vector.broadcast %219 : vector<1x256xf32> to vector<2x256xf32>
    %224 = arith.mulf %217, %223 : vector<2x256xf32>
    %225 = arith.addf %222, %224 : vector<2x256xf32>
    %c2_i32 = arith.constant 2 : i32
    %226 = tpu.dynamic_rotate %3 by %c2_i32 dim 1 : vector<2x256xf32>, i32 -> vector<2x256xf32>
    %c2_i32_72 = arith.constant 2 : i32
    %227 = tpu.dynamic_rotate %4 by %c2_i32_72 dim 1 : vector<2x256xf32>, i32 -> vector<2x256xf32>
    %c22 = arith.constant 22 : index
    %c0_73 = arith.constant 0 : index
    %228 = vector.load %arg1[%c22, %c0_73] : memref<98x256xf32, #tpu.memory_space<vmem>>, vector<1x256xf32>
    %c71 = arith.constant 71 : index
    %c0_74 = arith.constant 0 : index
    %229 = vector.load %arg1[%c71, %c0_74] : memref<98x256xf32, #tpu.memory_space<vmem>>, vector<1x256xf32>
    %230 = vector.broadcast %228 : vector<1x256xf32> to vector<2x256xf32>
    %231 = arith.mulf %226, %230 : vector<2x256xf32>
    %232 = arith.addf %225, %231 : vector<2x256xf32>
    %233 = vector.broadcast %229 : vector<1x256xf32> to vector<2x256xf32>
    %234 = arith.mulf %227, %233 : vector<2x256xf32>
    %235 = arith.addf %232, %234 : vector<2x256xf32>
    %c1_i32 = arith.constant 1 : i32
    %236 = tpu.dynamic_rotate %3 by %c1_i32 dim 1 : vector<2x256xf32>, i32 -> vector<2x256xf32>
    %c1_i32_75 = arith.constant 1 : i32
    %237 = tpu.dynamic_rotate %4 by %c1_i32_75 dim 1 : vector<2x256xf32>, i32 -> vector<2x256xf32>
    %c23 = arith.constant 23 : index
    %c0_76 = arith.constant 0 : index
    %238 = vector.load %arg1[%c23, %c0_76] : memref<98x256xf32, #tpu.memory_space<vmem>>, vector<1x256xf32>
    %c72 = arith.constant 72 : index
    %c0_77 = arith.constant 0 : index
    %239 = vector.load %arg1[%c72, %c0_77] : memref<98x256xf32, #tpu.memory_space<vmem>>, vector<1x256xf32>
    %240 = vector.broadcast %238 : vector<1x256xf32> to vector<2x256xf32>
    %241 = arith.mulf %236, %240 : vector<2x256xf32>
    %242 = arith.addf %235, %241 : vector<2x256xf32>
    %243 = vector.broadcast %239 : vector<1x256xf32> to vector<2x256xf32>
    %244 = arith.mulf %237, %243 : vector<2x256xf32>
    %245 = arith.addf %242, %244 : vector<2x256xf32>
    %c24 = arith.constant 24 : index
    %c0_78 = arith.constant 0 : index
    %246 = vector.load %arg1[%c24, %c0_78] : memref<98x256xf32, #tpu.memory_space<vmem>>, vector<1x256xf32>
    %c73 = arith.constant 73 : index
    %c0_79 = arith.constant 0 : index
    %247 = vector.load %arg1[%c73, %c0_79] : memref<98x256xf32, #tpu.memory_space<vmem>>, vector<1x256xf32>
    %248 = vector.broadcast %246 : vector<1x256xf32> to vector<2x256xf32>
    %249 = arith.mulf %3, %248 : vector<2x256xf32>
    %250 = arith.addf %245, %249 : vector<2x256xf32>
    %251 = vector.broadcast %247 : vector<1x256xf32> to vector<2x256xf32>
    %252 = arith.mulf %4, %251 : vector<2x256xf32>
    %253 = arith.addf %250, %252 : vector<2x256xf32>
    %c255_i32 = arith.constant 255 : i32
    %254 = tpu.dynamic_rotate %3 by %c255_i32 dim 1 : vector<2x256xf32>, i32 -> vector<2x256xf32>
    %c255_i32_80 = arith.constant 255 : i32
    %255 = tpu.dynamic_rotate %4 by %c255_i32_80 dim 1 : vector<2x256xf32>, i32 -> vector<2x256xf32>
    %c25 = arith.constant 25 : index
    %c0_81 = arith.constant 0 : index
    %256 = vector.load %arg1[%c25, %c0_81] : memref<98x256xf32, #tpu.memory_space<vmem>>, vector<1x256xf32>
    %c74 = arith.constant 74 : index
    %c0_82 = arith.constant 0 : index
    %257 = vector.load %arg1[%c74, %c0_82] : memref<98x256xf32, #tpu.memory_space<vmem>>, vector<1x256xf32>
    %258 = vector.broadcast %256 : vector<1x256xf32> to vector<2x256xf32>
    %259 = arith.mulf %254, %258 : vector<2x256xf32>
    %260 = arith.addf %253, %259 : vector<2x256xf32>
    %261 = vector.broadcast %257 : vector<1x256xf32> to vector<2x256xf32>
    %262 = arith.mulf %255, %261 : vector<2x256xf32>
    %263 = arith.addf %260, %262 : vector<2x256xf32>
    %c254_i32 = arith.constant 254 : i32
    %264 = tpu.dynamic_rotate %3 by %c254_i32 dim 1 : vector<2x256xf32>, i32 -> vector<2x256xf32>
    %c254_i32_83 = arith.constant 254 : i32
    %265 = tpu.dynamic_rotate %4 by %c254_i32_83 dim 1 : vector<2x256xf32>, i32 -> vector<2x256xf32>
    %c26 = arith.constant 26 : index
    %c0_84 = arith.constant 0 : index
    %266 = vector.load %arg1[%c26, %c0_84] : memref<98x256xf32, #tpu.memory_space<vmem>>, vector<1x256xf32>
    %c75 = arith.constant 75 : index
    %c0_85 = arith.constant 0 : index
    %267 = vector.load %arg1[%c75, %c0_85] : memref<98x256xf32, #tpu.memory_space<vmem>>, vector<1x256xf32>
    %268 = vector.broadcast %266 : vector<1x256xf32> to vector<2x256xf32>
    %269 = arith.mulf %264, %268 : vector<2x256xf32>
    %270 = arith.addf %263, %269 : vector<2x256xf32>
    %271 = vector.broadcast %267 : vector<1x256xf32> to vector<2x256xf32>
    %272 = arith.mulf %265, %271 : vector<2x256xf32>
    %273 = arith.addf %270, %272 : vector<2x256xf32>
    %c253_i32 = arith.constant 253 : i32
    %274 = tpu.dynamic_rotate %3 by %c253_i32 dim 1 : vector<2x256xf32>, i32 -> vector<2x256xf32>
    %c253_i32_86 = arith.constant 253 : i32
    %275 = tpu.dynamic_rotate %4 by %c253_i32_86 dim 1 : vector<2x256xf32>, i32 -> vector<2x256xf32>
    %c27 = arith.constant 27 : index
    %c0_87 = arith.constant 0 : index
    %276 = vector.load %arg1[%c27, %c0_87] : memref<98x256xf32, #tpu.memory_space<vmem>>, vector<1x256xf32>
    %c76 = arith.constant 76 : index
    %c0_88 = arith.constant 0 : index
    %277 = vector.load %arg1[%c76, %c0_88] : memref<98x256xf32, #tpu.memory_space<vmem>>, vector<1x256xf32>
    %278 = vector.broadcast %276 : vector<1x256xf32> to vector<2x256xf32>
    %279 = arith.mulf %274, %278 : vector<2x256xf32>
    %280 = arith.addf %273, %279 : vector<2x256xf32>
    %281 = vector.broadcast %277 : vector<1x256xf32> to vector<2x256xf32>
    %282 = arith.mulf %275, %281 : vector<2x256xf32>
    %283 = arith.addf %280, %282 : vector<2x256xf32>
    %c243_i32 = arith.constant 243 : i32
    %284 = tpu.dynamic_rotate %3 by %c243_i32 dim 1 : vector<2x256xf32>, i32 -> vector<2x256xf32>
    %c243_i32_89 = arith.constant 243 : i32
    %285 = tpu.dynamic_rotate %4 by %c243_i32_89 dim 1 : vector<2x256xf32>, i32 -> vector<2x256xf32>
    %c28 = arith.constant 28 : index
    %c0_90 = arith.constant 0 : index
    %286 = vector.load %arg1[%c28, %c0_90] : memref<98x256xf32, #tpu.memory_space<vmem>>, vector<1x256xf32>
    %c77 = arith.constant 77 : index
    %c0_91 = arith.constant 0 : index
    %287 = vector.load %arg1[%c77, %c0_91] : memref<98x256xf32, #tpu.memory_space<vmem>>, vector<1x256xf32>
    %288 = vector.broadcast %286 : vector<1x256xf32> to vector<2x256xf32>
    %289 = arith.mulf %284, %288 : vector<2x256xf32>
    %290 = arith.addf %283, %289 : vector<2x256xf32>
    %291 = vector.broadcast %287 : vector<1x256xf32> to vector<2x256xf32>
    %292 = arith.mulf %285, %291 : vector<2x256xf32>
    %293 = arith.addf %290, %292 : vector<2x256xf32>
    %c242_i32 = arith.constant 242 : i32
    %294 = tpu.dynamic_rotate %3 by %c242_i32 dim 1 : vector<2x256xf32>, i32 -> vector<2x256xf32>
    %c242_i32_92 = arith.constant 242 : i32
    %295 = tpu.dynamic_rotate %4 by %c242_i32_92 dim 1 : vector<2x256xf32>, i32 -> vector<2x256xf32>
    %c29 = arith.constant 29 : index
    %c0_93 = arith.constant 0 : index
    %296 = vector.load %arg1[%c29, %c0_93] : memref<98x256xf32, #tpu.memory_space<vmem>>, vector<1x256xf32>
    %c78 = arith.constant 78 : index
    %c0_94 = arith.constant 0 : index
    %297 = vector.load %arg1[%c78, %c0_94] : memref<98x256xf32, #tpu.memory_space<vmem>>, vector<1x256xf32>
    %298 = vector.broadcast %296 : vector<1x256xf32> to vector<2x256xf32>
    %299 = arith.mulf %294, %298 : vector<2x256xf32>
    %300 = arith.addf %293, %299 : vector<2x256xf32>
    %301 = vector.broadcast %297 : vector<1x256xf32> to vector<2x256xf32>
    %302 = arith.mulf %295, %301 : vector<2x256xf32>
    %303 = arith.addf %300, %302 : vector<2x256xf32>
    %c241_i32 = arith.constant 241 : i32
    %304 = tpu.dynamic_rotate %3 by %c241_i32 dim 1 : vector<2x256xf32>, i32 -> vector<2x256xf32>
    %c241_i32_95 = arith.constant 241 : i32
    %305 = tpu.dynamic_rotate %4 by %c241_i32_95 dim 1 : vector<2x256xf32>, i32 -> vector<2x256xf32>
    %c30 = arith.constant 30 : index
    %c0_96 = arith.constant 0 : index
    %306 = vector.load %arg1[%c30, %c0_96] : memref<98x256xf32, #tpu.memory_space<vmem>>, vector<1x256xf32>
    %c79 = arith.constant 79 : index
    %c0_97 = arith.constant 0 : index
    %307 = vector.load %arg1[%c79, %c0_97] : memref<98x256xf32, #tpu.memory_space<vmem>>, vector<1x256xf32>
    %308 = vector.broadcast %306 : vector<1x256xf32> to vector<2x256xf32>
    %309 = arith.mulf %304, %308 : vector<2x256xf32>
    %310 = arith.addf %303, %309 : vector<2x256xf32>
    %311 = vector.broadcast %307 : vector<1x256xf32> to vector<2x256xf32>
    %312 = arith.mulf %305, %311 : vector<2x256xf32>
    %313 = arith.addf %310, %312 : vector<2x256xf32>
    %c240_i32 = arith.constant 240 : i32
    %314 = tpu.dynamic_rotate %3 by %c240_i32 dim 1 : vector<2x256xf32>, i32 -> vector<2x256xf32>
    %c240_i32_98 = arith.constant 240 : i32
    %315 = tpu.dynamic_rotate %4 by %c240_i32_98 dim 1 : vector<2x256xf32>, i32 -> vector<2x256xf32>
    %c31 = arith.constant 31 : index
    %c0_99 = arith.constant 0 : index
    %316 = vector.load %arg1[%c31, %c0_99] : memref<98x256xf32, #tpu.memory_space<vmem>>, vector<1x256xf32>
    %c80 = arith.constant 80 : index
    %c0_100 = arith.constant 0 : index
    %317 = vector.load %arg1[%c80, %c0_100] : memref<98x256xf32, #tpu.memory_space<vmem>>, vector<1x256xf32>
    %318 = vector.broadcast %316 : vector<1x256xf32> to vector<2x256xf32>
    %319 = arith.mulf %314, %318 : vector<2x256xf32>
    %320 = arith.addf %313, %319 : vector<2x256xf32>
    %321 = vector.broadcast %317 : vector<1x256xf32> to vector<2x256xf32>
    %322 = arith.mulf %315, %321 : vector<2x256xf32>
    %323 = arith.addf %320, %322 : vector<2x256xf32>
    %c239_i32 = arith.constant 239 : i32
    %324 = tpu.dynamic_rotate %3 by %c239_i32 dim 1 : vector<2x256xf32>, i32 -> vector<2x256xf32>
    %c239_i32_101 = arith.constant 239 : i32
    %325 = tpu.dynamic_rotate %4 by %c239_i32_101 dim 1 : vector<2x256xf32>, i32 -> vector<2x256xf32>
    %c32 = arith.constant 32 : index
    %c0_102 = arith.constant 0 : index
    %326 = vector.load %arg1[%c32, %c0_102] : memref<98x256xf32, #tpu.memory_space<vmem>>, vector<1x256xf32>
    %c81 = arith.constant 81 : index
    %c0_103 = arith.constant 0 : index
    %327 = vector.load %arg1[%c81, %c0_103] : memref<98x256xf32, #tpu.memory_space<vmem>>, vector<1x256xf32>
    %328 = vector.broadcast %326 : vector<1x256xf32> to vector<2x256xf32>
    %329 = arith.mulf %324, %328 : vector<2x256xf32>
    %330 = arith.addf %323, %329 : vector<2x256xf32>
    %331 = vector.broadcast %327 : vector<1x256xf32> to vector<2x256xf32>
    %332 = arith.mulf %325, %331 : vector<2x256xf32>
    %333 = arith.addf %330, %332 : vector<2x256xf32>
    %c238_i32 = arith.constant 238 : i32
    %334 = tpu.dynamic_rotate %3 by %c238_i32 dim 1 : vector<2x256xf32>, i32 -> vector<2x256xf32>
    %c238_i32_104 = arith.constant 238 : i32
    %335 = tpu.dynamic_rotate %4 by %c238_i32_104 dim 1 : vector<2x256xf32>, i32 -> vector<2x256xf32>
    %c33 = arith.constant 33 : index
    %c0_105 = arith.constant 0 : index
    %336 = vector.load %arg1[%c33, %c0_105] : memref<98x256xf32, #tpu.memory_space<vmem>>, vector<1x256xf32>
    %c82 = arith.constant 82 : index
    %c0_106 = arith.constant 0 : index
    %337 = vector.load %arg1[%c82, %c0_106] : memref<98x256xf32, #tpu.memory_space<vmem>>, vector<1x256xf32>
    %338 = vector.broadcast %336 : vector<1x256xf32> to vector<2x256xf32>
    %339 = arith.mulf %334, %338 : vector<2x256xf32>
    %340 = arith.addf %333, %339 : vector<2x256xf32>
    %341 = vector.broadcast %337 : vector<1x256xf32> to vector<2x256xf32>
    %342 = arith.mulf %335, %341 : vector<2x256xf32>
    %343 = arith.addf %340, %342 : vector<2x256xf32>
    %c237_i32 = arith.constant 237 : i32
    %344 = tpu.dynamic_rotate %3 by %c237_i32 dim 1 : vector<2x256xf32>, i32 -> vector<2x256xf32>
    %c237_i32_107 = arith.constant 237 : i32
    %345 = tpu.dynamic_rotate %4 by %c237_i32_107 dim 1 : vector<2x256xf32>, i32 -> vector<2x256xf32>
    %c34 = arith.constant 34 : index
    %c0_108 = arith.constant 0 : index
    %346 = vector.load %arg1[%c34, %c0_108] : memref<98x256xf32, #tpu.memory_space<vmem>>, vector<1x256xf32>
    %c83 = arith.constant 83 : index
    %c0_109 = arith.constant 0 : index
    %347 = vector.load %arg1[%c83, %c0_109] : memref<98x256xf32, #tpu.memory_space<vmem>>, vector<1x256xf32>
    %348 = vector.broadcast %346 : vector<1x256xf32> to vector<2x256xf32>
    %349 = arith.mulf %344, %348 : vector<2x256xf32>
    %350 = arith.addf %343, %349 : vector<2x256xf32>
    %351 = vector.broadcast %347 : vector<1x256xf32> to vector<2x256xf32>
    %352 = arith.mulf %345, %351 : vector<2x256xf32>
    %353 = arith.addf %350, %352 : vector<2x256xf32>
    %c227_i32 = arith.constant 227 : i32
    %354 = tpu.dynamic_rotate %3 by %c227_i32 dim 1 : vector<2x256xf32>, i32 -> vector<2x256xf32>
    %c227_i32_110 = arith.constant 227 : i32
    %355 = tpu.dynamic_rotate %4 by %c227_i32_110 dim 1 : vector<2x256xf32>, i32 -> vector<2x256xf32>
    %c35 = arith.constant 35 : index
    %c0_111 = arith.constant 0 : index
    %356 = vector.load %arg1[%c35, %c0_111] : memref<98x256xf32, #tpu.memory_space<vmem>>, vector<1x256xf32>
    %c84 = arith.constant 84 : index
    %c0_112 = arith.constant 0 : index
    %357 = vector.load %arg1[%c84, %c0_112] : memref<98x256xf32, #tpu.memory_space<vmem>>, vector<1x256xf32>
    %358 = vector.broadcast %356 : vector<1x256xf32> to vector<2x256xf32>
    %359 = arith.mulf %354, %358 : vector<2x256xf32>
    %360 = arith.addf %353, %359 : vector<2x256xf32>
    %361 = vector.broadcast %357 : vector<1x256xf32> to vector<2x256xf32>
    %362 = arith.mulf %355, %361 : vector<2x256xf32>
    %363 = arith.addf %360, %362 : vector<2x256xf32>
    %c226_i32 = arith.constant 226 : i32
    %364 = tpu.dynamic_rotate %3 by %c226_i32 dim 1 : vector<2x256xf32>, i32 -> vector<2x256xf32>
    %c226_i32_113 = arith.constant 226 : i32
    %365 = tpu.dynamic_rotate %4 by %c226_i32_113 dim 1 : vector<2x256xf32>, i32 -> vector<2x256xf32>
    %c36 = arith.constant 36 : index
    %c0_114 = arith.constant 0 : index
    %366 = vector.load %arg1[%c36, %c0_114] : memref<98x256xf32, #tpu.memory_space<vmem>>, vector<1x256xf32>
    %c85 = arith.constant 85 : index
    %c0_115 = arith.constant 0 : index
    %367 = vector.load %arg1[%c85, %c0_115] : memref<98x256xf32, #tpu.memory_space<vmem>>, vector<1x256xf32>
    %368 = vector.broadcast %366 : vector<1x256xf32> to vector<2x256xf32>
    %369 = arith.mulf %364, %368 : vector<2x256xf32>
    %370 = arith.addf %363, %369 : vector<2x256xf32>
    %371 = vector.broadcast %367 : vector<1x256xf32> to vector<2x256xf32>
    %372 = arith.mulf %365, %371 : vector<2x256xf32>
    %373 = arith.addf %370, %372 : vector<2x256xf32>
    %c225_i32 = arith.constant 225 : i32
    %374 = tpu.dynamic_rotate %3 by %c225_i32 dim 1 : vector<2x256xf32>, i32 -> vector<2x256xf32>
    %c225_i32_116 = arith.constant 225 : i32
    %375 = tpu.dynamic_rotate %4 by %c225_i32_116 dim 1 : vector<2x256xf32>, i32 -> vector<2x256xf32>
    %c37 = arith.constant 37 : index
    %c0_117 = arith.constant 0 : index
    %376 = vector.load %arg1[%c37, %c0_117] : memref<98x256xf32, #tpu.memory_space<vmem>>, vector<1x256xf32>
    %c86 = arith.constant 86 : index
    %c0_118 = arith.constant 0 : index
    %377 = vector.load %arg1[%c86, %c0_118] : memref<98x256xf32, #tpu.memory_space<vmem>>, vector<1x256xf32>
    %378 = vector.broadcast %376 : vector<1x256xf32> to vector<2x256xf32>
    %379 = arith.mulf %374, %378 : vector<2x256xf32>
    %380 = arith.addf %373, %379 : vector<2x256xf32>
    %381 = vector.broadcast %377 : vector<1x256xf32> to vector<2x256xf32>
    %382 = arith.mulf %375, %381 : vector<2x256xf32>
    %383 = arith.addf %380, %382 : vector<2x256xf32>
    %c224_i32 = arith.constant 224 : i32
    %384 = tpu.dynamic_rotate %3 by %c224_i32 dim 1 : vector<2x256xf32>, i32 -> vector<2x256xf32>
    %c224_i32_119 = arith.constant 224 : i32
    %385 = tpu.dynamic_rotate %4 by %c224_i32_119 dim 1 : vector<2x256xf32>, i32 -> vector<2x256xf32>
    %c38 = arith.constant 38 : index
    %c0_120 = arith.constant 0 : index
    %386 = vector.load %arg1[%c38, %c0_120] : memref<98x256xf32, #tpu.memory_space<vmem>>, vector<1x256xf32>
    %c87 = arith.constant 87 : index
    %c0_121 = arith.constant 0 : index
    %387 = vector.load %arg1[%c87, %c0_121] : memref<98x256xf32, #tpu.memory_space<vmem>>, vector<1x256xf32>
    %388 = vector.broadcast %386 : vector<1x256xf32> to vector<2x256xf32>
    %389 = arith.mulf %384, %388 : vector<2x256xf32>
    %390 = arith.addf %383, %389 : vector<2x256xf32>
    %391 = vector.broadcast %387 : vector<1x256xf32> to vector<2x256xf32>
    %392 = arith.mulf %385, %391 : vector<2x256xf32>
    %393 = arith.addf %390, %392 : vector<2x256xf32>
    %c223_i32 = arith.constant 223 : i32
    %394 = tpu.dynamic_rotate %3 by %c223_i32 dim 1 : vector<2x256xf32>, i32 -> vector<2x256xf32>
    %c223_i32_122 = arith.constant 223 : i32
    %395 = tpu.dynamic_rotate %4 by %c223_i32_122 dim 1 : vector<2x256xf32>, i32 -> vector<2x256xf32>
    %c39 = arith.constant 39 : index
    %c0_123 = arith.constant 0 : index
    %396 = vector.load %arg1[%c39, %c0_123] : memref<98x256xf32, #tpu.memory_space<vmem>>, vector<1x256xf32>
    %c88 = arith.constant 88 : index
    %c0_124 = arith.constant 0 : index
    %397 = vector.load %arg1[%c88, %c0_124] : memref<98x256xf32, #tpu.memory_space<vmem>>, vector<1x256xf32>
    %398 = vector.broadcast %396 : vector<1x256xf32> to vector<2x256xf32>
    %399 = arith.mulf %394, %398 : vector<2x256xf32>
    %400 = arith.addf %393, %399 : vector<2x256xf32>
    %401 = vector.broadcast %397 : vector<1x256xf32> to vector<2x256xf32>
    %402 = arith.mulf %395, %401 : vector<2x256xf32>
    %403 = arith.addf %400, %402 : vector<2x256xf32>
    %c222_i32 = arith.constant 222 : i32
    %404 = tpu.dynamic_rotate %3 by %c222_i32 dim 1 : vector<2x256xf32>, i32 -> vector<2x256xf32>
    %c222_i32_125 = arith.constant 222 : i32
    %405 = tpu.dynamic_rotate %4 by %c222_i32_125 dim 1 : vector<2x256xf32>, i32 -> vector<2x256xf32>
    %c40 = arith.constant 40 : index
    %c0_126 = arith.constant 0 : index
    %406 = vector.load %arg1[%c40, %c0_126] : memref<98x256xf32, #tpu.memory_space<vmem>>, vector<1x256xf32>
    %c89 = arith.constant 89 : index
    %c0_127 = arith.constant 0 : index
    %407 = vector.load %arg1[%c89, %c0_127] : memref<98x256xf32, #tpu.memory_space<vmem>>, vector<1x256xf32>
    %408 = vector.broadcast %406 : vector<1x256xf32> to vector<2x256xf32>
    %409 = arith.mulf %404, %408 : vector<2x256xf32>
    %410 = arith.addf %403, %409 : vector<2x256xf32>
    %411 = vector.broadcast %407 : vector<1x256xf32> to vector<2x256xf32>
    %412 = arith.mulf %405, %411 : vector<2x256xf32>
    %413 = arith.addf %410, %412 : vector<2x256xf32>
    %c221_i32 = arith.constant 221 : i32
    %414 = tpu.dynamic_rotate %3 by %c221_i32 dim 1 : vector<2x256xf32>, i32 -> vector<2x256xf32>
    %c221_i32_128 = arith.constant 221 : i32
    %415 = tpu.dynamic_rotate %4 by %c221_i32_128 dim 1 : vector<2x256xf32>, i32 -> vector<2x256xf32>
    %c41 = arith.constant 41 : index
    %c0_129 = arith.constant 0 : index
    %416 = vector.load %arg1[%c41, %c0_129] : memref<98x256xf32, #tpu.memory_space<vmem>>, vector<1x256xf32>
    %c90 = arith.constant 90 : index
    %c0_130 = arith.constant 0 : index
    %417 = vector.load %arg1[%c90, %c0_130] : memref<98x256xf32, #tpu.memory_space<vmem>>, vector<1x256xf32>
    %418 = vector.broadcast %416 : vector<1x256xf32> to vector<2x256xf32>
    %419 = arith.mulf %414, %418 : vector<2x256xf32>
    %420 = arith.addf %413, %419 : vector<2x256xf32>
    %421 = vector.broadcast %417 : vector<1x256xf32> to vector<2x256xf32>
    %422 = arith.mulf %415, %421 : vector<2x256xf32>
    %423 = arith.addf %420, %422 : vector<2x256xf32>
    %c211_i32 = arith.constant 211 : i32
    %424 = tpu.dynamic_rotate %3 by %c211_i32 dim 1 : vector<2x256xf32>, i32 -> vector<2x256xf32>
    %c211_i32_131 = arith.constant 211 : i32
    %425 = tpu.dynamic_rotate %4 by %c211_i32_131 dim 1 : vector<2x256xf32>, i32 -> vector<2x256xf32>
    %c42 = arith.constant 42 : index
    %c0_132 = arith.constant 0 : index
    %426 = vector.load %arg1[%c42, %c0_132] : memref<98x256xf32, #tpu.memory_space<vmem>>, vector<1x256xf32>
    %c91 = arith.constant 91 : index
    %c0_133 = arith.constant 0 : index
    %427 = vector.load %arg1[%c91, %c0_133] : memref<98x256xf32, #tpu.memory_space<vmem>>, vector<1x256xf32>
    %428 = vector.broadcast %426 : vector<1x256xf32> to vector<2x256xf32>
    %429 = arith.mulf %424, %428 : vector<2x256xf32>
    %430 = arith.addf %423, %429 : vector<2x256xf32>
    %431 = vector.broadcast %427 : vector<1x256xf32> to vector<2x256xf32>
    %432 = arith.mulf %425, %431 : vector<2x256xf32>
    %433 = arith.addf %430, %432 : vector<2x256xf32>
    %c210_i32 = arith.constant 210 : i32
    %434 = tpu.dynamic_rotate %3 by %c210_i32 dim 1 : vector<2x256xf32>, i32 -> vector<2x256xf32>
    %c210_i32_134 = arith.constant 210 : i32
    %435 = tpu.dynamic_rotate %4 by %c210_i32_134 dim 1 : vector<2x256xf32>, i32 -> vector<2x256xf32>
    %c43 = arith.constant 43 : index
    %c0_135 = arith.constant 0 : index
    %436 = vector.load %arg1[%c43, %c0_135] : memref<98x256xf32, #tpu.memory_space<vmem>>, vector<1x256xf32>
    %c92 = arith.constant 92 : index
    %c0_136 = arith.constant 0 : index
    %437 = vector.load %arg1[%c92, %c0_136] : memref<98x256xf32, #tpu.memory_space<vmem>>, vector<1x256xf32>
    %438 = vector.broadcast %436 : vector<1x256xf32> to vector<2x256xf32>
    %439 = arith.mulf %434, %438 : vector<2x256xf32>
    %440 = arith.addf %433, %439 : vector<2x256xf32>
    %441 = vector.broadcast %437 : vector<1x256xf32> to vector<2x256xf32>
    %442 = arith.mulf %435, %441 : vector<2x256xf32>
    %443 = arith.addf %440, %442 : vector<2x256xf32>
    %c209_i32 = arith.constant 209 : i32
    %444 = tpu.dynamic_rotate %3 by %c209_i32 dim 1 : vector<2x256xf32>, i32 -> vector<2x256xf32>
    %c209_i32_137 = arith.constant 209 : i32
    %445 = tpu.dynamic_rotate %4 by %c209_i32_137 dim 1 : vector<2x256xf32>, i32 -> vector<2x256xf32>
    %c44 = arith.constant 44 : index
    %c0_138 = arith.constant 0 : index
    %446 = vector.load %arg1[%c44, %c0_138] : memref<98x256xf32, #tpu.memory_space<vmem>>, vector<1x256xf32>
    %c93 = arith.constant 93 : index
    %c0_139 = arith.constant 0 : index
    %447 = vector.load %arg1[%c93, %c0_139] : memref<98x256xf32, #tpu.memory_space<vmem>>, vector<1x256xf32>
    %448 = vector.broadcast %446 : vector<1x256xf32> to vector<2x256xf32>
    %449 = arith.mulf %444, %448 : vector<2x256xf32>
    %450 = arith.addf %443, %449 : vector<2x256xf32>
    %451 = vector.broadcast %447 : vector<1x256xf32> to vector<2x256xf32>
    %452 = arith.mulf %445, %451 : vector<2x256xf32>
    %453 = arith.addf %450, %452 : vector<2x256xf32>
    %c208_i32 = arith.constant 208 : i32
    %454 = tpu.dynamic_rotate %3 by %c208_i32 dim 1 : vector<2x256xf32>, i32 -> vector<2x256xf32>
    %c208_i32_140 = arith.constant 208 : i32
    %455 = tpu.dynamic_rotate %4 by %c208_i32_140 dim 1 : vector<2x256xf32>, i32 -> vector<2x256xf32>
    %c45 = arith.constant 45 : index
    %c0_141 = arith.constant 0 : index
    %456 = vector.load %arg1[%c45, %c0_141] : memref<98x256xf32, #tpu.memory_space<vmem>>, vector<1x256xf32>
    %c94 = arith.constant 94 : index
    %c0_142 = arith.constant 0 : index
    %457 = vector.load %arg1[%c94, %c0_142] : memref<98x256xf32, #tpu.memory_space<vmem>>, vector<1x256xf32>
    %458 = vector.broadcast %456 : vector<1x256xf32> to vector<2x256xf32>
    %459 = arith.mulf %454, %458 : vector<2x256xf32>
    %460 = arith.addf %453, %459 : vector<2x256xf32>
    %461 = vector.broadcast %457 : vector<1x256xf32> to vector<2x256xf32>
    %462 = arith.mulf %455, %461 : vector<2x256xf32>
    %463 = arith.addf %460, %462 : vector<2x256xf32>
    %c207_i32 = arith.constant 207 : i32
    %464 = tpu.dynamic_rotate %3 by %c207_i32 dim 1 : vector<2x256xf32>, i32 -> vector<2x256xf32>
    %c207_i32_143 = arith.constant 207 : i32
    %465 = tpu.dynamic_rotate %4 by %c207_i32_143 dim 1 : vector<2x256xf32>, i32 -> vector<2x256xf32>
    %c46 = arith.constant 46 : index
    %c0_144 = arith.constant 0 : index
    %466 = vector.load %arg1[%c46, %c0_144] : memref<98x256xf32, #tpu.memory_space<vmem>>, vector<1x256xf32>
    %c95 = arith.constant 95 : index
    %c0_145 = arith.constant 0 : index
    %467 = vector.load %arg1[%c95, %c0_145] : memref<98x256xf32, #tpu.memory_space<vmem>>, vector<1x256xf32>
    %468 = vector.broadcast %466 : vector<1x256xf32> to vector<2x256xf32>
    %469 = arith.mulf %464, %468 : vector<2x256xf32>
    %470 = arith.addf %463, %469 : vector<2x256xf32>
    %471 = vector.broadcast %467 : vector<1x256xf32> to vector<2x256xf32>
    %472 = arith.mulf %465, %471 : vector<2x256xf32>
    %473 = arith.addf %470, %472 : vector<2x256xf32>
    %c206_i32 = arith.constant 206 : i32
    %474 = tpu.dynamic_rotate %3 by %c206_i32 dim 1 : vector<2x256xf32>, i32 -> vector<2x256xf32>
    %c206_i32_146 = arith.constant 206 : i32
    %475 = tpu.dynamic_rotate %4 by %c206_i32_146 dim 1 : vector<2x256xf32>, i32 -> vector<2x256xf32>
    %c47 = arith.constant 47 : index
    %c0_147 = arith.constant 0 : index
    %476 = vector.load %arg1[%c47, %c0_147] : memref<98x256xf32, #tpu.memory_space<vmem>>, vector<1x256xf32>
    %c96 = arith.constant 96 : index
    %c0_148 = arith.constant 0 : index
    %477 = vector.load %arg1[%c96, %c0_148] : memref<98x256xf32, #tpu.memory_space<vmem>>, vector<1x256xf32>
    %478 = vector.broadcast %476 : vector<1x256xf32> to vector<2x256xf32>
    %479 = arith.mulf %474, %478 : vector<2x256xf32>
    %480 = arith.addf %473, %479 : vector<2x256xf32>
    %481 = vector.broadcast %477 : vector<1x256xf32> to vector<2x256xf32>
    %482 = arith.mulf %475, %481 : vector<2x256xf32>
    %483 = arith.addf %480, %482 : vector<2x256xf32>
    %c205_i32 = arith.constant 205 : i32
    %484 = tpu.dynamic_rotate %3 by %c205_i32 dim 1 : vector<2x256xf32>, i32 -> vector<2x256xf32>
    %c205_i32_149 = arith.constant 205 : i32
    %485 = tpu.dynamic_rotate %4 by %c205_i32_149 dim 1 : vector<2x256xf32>, i32 -> vector<2x256xf32>
    %c48 = arith.constant 48 : index
    %c0_150 = arith.constant 0 : index
    %486 = vector.load %arg1[%c48, %c0_150] : memref<98x256xf32, #tpu.memory_space<vmem>>, vector<1x256xf32>
    %c97 = arith.constant 97 : index
    %c0_151 = arith.constant 0 : index
    %487 = vector.load %arg1[%c97, %c0_151] : memref<98x256xf32, #tpu.memory_space<vmem>>, vector<1x256xf32>
    %488 = vector.broadcast %486 : vector<1x256xf32> to vector<2x256xf32>
    %489 = arith.mulf %484, %488 : vector<2x256xf32>
    %490 = arith.addf %483, %489 : vector<2x256xf32>
    %491 = vector.broadcast %487 : vector<1x256xf32> to vector<2x256xf32>
    %492 = arith.mulf %485, %491 : vector<2x256xf32>
    %493 = arith.addf %490, %492 : vector<2x256xf32>
    %cst_152 = arith.constant 0.000000e+00 : f32
    %494 = vector.broadcast %cst_152 : f32 to vector<2x256xf32>
    %495 = arith.subf %494, %493 : vector<2x256xf32>
    %496 = math.exp %495 : vector<2x256xf32>
    %cst_153 = arith.constant 1.000000e+00 : f32
    %497 = vector.broadcast %cst_153 : f32 to vector<2x256xf32>
    %498 = arith.addf %497, %496 : vector<2x256xf32>
    %499 = tpu.reciprocal %498 {approx = true} : vector<2x256xf32> -> vector<2x256xf32>
    %500 = vector.shape_cast %499 : vector<2x256xf32> to vector<2x1x256xf32>
    %501 = vector.broadcast %500 : vector<2x1x256xf32> to vector<2x4x256xf32>
    %502 = arith.mulf %0, %501 : vector<2x4x256xf32>
    %c0_154 = arith.constant 0 : index
    %c0_155 = arith.constant 0 : index
    %c0_156 = arith.constant 0 : index
    %503 = vector.load %arg3[%c0_154, %c0_155, %c0_156] : memref<2x4x256xf32, #tpu.memory_space<vmem>>, vector<2x4x256xf32>
    tpu.vector_store %arg3[%c0_154, %c0_155, %c0_156], %502 {strides = array<i32>} : memref<2x4x256xf32, #tpu.memory_space<vmem>>, vector<2x4x256xf32>,
    return
  }
  func.func @transform_0(%arg0: i32) -> (i32, i32) {
    %c0_i32 = arith.constant 0 : i32
    %c0_i32_0 = arith.constant 0 : i32
    %c0_i32_1 = arith.constant 0 : i32
    return %c0_i32, %c0_i32_0 : i32, i32
  }
  func.func @transform_1(%arg0: i32) -> (i32, i32, i32) {
    %c0_i32 = arith.constant 0 : i32
    %c0_i32_0 = arith.constant 0 : i32
    %c0_i32_1 = arith.constant 0 : i32
    return %arg0, %c0_i32, %c0_i32_0 : i32, i32, i32
  }
  func.func @transform_2(%arg0: i32) -> (i32, i32, i32) {
    %c0_i32 = arith.constant 0 : i32
    %c0_i32_0 = arith.constant 0 : i32
    %c0_i32_1 = arith.constant 0 : i32
    return %arg0, %c0_i32, %c0_i32_0 : i32, i32, i32
  }
}

</mosaic_0001>

<bundles_post_ra>
// kernel: tpu_custom_call.1
= control target key start
LH: loop header
LB: loop body
LE: loop exit
PB: predicated region body
PF: predicated region fallthrough
CT: control target
= control target key end

     0   :  { %7 = vsyncpa [#allocation3], 0  ;;  %s4604_s0 = inlined_call_operand.hbm [shape: f32[98,256], index: 0, kind: input, shape index: {}]   ;;  %s4605_s1 = inlined_call_operand.hbm [shape: f32[2,4,256], index: 1, kind: input, shape index: {}]   ;;  %s4606_s2 = inlined_call_operand.hbm [shape: f32[2,4,256], index: 2, kind: output, shape index: {}]  }
   0x1   :  { %8 = vsyncpa [#allocation6], 0 }
   0x2   :  { %9 = vsyncpa [#allocation4], 0  ;;  %s2657_s9 = smov [#allocation2]   ;;  %s2585_s13 = scalar_lea.hbm %s4604_s0, 3328 }
   0x3   :  { %s15_s10 = sshll.u32 %s2657_s9, 4  ;;  %p2586_p0 = scmp.ne.s32.totalorder %s4604_s0, %s2585_s13  ;;  %s16_s10 = int_to_ptr.vmem [resolvable:$true] %s15_s10 }
   0x4   :  { %p2589_p1 = scmp.lt.u32.totalorder %s2585_s13, %s4604_s0 }
   0x6   :  { %p2591_p2 = pnand %p2589_p1, %p2586_p0 }
   0x8   :  { %2594 = shalt.err (!%p2591_p2)
}
   0x9   :  { %s2595_s18 = scalar_lea.vmem %s16_s10, 3328  ;;  %p2600_p4 = scmp.lt.s32.totalorder %s16_s10, %s16_s10 }
   0xa   :  { %p2596_p3 = scmp.ne.s32.totalorder %s16_s10, %s2595_s18  ;;  %p2601_p5 = scmp.lt.s32.totalorder %s2595_s18, %s2595_s18 }
   0xc   :  { %p2602_p6 = por %p2601_p5, %p2600_p4 }
   0xe   :  { %p2603_p7 = pnand %p2602_p6, %p2596_p3 }
  0x10   :  { %2606 = shalt.err (!%p2603_p7)
}
  0x11   :  { %s2658_s19 = smov 256   ;;  %s2659_s20 = smov 16  }
  0x12   :  { %21 = dma.hbm_to_vmem [thread:$0]  %s4604_s0, 3328, %s16_s10, [#allocation3], %s2658_s19, %s2658_s19, %s2659_s20  }
  0x13   :  { %s2660_s23 = smov [#allocation5]   ;;  %s2607_s27 = scalar_lea.hbm %s4605_s1, 256 }
  0x14   :  { %s27_s24 = sshll.u32 %s2660_s23, 4  ;;  %p2608_p8 = scmp.ne.s32.totalorder %s4605_s1, %s2607_s27  ;;  %s28_s24 = int_to_ptr.vmem [resolvable:$true] %s27_s24 }
  0x15   :  { %p2611_p9 = scmp.lt.u32.totalorder %s2607_s27, %s4605_s1 }
  0x17   :  { %p2613_p10 = pnand %p2611_p9, %p2608_p8 }
  0x19   :  { %2616 = shalt.err (!%p2613_p10)
}
  0x1a   :  { %s2617_s4 = scalar_lea.vmem %s28_s24, 256  ;;  %p2622_p12 = scmp.lt.s32.totalorder %s28_s24, %s28_s24 }
  0x1b   :  { %p2618_p11 = scmp.ne.s32.totalorder %s28_s24, %s2617_s4  ;;  %p2623_p13 = scmp.lt.s32.totalorder %s2617_s4, %s2617_s4 }
  0x1d   :  { %p2624_p0 = por %p2623_p13, %p2622_p12 }
  0x1f   :  { %p2625_p1 = pnand %p2624_p0, %p2618_p11 }
  0x21   :  { %2628 = shalt.err (!%p2625_p1)
}
  0x22   :  { %s2661_s0 = smov 128   ;;  %s2662_s5 = smov 8  }
  0x23   :  { %33 = dma.hbm_to_vmem [thread:$0]  %s4605_s1, 256, %s28_s24, [#allocation6], %s2661_s0, %s2661_s0, %s2662_s5  }
  0x24   :  { %2651 = dma.done.wait [#allocation3], 3328  }
  0x25   :  { %2652 = vsyncadd [#allocation3], 4294963968 }
  0x26   :  { %2653 = dma.done.wait [#allocation6], 256  }
  0x27   :  { %2654 = vsyncadd [#allocation6], 4294967040  ;;  %vm48_vm0 = vcmask 1043456   ;;  %v40_v0 = vld [vmem:[#allocation5] sm:$0xff]  ;;  %v41_v1 = vld [vmem:[#allocation5 + $0x8] sm:$0xff]  ;;  %vm113_vm1 = vcmask 1041409  }
  0x28   :  { %v81_v2 = vsel %vm48_vm0, %v40_v0, -inf  ;;  %v95_v3 = vsel %vm48_vm0, %v41_v1, -inf  ;;  %v44_v4 = vcombine.high %v40_v0, %v40_v0  ;;  %v45_v5 = vcombine.high %v41_v1, %v41_v1  ;;  %s2663_s1 = smov 50   ;;  %s2664_s8 = smov 51  }
  0x29   :  { %v82_v6 = vrot.slane %v81_v2, 4  ;;  %v96_v7 = vrot.slane %v95_v3, 4  ;;  %v49_v8 = vsel %vm48_vm0, %v40_v0, 0.0  ;;  %v63_v9 = vsel %vm48_vm0, %v41_v1, 0.0  ;;  %s2665_s9 = smov 49   ;;  %s2666_s10 = smov 48  }
  0x2a   :  { %v88_v10 = vsel %vm48_vm0, %v44_v4, -inf  ;;  %v102_v11 = vsel %vm48_vm0, %v45_v5, -inf  ;;  %v50_v12 = vrot.slane %v49_v8, 4  ;;  %v64_v13 = vrot.slane %v63_v9, 4  ;;  %s2667_s11 = smov 47   ;;  %s2668_s12 = smov 46  }
  0x2b   :  { %v83_v14 = vmax.f32 %v81_v2, %v82_v6  ;;  %v97_v15 = vmax.f32 %v95_v3, %v96_v7  ;;  %v89_v16 = vrot.slane %v88_v10, 4  ;;  %v103_v17 = vrot.slane %v102_v11, 4  ;;  %s2669_s13 = smov 45   ;;  %s2670_s14 = smov 35  }
  0x2c   :  { %v51_v18 = vadd.f32 %v50_v12, %v49_v8  ;;  %v65_v19 = vadd.f32 %v64_v13, %v63_v9  ;;  %v56_v20 = vsel %vm48_vm0, %v44_v4, 0.0  ;;  %v70_v21 = vsel %vm48_vm0, %v45_v5, 0.0  ;;  %s2671_s15 = smov 34   ;;  %s2672_s16 = smov 33  }
  0x2d   :  { %v84_v22 = vrot.slane %v83_v14, 2  ;;  %v98_v23 = vrot.slane %v97_v15, 2  ;;  %v90_v24 = vmax.f32 %v88_v10, %v89_v16  ;;  %v104_v25 = vmax.f32 %v102_v11, %v103_v17  ;;  %s2673_s17 = smov 32   ;;  %s2674_s18 = smov 31  }
  0x2e   :  { %v52_v26 = vrot.slane %v51_v18, 2  ;;  %v66_v27 = vrot.slane %v65_v19, 2  ;;  %v57_v28 = vrot.slane %v56_v20, 4  ;;  %v71_v29 = vrot.slane %v70_v21, 4  ;;  %s2675_s19 = smov 30   ;;  %s2676_s21 = smov 29  }
  0x2f   :  { %v85_v30 = vmax.f32 %v83_v14, %v84_v22  ;;  %v99_v31 = vmax.f32 %v97_v15, %v98_v23  ;;  %v91_v32 = vrot.slane %v90_v24, 2  ;;  %v105_v33 = vrot.slane %v104_v25, 2  ;;  %s2677_s22 = smov 19   ;;  %s2678_s23 = smov 18  }
  0x30   :  { %v53_v34 = vadd.f32 %v52_v26, %v51_v18  ;;  %v67_v35 = vadd.f32 %v66_v27, %v65_v19  ;;  %v58_v36 = vadd.f32 %v57_v28, %v56_v20  ;;  %v72_v37 = vadd.f32 %v71_v29, %v70_v21  ;;  %s2679_s24 = smov 17   ;;  %s2680_s25 = smov 15  }
  0x31   :  { %v86_v38 = vrot.slane %v85_v30, 1  ;;  %v100_v39 = vrot.slane %v99_v31, 1  ;;  %v92_v40 = vmax.f32 %v90_v24, %v91_v32  ;;  %v106_v41 = vmax.f32 %v104_v25, %v105_v33  ;;  %s2682_s26 = smov 13   ;;  %s2683_s27 = smov 3  }
  0x32   :  { %v54_v42 = vrot.slane %v53_v34, 1  ;;  %v68_v43 = vrot.slane %v67_v35, 1  ;;  %v59_v44 = vrot.slane %v58_v36, 2  ;;  %v73_v45 = vrot.slane %v72_v37, 2  ;;  %s2684_s28 = smov 2   ;;  %s2685_s29 = smov 1  }
  0x33   :  { %v2763_v46 = vmax.f32 %v85_v30, %v86_v38  ;;  %v2765_v47 = vmax.f32 %v99_v31, %v100_v39  ;;  %v93_v48 = vrot.slane %v92_v40, 1  ;;  %v107_v49 = vrot.slane %v106_v41, 1  ;;  %s2686_s30 = smov 127   ;;  %s2687_s3 = smov 126  }
  0x34   :  { %v55_v50 = vadd.f32 %v54_v42, %v53_v34  ;;  %v69_v51 = vadd.f32 %v68_v43, %v67_v35  ;;  %v60_v52 = vadd.f32 %v59_v44, %v58_v36  ;;  %v74_v53 = vadd.f32 %v73_v45, %v72_v37  ;;  %v141_v43 = vld [vmem:[#allocation2] ss:$8 sm:$0x3]  ;;  %s2688_s4 = smov 125   ;;  %s2689_s6 = smov 115  }
  0x35   :  { %4622 = vst [vmem:[#allocation11_spill] sm:$0xff] %v2763_v46  ;;  %4623 = vst [vmem:[#allocation12_spill] sm:$0xff] %v2765_v47  ;;  %v2770_v54 = vsel %vm113_vm1, %v2765_v47, %v2763_v46  ;;  %v2772_v55 = vmax.f32 %v92_v40, %v93_v48  ;;  %v2774_v56 = vmax.f32 %v106_v41, %v107_v49  ;;  %v122_v36 = vlaneseq  ;;  %v143_v48 = vld [vmem:[#allocation2 + $0x61] ss:$8 sm:$0x3]  ;;  %s2690_s7 = smov 114  }
  0x36   :  { %181 = vrot.lane.b32.xlu0 %v2770_v54, %s2663_s1  ;;  %135 = vrot.lane.b32.xlu1 %v2770_v54, %s2664_s8  ;;  %v2778_v57 = vmul.f32 0.25, %v55_v50  ;;  %v2785_v59 = vmul.f32 0.25, %v69_v51  ;;  %v61_v60 = vrot.slane %v60_v52, 1  ;;  %v75_v61 = vrot.slane %v74_v53, 1 }
  0x37   :  { %4624 = vst [vmem:[#allocation13_spill] sm:$0xff] %v2772_v55  ;;  %4625 = vst [vmem:[#allocation14_spill] sm:$0xff] %v2774_v56  ;;  %v2783_v58 = vsel %vm113_vm1, %v2774_v56, %v2772_v55  ;;  %v2962_v39 = vshrl.u32 %v122_v36, 7  ;;  %v2969_v42 = vand.u32 127, %v122_v36 }
  0x38   :  { %4626 = vst [vmem:[#allocation15_spill] sm:$0xff] %v2778_v57  ;;  %4627 = vst [vmem:[#allocation16_spill] sm:$0xff] %v2785_v59  ;;  %v2792_v62 = vsel %vm113_vm1, %v2785_v59, %v2778_v57  ;;  %v62_v63 = vadd.f32 %v61_v60, %v60_v52  ;;  %v76_v0 = vadd.f32 %v75_v61, %v74_v53  ;;  %v3123_v59 = vld [vmem:[#allocation2 + $0x6] ss:$8 sm:$0x3] }
  0x39   :  { %4630 = vst [vmem:[#allocation19_spill] sm:$0xff] %v2962_v39  ;;  %v2973_v44 = vsub.s32 0, %v2962_v39  ;;  %v2976_v45 = vsub.s32 1, %v2962_v39  ;;  %vm124_vm2 = vcmp.lt.s32.totalorder %v2969_v42, 51  ;;  %vm178_vm3 = vcmp.lt.s32.totalorder %v2969_v42, 50 }
  0x3a   :  { %228 = vrot.lane.b32.xlu0 %v2770_v54, %s2665_s9  ;;  %137 = vrot.lane.b32.xlu1 %v2783_v58, %s2664_s8  ;;  %v2796_v1 = vmul.f32 0.25, %v62_v63  ;;  %v2798_v2 = vmul.f32 0.25, %v76_v0  ;;  %vm225_vm4 = vcmp.lt.s32.totalorder %v2969_v42, 49  ;;  %vm272_vm5 = vcmp.lt.s32.totalorder %v2969_v42, 48 }
  0x3b   :  { %v148_v51 = vrot.slane %v141_v43, %v2973_v44  ;;  %v152_v52 = vrot.slane %v141_v43, %v2976_v45  ;;  %v163_v61 = vrot.slane %v143_v48, %v2973_v44  ;;  %v167_v63 = vrot.slane %v143_v48, %v2976_v45  ;;  %v188_v43 = vld [vmem:[#allocation2 + $0x1] ss:$8 sm:$0x3] }
  0x3c   :  { %4628 = vst [vmem:[#allocation17_spill] sm:$0xff] %v2796_v1  ;;  %4629 = vst [vmem:[#allocation18_spill] sm:$0xff] %v2798_v2  ;;  %v2805_v3 = vsel %vm113_vm1, %v2798_v2, %v2796_v1  ;;  %v195_v1 = vrot.slane %v188_v43, %v2973_v44  ;;  %v199_v56 = vrot.slane %v188_v43, %v2976_v45  ;;  %vm319_vm6 = vcmp.lt.s32.totalorder %v2969_v42, 47 }
  0x3d   :  { %vm366_vm7 = vcmp.lt.s32.totalorder %v2969_v42, 46  ;;  %vm413_vm8 = vcmp.lt.s32.totalorder %v2969_v42, 45  ;;  %vm460_vm9 = vcmp.lt.s32.totalorder %v2969_v42, 35  ;;  %vm507_vm10 = vcmp.lt.s32.totalorder %v2969_v42, 34 }
  0x3e   :  { %118 = vrot.lane.b32.xlu0 %v2792_v62, %s2664_s8  ;;  %183 = vrot.lane.b32.xlu1 %v2783_v58, %s2663_s1  ;;  %vm554_vm11 = vcmp.lt.s32.totalorder %v2969_v42, 33  ;;  %vm601_vm12 = vcmp.lt.s32.totalorder %v2969_v42, 32  ;;  %vm648_vm13 = vcmp.lt.s32.totalorder %v2969_v42, 31  ;;  %vm695_vm14 = vcmp.lt.s32.totalorder %v2969_v42, 30 }
  0x3f   :  { %vm742_vm15 = vcmp.lt.s32.totalorder %v2969_v42, 29  ;;  %vm789_vm0 = vcmp.lt.s32.totalorder %v2969_v42, 19 }
  0x42   :  { %174 = vrot.lane.b32.xlu0 %v2792_v62, %s2663_s1  ;;  %230 = vrot.lane.b32.xlu1 %v2783_v58, %s2665_s9 }
  0x46   :  { %221 = vrot.lane.b32.xlu0 %v2792_v62, %s2665_s9  ;;  %176 = vrot.lane.b32.xlu1 %v2805_v3, %s2663_s1  ;;  %s2691_s1 = smov 113  }
  0x4a   :  { %268 = vrot.lane.b32.xlu0 %v2792_v62, %s2666_s10  ;;  %223 = vrot.lane.b32.xlu1 %v2805_v3, %s2665_s9  ;;  %s2693_s9 = smov 111  }
  0x4e   :  { %270 = vrot.lane.b32.xlu1 %v2805_v3, %s2666_s10  ;;  %120 = vrot.lane.b32.xlu0 %v2805_v3, %s2664_s8  ;;  %s2692_s8 = smov 112  }
  0x52   :  { %277 = vrot.lane.b32.xlu1 %v2783_v58, %s2666_s10  ;;  %275 = vrot.lane.b32.xlu0 %v2770_v54, %s2666_s10  ;;  %s2694_s10 = smov 110  }
  0x56   :  { %317 = vrot.lane.b32.xlu1 %v2805_v3, %s2667_s11  ;;  %315 = vrot.lane.b32.xlu0 %v2792_v62, %s2667_s11 }
  0x5a   :  { %324 = vrot.lane.b32.xlu1 %v2783_v58, %s2667_s11  ;;  %322 = vrot.lane.b32.xlu0 %v2770_v54, %s2667_s11  ;;  %s2695_s11 = smov 109  }
  0x5e   :  { %364 = vrot.lane.b32.xlu1 %v2805_v3, %s2668_s12  ;;  %362 = vrot.lane.b32.xlu0 %v2792_v62, %s2668_s12 }
  0x62   :  { %371 = vrot.lane.b32.xlu1 %v2783_v58, %s2668_s12  ;;  %369 = vrot.lane.b32.xlu0 %v2770_v54, %s2668_s12  ;;  %s2696_s12 = smov 99  }
  0x66   :  { %411 = vrot.lane.b32.xlu1 %v2805_v3, %s2669_s13  ;;  %409 = vrot.lane.b32.xlu0 %v2792_v62, %s2669_s13 }
  0x6a   :  { %418 = vrot.lane.b32.xlu1 %v2783_v58, %s2669_s13  ;;  %416 = vrot.lane.b32.xlu0 %v2770_v54, %s2669_s13  ;;  %s2697_s13 = smov 98  }
  0x6e   :  { %458 = vrot.lane.b32.xlu1 %v2805_v3, %s2670_s14  ;;  %456 = vrot.lane.b32.xlu0 %v2792_v62, %s2670_s14 }
  0x72   :  { %465 = vrot.lane.b32.xlu1 %v2783_v58, %s2670_s14  ;;  %463 = vrot.lane.b32.xlu0 %v2770_v54, %s2670_s14  ;;  %s2698_s14 = smov 97  }
  0x76   :  { %505 = vrot.lane.b32.xlu1 %v2805_v3, %s2671_s15  ;;  %503 = vrot.lane.b32.xlu0 %v2792_v62, %s2671_s15 }
  0x7a   :  { %512 = vrot.lane.b32.xlu1 %v2783_v58, %s2671_s15  ;;  %510 = vrot.lane.b32.xlu0 %v2770_v54, %s2671_s15  ;;  %s2699_s15 = smov 96  }
  0x7e   :  { %552 = vrot.lane.b32.xlu1 %v2805_v3, %s2672_s16  ;;  %550 = vrot.lane.b32.xlu0 %v2792_v62, %s2672_s16 }
  0x82   :  { %559 = vrot.lane.b32.xlu1 %v2783_v58, %s2672_s16  ;;  %557 = vrot.lane.b32.xlu0 %v2770_v54, %s2672_s16  ;;  %s2700_s16 = smov 95  }
  0x86   :  { %599 = vrot.lane.b32.xlu1 %v2805_v3, %s2673_s17  ;;  %597 = vrot.lane.b32.xlu0 %v2792_v62, %s2673_s17 }
  0x8a   :  { %606 = vrot.lane.b32.xlu1 %v2783_v58, %s2673_s17  ;;  %604 = vrot.lane.b32.xlu0 %v2770_v54, %s2673_s17  ;;  %s2701_s17 = smov 94  }
  0x8e   :  { %646 = vrot.lane.b32.xlu1 %v2805_v3, %s2674_s18  ;;  %644 = vrot.lane.b32.xlu0 %v2792_v62, %s2674_s18 }
  0x92   :  { %653 = vrot.lane.b32.xlu1 %v2783_v58, %s2674_s18  ;;  %651 = vrot.lane.b32.xlu0 %v2770_v54, %s2674_s18  ;;  %s2702_s18 = smov 93  }
  0x96   :  { %693 = vrot.lane.b32.xlu1 %v2805_v3, %s2675_s19  ;;  %691 = vrot.lane.b32.xlu0 %v2792_v62, %s2675_s19 }
  0x9a   :  { %700 = vrot.lane.b32.xlu1 %v2783_v58, %s2675_s19  ;;  %698 = vrot.lane.b32.xlu0 %v2770_v54, %s2675_s19  ;;  %s2703_s19 = smov 83  }
  0x9e   :  { %740 = vrot.lane.b32.xlu1 %v2805_v3, %s2676_s21  ;;  %738 = vrot.lane.b32.xlu0 %v2792_v62, %s2676_s21 }
  0xa2   :  { %747 = vrot.lane.b32.xlu1 %v2783_v58, %s2676_s21  ;;  %745 = vrot.lane.b32.xlu0 %v2770_v54, %s2676_s21  ;;  %s2704_s21 = smov 82  }
  0xa6   :  { %787 = vrot.lane.b32.xlu1 %v2805_v3, %s2677_s22  ;;  %785 = vrot.lane.b32.xlu0 %v2792_v62, %s2677_s22 }
  0xa8   :  { %v2857_v4 = vpop.permute.xlu0 %181  ;;  %v2859_v5 = vpop.permute.xlu1 %135 }
  0xaa   :  { %794 = vrot.lane.b32.xlu1 %v2783_v58, %s2677_s22  ;;  %792 = vrot.lane.b32.xlu0 %v2770_v54, %s2677_s22  ;;  %s2705_s22 = smov 81  }
  0xac   :  { %v2863_v6 = vpop.permute.xlu0 %228  ;;  %v2865_v7 = vpop.permute.xlu1 %137 }
  0xad   :  { %v139_v0 = vsel %vm124_vm2, %v2859_v5, %v2865_v7  ;;  %v140_v36 = vsel %vm124_vm2, %v2865_v7, %v2859_v5  ;;  %v190_v5 = vld [vmem:[#allocation2 + $0x62] ss:$8 sm:$0x3] }
  0xae   :  { %834 = vrot.lane.b32.xlu1 %v2805_v3, %s2678_s23  ;;  %832 = vrot.lane.b32.xlu0 %v2792_v62, %s2678_s23  ;;  %v170_v48 = vmul.f32 %v163_v61, %v140_v36  ;;  %v171_v46 = vmul.f32 %v167_v63, %v139_v0  ;;  %v210_v63 = vrot.slane %v190_v5, %v2973_v44 }
  0xaf   :  { %v214_v0 = vrot.slane %v190_v5, %v2976_v45 }
  0xb0   :  { %v2869_v8 = vpop.permute.xlu0 %118  ;;  %v2871_v9 = vpop.permute.xlu1 %183 }
  0xb2   :  { %841 = vrot.lane.b32.xlu1 %v2783_v58, %s2678_s23  ;;  %839 = vrot.lane.b32.xlu0 %v2770_v54, %s2678_s23  ;;  %s2706_s23 = smov 80  }
  0xb4   :  { %v2875_v10 = vpop.permute.xlu0 %174  ;;  %v2877_v11 = vpop.permute.xlu1 %230 }
  0xb6   :  { %881 = vrot.lane.b32.xlu1 %v2805_v3, %s2679_s24  ;;  %879 = vrot.lane.b32.xlu0 %v2792_v62, %s2679_s24 }
  0xb8   :  { %v2881_v12 = vpop.permute.xlu0 %221  ;;  %v2883_v13 = vpop.permute.xlu1 %176 }
  0xb9   :  { %v179_v7 = vsel %vm178_vm3, %v2875_v10, %v2883_v13 }
  0xba   :  { %888 = vrot.lane.b32.xlu1 %v2783_v58, %s2679_s24  ;;  %886 = vrot.lane.b32.xlu0 %v2770_v54, %s2679_s24  ;;  %v203_v43 = vmul.f32 %v199_v56, %v179_v7  ;;  %s2707_s24 = smov 79  }
  0xbc   :  { %v2887_v14 = vpop.permute.xlu0 %268  ;;  %v2889_v15 = vpop.permute.xlu1 %223 }
  0xbe   :  { %928 = vrot.lane.b32.xlu1 %v2805_v3, %s2659_s20  ;;  %926 = vrot.lane.b32.xlu0 %v2792_v62, %s2659_s20 }
  0xc0   :  { %v2895_v16 = vpop.permute.xlu1 %270  ;;  %v2897_v17 = vpop.permute.xlu0 %120 }
  0xc1   :  { %v125_v53 = vsel %vm124_vm2, %v2869_v8, %v2897_v17  ;;  %v126_v60 = vsel %vm124_vm2, %v2897_v17, %v2869_v8  ;;  %vm836_vm2 = vcmp.lt.s32.totalorder %v2969_v42, 18 }
  0xc2   :  { %935 = vrot.lane.b32.xlu1 %v2783_v58, %s2659_s20  ;;  %933 = vrot.lane.b32.xlu0 %v2770_v54, %s2659_s20  ;;  %s2681_s20 = smov 14   ;;  %v155_v8 = vmul.f32 %v148_v51, %v126_v60  ;;  %v156_v17 = vmul.f32 %v152_v52, %v125_v53  ;;  %v180_v51 = vsel %vm178_vm3, %v2883_v13, %v2875_v10  ;;  %v235_v13 = vld [vmem:[#allocation2 + $0x2] ss:$8 sm:$0x3] }
  0xc3   :  { %v202_v36 = vmul.f32 %v195_v1, %v180_v51  ;;  %v185_v10 = vsel %vm178_vm3, %v2857_v4, %v2871_v9  ;;  %v242_v7 = vrot.slane %v235_v13, %v2973_v44  ;;  %v246_v51 = vrot.slane %v235_v13, %v2976_v45 }
  0xc4   :  { %v2903_v18 = vpop.permute.xlu1 %277  ;;  %v2905_v19 = vpop.permute.xlu0 %275  ;;  %v172_v60 = vadd.f32 %v170_v48, %v155_v8  ;;  %v173_v61 = vadd.f32 %v171_v46, %v156_v17  ;;  %v186_v46 = vsel %vm178_vm3, %v2871_v9, %v2857_v4  ;;  %v218_v5 = vmul.f32 %v214_v0, %v185_v10  ;;  %v237_v4 = vld [vmem:[#allocation2 + $0x63] ss:$8 sm:$0x3] }
  0xc5   :  { %v217_v56 = vmul.f32 %v210_v63, %v186_v46  ;;  %v226_v9 = vsel %vm225_vm4, %v2881_v12, %v2889_v15  ;;  %v261_v10 = vrot.slane %v237_v4, %v2976_v45  ;;  %vm883_vm3 = vcmp.lt.s32.totalorder %v2969_v42, 17 }
  0xc6   :  { %975 = vrot.lane.b32.xlu1 %v2805_v3, %s2680_s25  ;;  %973 = vrot.lane.b32.xlu0 %v2792_v62, %s2680_s25  ;;  %v204_v48 = vadd.f32 %v202_v36, %v172_v60  ;;  %v205_v1 = vadd.f32 %v203_v43, %v173_v61  ;;  %v227_v60 = vsel %vm225_vm4, %v2889_v15, %v2881_v12 }
  0xc7   :  { %v257_v43 = vrot.slane %v237_v4, %v2973_v44  ;;  %v249_v46 = vmul.f32 %v242_v7, %v227_v60  ;;  %v250_v13 = vmul.f32 %v246_v51, %v226_v9  ;;  %v232_v12 = vsel %vm225_vm4, %v2863_v6, %v2877_v11 }
  0xc8   :  { %v2909_v20 = vpop.permute.xlu1 %317  ;;  %v2911_v21 = vpop.permute.xlu0 %315  ;;  %v219_v0 = vadd.f32 %v217_v56, %v204_v48  ;;  %v220_v36 = vadd.f32 %v218_v5, %v205_v1  ;;  %v233_v15 = vsel %vm225_vm4, %v2877_v11, %v2863_v6  ;;  %v282_v48 = vld [vmem:[#allocation2 + $0x3] ss:$8 sm:$0x3]  ;;  %v265_v4 = vmul.f32 %v261_v10, %v232_v12 }
  0xc9   :  { %v264_v51 = vmul.f32 %v257_v43, %v233_v15  ;;  %v289_v9 = vrot.slane %v282_v48, %v2973_v44  ;;  %v293_v60 = vrot.slane %v282_v48, %v2976_v45  ;;  %v273_v6 = vsel %vm272_vm5, %v2887_v14, %v2895_v16 }
  0xca   :  { %982 = vrot.lane.b32.xlu1 %v2783_v58, %s2680_s25  ;;  %980 = vrot.lane.b32.xlu0 %v2770_v54, %s2680_s25  ;;  %v251_v5 = vadd.f32 %v249_v46, %v219_v0  ;;  %v252_v7 = vadd.f32 %v250_v13, %v220_v36  ;;  %v274_v11 = vsel %vm272_vm5, %v2895_v16, %v2887_v14  ;;  %v284_v0 = vld [vmem:[#allocation2 + $0x64] ss:$8 sm:$0x3]  ;;  %vm930_vm4 = vcmp.lt.s32.totalorder %v2969_v42, 16  ;;  %s2708_s25 = smov 78  }
  0xcb   :  { %v296_v13 = vmul.f32 %v289_v9, %v274_v11  ;;  %v297_v12 = vmul.f32 %v293_v60, %v273_v6  ;;  %v304_v15 = vrot.slane %v284_v0, %v2973_v44  ;;  %v308_v48 = vrot.slane %v284_v0, %v2976_v45 }
  0xcc   :  { %v2915_v22 = vpop.permute.xlu1 %324  ;;  %v2917_v23 = vpop.permute.xlu0 %322  ;;  %v266_v10 = vadd.f32 %v264_v51, %v251_v5  ;;  %v267_v46 = vadd.f32 %v265_v4, %v252_v7  ;;  %v279_v14 = vsel %vm272_vm5, %v2905_v19, %v2903_v18  ;;  %v280_v16 = vsel %vm272_vm5, %v2903_v18, %v2905_v19  ;;  %v329_v5 = vld [vmem:[#allocation2 + $0x4] ss:$8 sm:$0x3] }
  0xcd   :  { %v311_v60 = vmul.f32 %v304_v15, %v280_v16  ;;  %v312_v6 = vmul.f32 %v308_v48, %v279_v14  ;;  %v336_v11 = vrot.slane %v329_v5, %v2973_v44  ;;  %v340_v0 = vrot.slane %v329_v5, %v2976_v45  ;;  %v376_v48 = vld [vmem:[#allocation2 + $0x5] ss:$8 sm:$0x3]  ;;  %v3118_v14 = vld [vmem:[#allocation2 + $0x66] ss:$8 sm:$0x3] }
  0xce   :  { %1022 = vrot.lane.b32.xlu1 %v2805_v3, %s2681_s20  ;;  %1020 = vrot.lane.b32.xlu0 %v2792_v62, %s2681_s20  ;;  %v298_v4 = vadd.f32 %v296_v13, %v266_v10  ;;  %v299_v9 = vadd.f32 %v297_v12, %v267_v46  ;;  %v320_v18 = vsel %vm319_vm6, %v2911_v21, %v2909_v20  ;;  %v331_v10 = vld [vmem:[#allocation2 + $0x65] ss:$8 sm:$0x3]  ;;  %vm977_vm5 = vcmp.lt.s32.totalorder %v2969_v42, 15 }
  0xcf   :  { %v321_v19 = vsel %vm319_vm6, %v2909_v20, %v2911_v21  ;;  %v344_v5 = vmul.f32 %v340_v0, %v320_v18  ;;  %v351_v47 = vrot.slane %v331_v10, %v2973_v44  ;;  %v355_v2 = vrot.slane %v331_v10, %v2976_v45  ;;  %v3150_v10 = vld [vmem:[#allocation2 + $0x7] ss:$8 sm:$0x3] }
  0xd0   :  { %v2921_v24 = vpop.permute.xlu1 %364  ;;  %v2923_v25 = vpop.permute.xlu0 %362  ;;  %v313_v12 = vadd.f32 %v311_v60, %v298_v4  ;;  %v314_v15 = vadd.f32 %v312_v6, %v299_v9  ;;  %v343_v16 = vmul.f32 %v336_v11, %v321_v19  ;;  %v326_v20 = vsel %vm319_vm6, %v2917_v23, %v2915_v22  ;;  %v3135_v4 = vld [vmem:[#allocation2 + $0x67] ss:$8 sm:$0x3] }
  0xd1   :  { %v327_v21 = vsel %vm319_vm6, %v2915_v22, %v2917_v23  ;;  %v383_v0 = vrot.slane %v376_v48, %v2973_v44  ;;  %v387_v18 = vrot.slane %v376_v48, %v2976_v45  ;;  %v398_v19 = vrot.slane %v3118_v14, %v2973_v44 }
  0xd2   :  { %1029 = vrot.lane.b32.xlu1 %v2783_v58, %s2681_s20  ;;  %1027 = vrot.lane.b32.xlu0 %v2770_v54, %s2681_s20  ;;  %v345_v6 = vadd.f32 %v343_v16, %v313_v12  ;;  %v346_v11 = vadd.f32 %v344_v5, %v314_v15  ;;  %v402_v22 = vrot.slane %v3118_v14, %v2976_v45  ;;  %v3157_v5 = vld [vmem:[#allocation2 + $0x70] ss:$8 sm:$0x3]  ;;  %vm1024_vm6 = vcmp.lt.s32.totalorder %v2969_v42, 14  ;;  %s2709_s20 = smov 77  }
  0xd3   :  { %v430_v23 = vrot.slane %v3123_v59, %v2973_v44  ;;  %v358_v12 = vmul.f32 %v351_v47, %v327_v21  ;;  %v359_v15 = vmul.f32 %v355_v2, %v326_v20  ;;  %v434_v48 = vrot.slane %v3123_v59, %v2976_v45  ;;  %v3171_v2 = vld [vmem:[#allocation2 + $0x10] ss:$8 sm:$0x3] }
  0xd4   :  { %v2927_v26 = vpop.permute.xlu1 %371  ;;  %v2929_v27 = vpop.permute.xlu0 %369  ;;  %v445_v16 = vrot.slane %v3135_v4, %v2973_v44  ;;  %v367_v14 = vsel %vm366_vm7, %v2923_v25, %v2921_v24  ;;  %v368_v47 = vsel %vm366_vm7, %v2921_v24, %v2923_v25  ;;  %v449_v59 = vrot.slane %v3135_v4, %v2976_v45  ;;  %v3181_v24 = vld [vmem:[#allocation2 + $0x71] ss:$8 sm:$0x3] }
  0xd5   :  { %v360_v57 = vadd.f32 %v358_v12, %v345_v6  ;;  %v373_v25 = vsel %vm366_vm7, %v2929_v27, %v2927_v26  ;;  %v374_v4 = vsel %vm366_vm7, %v2927_v26, %v2929_v27  ;;  %v391_v12 = vmul.f32 %v387_v18, %v367_v14  ;;  %v3212_v14 = vld [vmem:[#allocation2 + $0x11] ss:$8 sm:$0x3] }
  0xd6   :  { %1069 = vrot.lane.b32.xlu1 %v2805_v3, %s2682_s26  ;;  %1067 = vrot.lane.b32.xlu0 %v2792_v62, %s2682_s26  ;;  %v543_v18 = vrot.slane %v3181_v24, %v2976_v45  ;;  %vm1071_vm7 = vcmp.lt.s32.totalorder %v2969_v42, 13 }
  0xd8   :  { %v2933_v28 = vpop.permute.xlu1 %411  ;;  %v2935_v29 = vpop.permute.xlu0 %409 }
  0xd9   :  { %v414_v26 = vsel %vm413_vm8, %v2935_v29, %v2933_v28  ;;  %v415_v27 = vsel %vm413_vm8, %v2933_v28, %v2935_v29 }
  0xda   :  { %1076 = vrot.lane.b32.xlu1 %v2783_v58, %s2682_s26  ;;  %1074 = vrot.lane.b32.xlu0 %v2770_v54, %s2682_s26  ;;  %s2711_s26 = smov [#allocation7]  }
  0xdc   :  { %v2939_v30 = vpop.permute.xlu1 %418  ;;  %v2941_v31 = vpop.permute.xlu0 %416 }
  0xdd   :  { %v420_v28 = vsel %vm413_vm8, %v2941_v31, %v2939_v30  ;;  %v421_v29 = vsel %vm413_vm8, %v2939_v30, %v2941_v31  ;;  %vm1118_vm8 = vcmp.lt.s32.totalorder %v2969_v42, 3 }
  0xde   :  { %1116 = vrot.lane.b32.xlu1 %v2805_v3, %s2683_s27  ;;  %1114 = vrot.lane.b32.xlu0 %v2792_v62, %s2683_s27 }
  0xe0   :  { %v2945_v32 = vpop.permute.xlu1 %458  ;;  %v2947_v33 = vpop.permute.xlu0 %456 }
  0xe1   :  { %v461_v30 = vsel %vm460_vm9, %v2947_v33, %v2945_v32  ;;  %v462_v31 = vsel %vm460_vm9, %v2945_v32, %v2947_v33 }
  0xe2   :  { %1123 = vrot.lane.b32.xlu1 %v2783_v58, %s2683_s27  ;;  %1121 = vrot.lane.b32.xlu0 %v2770_v54, %s2683_s27  ;;  %s2505_s27 = sshll.u32 %s2711_s26, 4  ;;  %s2506_s27 = int_to_ptr.vmem [resolvable:$true] %s2505_s27 }
  0xe3   :  { %p2634_p3 = scmp.lt.s32.totalorder %s2506_s27, %s2506_s27 }
  0xe4   :  { %v2951_v34 = vpop.permute.xlu1 %465  ;;  %v2953_v35 = vpop.permute.xlu0 %463 }
  0xe5   :  { %v467_v32 = vsel %vm460_vm9, %v2953_v35, %v2951_v34  ;;  %v468_v33 = vsel %vm460_vm9, %v2951_v34, %v2953_v35  ;;  %vm1165_vm9 = vcmp.lt.s32.totalorder %v2969_v42, 2 }
  0xe6   :  { %1163 = vrot.lane.b32.xlu1 %v2805_v3, %s2684_s28  ;;  %1161 = vrot.lane.b32.xlu0 %v2792_v62, %s2684_s28 }
  0xe8   :  { %v2957_v37 = vpop.permute.xlu1 %505  ;;  %v2959_v38 = vpop.permute.xlu0 %503 }
  0xe9   :  { %v508_v34 = vsel %vm507_vm10, %v2959_v38, %v2957_v37  ;;  %v509_v35 = vsel %vm507_vm10, %v2957_v37, %v2959_v38  ;;  %v3297_v38 = vld [vmem:[#allocation2 + $0x74] ss:$8 sm:$0x3] }
  0xea   :  { %1170 = vrot.lane.b32.xlu1 %v2783_v58, %s2684_s28  ;;  %1168 = vrot.lane.b32.xlu0 %v2770_v54, %s2684_s28  ;;  %s2629_s28 = scalar_lea.vmem %s2506_s27, 256 }
  0xeb   :  { %p2630_p2 = scmp.ne.s32.totalorder %s2506_s27, %s2629_s28  ;;  %p2635_p4 = scmp.lt.s32.totalorder %s2629_s28, %s2629_s28 }
  0xec   :  { %v2965_v40 = vpop.permute.xlu1 %512  ;;  %v2967_v41 = vpop.permute.xlu0 %510 }
  0xed   :  { %p2636_p5 = por %p2635_p4, %p2634_p3 }
  0xee   :  { %1210 = vrot.lane.b32.xlu1 %v2805_v3, %s2685_s29  ;;  %1208 = vrot.lane.b32.xlu0 %v2792_v62, %s2685_s29 }
  0xef   :  { %p2637_p6 = pnand %p2636_p5, %p2630_p2 }
  0xf0   :  { %v2979_v49 = vpop.permute.xlu1 %552  ;;  %v2981_v50 = vpop.permute.xlu0 %550 }
  0xf2   :  { %1217 = vrot.lane.b32.xlu1 %v2783_v58, %s2685_s29  ;;  %1215 = vrot.lane.b32.xlu0 %v2770_v54, %s2685_s29 }
  0xf4   :  { %v2998_v39 = vpop.permute.xlu1 %559  ;;  %v3000_v55 = vpop.permute.xlu0 %557 }
  0xf6   :  { %1315 = vrot.lane.b32.xlu1 %v2805_v3, %s2686_s30  ;;  %1313 = vrot.lane.b32.xlu0 %v2792_v62, %s2686_s30 }
  0xf8   :  { %v3015_v52 = vpop.permute.xlu1 %599  ;;  %v3017_v53 = vpop.permute.xlu0 %597 }
  0xfa   :  { %1322 = vrot.lane.b32.xlu1 %v2783_v58, %s2686_s30  ;;  %1320 = vrot.lane.b32.xlu0 %v2770_v54, %s2686_s30 }
  0xfc   :  { %v3031_v8 = vpop.permute.xlu1 %606  ;;  %v3033_v17 = vpop.permute.xlu0 %604 }
  0xfe   :  { %1362 = vrot.lane.b32.xlu1 %v2805_v3, %s2687_s3  ;;  %1360 = vrot.lane.b32.xlu0 %v2792_v62, %s2687_s3 }
 0x100   :  { %v3048_v61 = vpop.permute.xlu1 %646  ;;  %v3050_v63 = vpop.permute.xlu0 %644 }
 0x102   :  { %1369 = vrot.lane.b32.xlu1 %v2783_v58, %s2687_s3  ;;  %1367 = vrot.lane.b32.xlu0 %v2770_v54, %s2687_s3 }
 0x104   :  { %v3064_v1 = vpop.permute.xlu1 %653  ;;  %v3066_v56 = vpop.permute.xlu0 %651 }
 0x106   :  { %1409 = vrot.lane.b32.xlu1 %v2805_v3, %s2688_s4  ;;  %1407 = vrot.lane.b32.xlu0 %v2792_v62, %s2688_s4 }
 0x108   :  { %v3081_v36 = vpop.permute.xlu1 %693  ;;  %v3083_v43 = vpop.permute.xlu0 %691 }
 0x10a   :  { %1416 = vrot.lane.b32.xlu1 %v2783_v58, %s2688_s4  ;;  %1414 = vrot.lane.b32.xlu0 %v2770_v54, %s2688_s4 }
 0x10c   :  { %v3097_v7 = vpop.permute.xlu1 %700  ;;  %v3099_v51 = vpop.permute.xlu0 %698 }
 0x10e   :  { %1456 = vrot.lane.b32.xlu1 %v2805_v3, %s2689_s6  ;;  %1454 = vrot.lane.b32.xlu0 %v2792_v62, %s2689_s6 }
 0x110   :  { %v3114_v46 = vpop.permute.xlu1 %740  ;;  %v3116_v13 = vpop.permute.xlu0 %738 }
 0x111   :  { %4631 = vst [vmem:[#allocation20_spill] sm:$0xff] %v3114_v46  ;;  %4632 = vst [vmem:[#allocation21_spill] sm:$0xff] %v3116_v13  ;;  %v481_v13 = vrot.slane %v3150_v10, %v2976_v45  ;;  %v3218_v46 = vld [vmem:[#allocation2 + $0x72] ss:$8 sm:$0x3] }
 0x112   :  { %1463 = vrot.lane.b32.xlu1 %v2783_v58, %s2689_s6  ;;  %1461 = vrot.lane.b32.xlu0 %v2770_v54, %s2689_s6 }
 0x114   :  { %v3137_v9 = vpop.permute.xlu1 %747  ;;  %v3139_v60 = vpop.permute.xlu0 %745 }
 0x115   :  { %4633 = vst [vmem:[#allocation22_spill] sm:$0xff] %v3137_v9  ;;  %4634 = vst [vmem:[#allocation23_spill] sm:$0xff] %v3139_v60  ;;  %v361_v60 = vadd.f32 %v359_v15, %v346_v11  ;;  %v477_v9 = vrot.slane %v3150_v10, %v2973_v44  ;;  %v390_v10 = vmul.f32 %v383_v0, %v368_v47 }
 0x116   :  { %1503 = vrot.lane.b32.xlu1 %v2805_v3, %s2690_s7  ;;  %1501 = vrot.lane.b32.xlu0 %v2792_v62, %s2690_s7  ;;  %v528_v0 = vrot.slane %v3171_v2, %v2976_v45 }
 0x117   :  { %v392_v11 = vadd.f32 %v390_v10, %v360_v57  ;;  %v393_v6 = vadd.f32 %v391_v12, %v361_v60  ;;  %v437_v57 = vmul.f32 %v430_v23, %v415_v27  ;;  %v438_v60 = vmul.f32 %v434_v48, %v414_v26 }
 0x118   :  { %v3173_v20 = vpop.permute.xlu1 %787  ;;  %v3175_v21 = vpop.permute.xlu0 %785  ;;  %v586_v23 = vrot.slane %v3218_v46, %v2973_v44  ;;  %v590_v48 = vrot.slane %v3218_v46, %v2976_v45  ;;  %v452_v27 = vmul.f32 %v445_v16, %v421_v29 }
 0x119   :  { %4635 = vst [vmem:[#allocation24_spill] sm:$0xff] %v3173_v20  ;;  %4636 = vst [vmem:[#allocation25_spill] sm:$0xff] %v3175_v21  ;;  %v405_v21 = vmul.f32 %v398_v19, %v374_v4  ;;  %v406_v20 = vmul.f32 %v402_v22, %v373_v25  ;;  %v3236_v25 = vld [vmem:[#allocation2 + $0x12] ss:$8 sm:$0x3]  ;;  %v453_v22 = vmul.f32 %v449_v59, %v420_v28 }
 0x11a   :  { %1510 = vrot.lane.b32.xlu1 %v2783_v58, %s2690_s7  ;;  %1508 = vrot.lane.b32.xlu0 %v2770_v54, %s2690_s7  ;;  %v3256_v19 = vld [vmem:[#allocation2 + $0x73] ss:$8 sm:$0x3]  ;;  %v622_v16 = vrot.slane %v3236_v25, %v2976_v45 }
 0x11b   :  { %v407_v12 = vadd.f32 %v405_v21, %v392_v11  ;;  %v408_v26 = vadd.f32 %v406_v20, %v393_v6  ;;  %v618_v21 = vrot.slane %v3236_v25, %v2973_v44  ;;  %v484_v6 = vmul.f32 %v477_v9, %v462_v31  ;;  %v3271_v28 = vld [vmem:[#allocation2 + $0x13] ss:$8 sm:$0x3] }
 0x11c   :  { %v3214_v47 = vpop.permute.xlu1 %794  ;;  %v3216_v15 = vpop.permute.xlu0 %792  ;;  %v485_v11 = vmul.f32 %v481_v13, %v461_v30  ;;  %v633_v29 = vrot.slane %v3256_v19, %v2973_v44  ;;  %v4637_v31 = vrot.slane %v3157_v5, %v2973_v44  ;;  %v514_v13 = vsel %vm507_vm10, %v2967_v41, %v2965_v40 }
 0x11d   :  { %v439_v59 = vadd.f32 %v437_v57, %v407_v12  ;;  %v440_v20 = vadd.f32 %v438_v60, %v408_v26  ;;  %v4638_v26 = vrot.slane %v3157_v5, %v2976_v45  ;;  %v669_v5 = vrot.slane %v3271_v28, %v2976_v45 }
 0x11e   :  { %1550 = vrot.lane.b32.xlu1 %v2805_v3, %s2691_s1  ;;  %1548 = vrot.lane.b32.xlu0 %v2792_v62, %s2691_s1  ;;  %v499_v12 = vmul.f32 %v4637_v31, %v468_v33  ;;  %v532_v31 = vmul.f32 %v528_v0, %v508_v34 }
 0x11f   :  { %v454_v60 = vadd.f32 %v452_v27, %v439_v59  ;;  %v455_v30 = vadd.f32 %v453_v22, %v440_v20  ;;  %v500_v37 = vmul.f32 %v4638_v26, %v467_v32  ;;  %v515_v22 = vsel %vm507_vm10, %v2965_v40, %v2967_v41  ;;  %v3318_v40 = vld [vmem:[#allocation2 + $0x14] ss:$8 sm:$0x3] }
 0x120   :  { %v3251_v4 = vpop.permute.xlu1 %834  ;;  %v3253_v10 = vpop.permute.xlu0 %832  ;;  %v665_v27 = vrot.slane %v3271_v28, %v2973_v44  ;;  %v4639_v59 = vrot.slane %v3171_v2, %v2973_v44  ;;  %v555_v41 = vsel %vm554_vm11, %v2981_v50, %v2979_v49  ;;  %v3365_v2 = vld [vmem:[#allocation2 + $0x15] ss:$8 sm:$0x3]  ;;  %vm1212_vm10 = vcmp.lt.s32.totalorder %v2969_v42, 1 }
 0x121   :  { %v486_v32 = vadd.f32 %v484_v6, %v454_v60  ;;  %v487_v33 = vadd.f32 %v485_v11, %v455_v30  ;;  %v556_v6 = vsel %vm554_vm11, %v2979_v49, %v2981_v50  ;;  %v680_v11 = vrot.slane %v3297_v38, %v2973_v44  ;;  %v3344_v50 = vld [vmem:[#allocation2 + $0x75] ss:$8 sm:$0x3] }
 0x122   :  { %1557 = vrot.lane.b32.xlu1 %v2783_v58, %s2691_s1  ;;  %1555 = vrot.lane.b32.xlu0 %v2770_v54, %s2691_s1  ;;  %v531_v20 = vmul.f32 %v4639_v59, %v509_v35  ;;  %v4640_v30 = vrot.slane %v3181_v24, %v2973_v44  ;;  %v547_v49 = vmul.f32 %v543_v18, %v514_v13 }
 0x123   :  { %v501_v35 = vadd.f32 %v499_v12, %v486_v32  ;;  %v502_v60 = vadd.f32 %v500_v37, %v487_v33  ;;  %v561_v59 = vsel %vm554_vm11, %v3000_v55, %v2998_v39  ;;  %v562_v12 = vsel %vm554_vm11, %v2998_v39, %v3000_v55 }
 0x124   :  { %v3286_v9 = vpop.permute.xlu1 %841  ;;  %v3288_v57 = vpop.permute.xlu0 %839  ;;  %v546_v26 = vmul.f32 %v4640_v30, %v515_v22  ;;  %v712_v37 = vrot.slane %v3318_v40, %v2973_v44  ;;  %v716_v24 = vrot.slane %v3318_v40, %v2976_v45  ;;  %v4641_v22 = vrot.slane %v3212_v14, %v2973_v44 }
 0x125   :  { %v533_v18 = vadd.f32 %v531_v20, %v501_v35  ;;  %v534_v13 = vadd.f32 %v532_v31, %v502_v60  ;;  %v4642_v33 = vrot.slane %v3212_v14, %v2976_v45  ;;  %v602_v55 = vsel %vm601_vm12, %v3017_v53, %v3015_v52 }
 0x126   :  { %1597 = vrot.lane.b32.xlu1 %v2805_v3, %s2692_s8  ;;  %1595 = vrot.lane.b32.xlu0 %v2792_v62, %s2692_s8  ;;  %v578_v32 = vmul.f32 %v4641_v22, %v556_v6  ;;  %v603_v39 = vsel %vm601_vm12, %v3015_v52, %v3017_v53  ;;  %v727_v20 = vrot.slane %v3344_v50, %v2973_v44  ;;  %v3391_v53 = vld [vmem:[#allocation2 + $0x76] ss:$8 sm:$0x3]  ;;  %vm1317_vm11 = vcmp.lt.s32.totalorder %v2969_v42, 127 }
 0x127   :  { %v579_v30 = vmul.f32 %v4642_v33, %v555_v41  ;;  %v731_v14 = vrot.slane %v3344_v50, %v2976_v45  ;;  %v548_v6 = vadd.f32 %v546_v26, %v533_v18  ;;  %v549_v35 = vadd.f32 %v547_v49, %v534_v13 }
 0x128   :  { %v3333_v0 = vpop.permute.xlu1 %881  ;;  %v3335_v34 = vpop.permute.xlu0 %879  ;;  %v593_v60 = vmul.f32 %v586_v23, %v562_v12  ;;  %v594_v52 = vmul.f32 %v590_v48, %v561_v59  ;;  %v608_v22 = vsel %vm601_vm12, %v3033_v17, %v3031_v8  ;;  %v609_v26 = vsel %vm601_vm12, %v3031_v8, %v3033_v17  ;;  %v3412_v8 = vld [vmem:[#allocation2 + $0x16] ss:$8 sm:$0x3] }
 0x129   :  { %v759_v23 = vrot.slane %v3365_v2, %v2973_v44  ;;  %v763_v46 = vrot.slane %v3365_v2, %v2976_v45  ;;  %v580_v48 = vadd.f32 %v578_v32, %v548_v6  ;;  %v581_v49 = vadd.f32 %v579_v30, %v549_v35 }
 0x12a   :  { %1604 = vrot.lane.b32.xlu1 %v2783_v58, %s2692_s8  ;;  %1602 = vrot.lane.b32.xlu0 %v2770_v54, %s2692_s8  ;;  %v625_v59 = vmul.f32 %v618_v21, %v603_v39  ;;  %v626_v12 = vmul.f32 %v622_v16, %v602_v55  ;;  %v649_v17 = vsel %vm648_vm13, %v3050_v63, %v3048_v61  ;;  %vm1411_vm12 = vcmp.lt.s32.totalorder %v2969_v42, 125 }
 0x12b   :  { %v650_v18 = vsel %vm648_vm13, %v3048_v61, %v3050_v63  ;;  %v774_v21 = vrot.slane %v3391_v53, %v2973_v44  ;;  %v778_v25 = vrot.slane %v3391_v53, %v2976_v45  ;;  %v595_v32 = vadd.f32 %v593_v60, %v580_v48  ;;  %v3438_v63 = vld [vmem:[#allocation2 + $0x77] ss:$8 sm:$0x3] }
 0x12c   :  { %v3380_v31 = vpop.permute.xlu1 %888  ;;  %v3382_v41 = vpop.permute.xlu0 %886  ;;  %v596_v33 = vadd.f32 %v594_v52, %v581_v49  ;;  %v640_v30 = vmul.f32 %v633_v29, %v609_v26  ;;  %v4643_v55 = vrot.slane %v3256_v19, %v2976_v45  ;;  %v655_v39 = vsel %vm648_vm13, %v3066_v56, %v3064_v1  ;;  %v3459_v26 = vld [vmem:[#allocation2 + $0x17] ss:$8 sm:$0x3] }
 0x12d   :  { %v656_v6 = vsel %vm648_vm13, %v3064_v1, %v3066_v56  ;;  %v806_v29 = vrot.slane %v3412_v8, %v2973_v44  ;;  %v810_v19 = vrot.slane %v3412_v8, %v2976_v45  ;;  %v627_v35 = vadd.f32 %v625_v59, %v595_v32 }
 0x12e   :  { %1644 = vrot.lane.b32.xlu1 %v2805_v3, %s2693_s9  ;;  %1642 = vrot.lane.b32.xlu0 %v2792_v62, %s2693_s9  ;;  %v641_v61 = vmul.f32 %v4643_v55, %v608_v22  ;;  %v628_v60 = vadd.f32 %v626_v12, %v596_v33  ;;  %v672_v52 = vmul.f32 %v665_v27, %v650_v18  ;;  %vm1458_vm13 = vcmp.lt.s32.totalorder %v2969_v42, 115 }
 0x12f   :  { %v673_v22 = vmul.f32 %v669_v5, %v649_v17  ;;  %v696_v1 = vsel %vm695_vm14, %v3083_v43, %v3081_v36  ;;  %v697_v56 = vsel %vm695_vm14, %v3081_v36, %v3083_v43  ;;  %v821_v27 = vrot.slane %v3438_v63, %v2973_v44  ;;  %v3483_v36 = vld [vmem:[#allocation2 + $0x80] ss:$8 sm:$0x3] }
 0x130   :  { %v3427_v16 = vpop.permute.xlu1 %928  ;;  %v3429_v13 = vpop.permute.xlu0 %926  ;;  %v825_v28 = vrot.slane %v3438_v63, %v2976_v45  ;;  %v642_v48 = vadd.f32 %v640_v30, %v627_v35  ;;  %v643_v49 = vadd.f32 %v641_v61, %v628_v60  ;;  %v687_v59 = vmul.f32 %v680_v11, %v656_v6 }
 0x131   :  { %v4644_v12 = vrot.slane %v3297_v38, %v2976_v45  ;;  %v702_v18 = vsel %vm695_vm14, %v3099_v51, %v3097_v7  ;;  %v703_v11 = vsel %vm695_vm14, %v3097_v7, %v3099_v51  ;;  %v853_v38 = vrot.slane %v3459_v26, %v2973_v44  ;;  %v3506_v7 = vld [vmem:[#allocation2 + $0x20] ss:$8 sm:$0x3]  ;;  %v4645_v51 = vld [vmem:[#allocation20_spill] sm:$0xff] }
 0x132   :  { %1651 = vrot.lane.b32.xlu1 %v2783_v58, %s2693_s9  ;;  %1649 = vrot.lane.b32.xlu0 %v2770_v54, %s2693_s9  ;;  %v857_v32 = vrot.slane %v3459_v26, %v2976_v45  ;;  %v674_v33 = vadd.f32 %v672_v52, %v642_v48  ;;  %v675_v30 = vadd.f32 %v673_v22, %v643_v49  ;;  %v4647_v49 = vld [vmem:[#allocation22_spill] sm:$0xff]  ;;  %vm1505_vm14 = vcmp.lt.s32.totalorder %v2969_v42, 114 }
 0x133   :  { %v688_v17 = vmul.f32 %v4644_v12, %v655_v39  ;;  %v719_v55 = vmul.f32 %v712_v37, %v697_v56  ;;  %v720_v61 = vmul.f32 %v716_v24, %v696_v1  ;;  %v4646_v39 = vld [vmem:[#allocation21_spill] sm:$0xff]  ;;  %v868_v37 = vrot.slane %v3483_v36, %v2973_v44  ;;  %v4648_v12 = vld [vmem:[#allocation23_spill] sm:$0xff] }
 0x134   :  { %v3474_v5 = vpop.permute.xlu1 %935  ;;  %v3485_v43 = vpop.permute.xlu0 %933  ;;  %v743_v6 = vsel %vm742_vm15, %v4646_v39, %v4645_v51  ;;  %v744_v35 = vsel %vm742_vm15, %v4645_v51, %v4646_v39  ;;  %v872_v40 = vrot.slane %v3483_v36, %v2976_v45  ;;  %v689_v60 = vadd.f32 %v687_v59, %v674_v33  ;;  %v3530_v56 = vld [vmem:[#allocation2 + $0x81] ss:$8 sm:$0x3]  ;;  %v4649_v51 = vld [vmem:[#allocation24_spill] sm:$0xff] }
 0x135   :  { %v690_v52 = vadd.f32 %v688_v17, %v675_v30  ;;  %v734_v22 = vmul.f32 %v727_v20, %v703_v11  ;;  %v735_v1 = vmul.f32 %v731_v14, %v702_v18  ;;  %v749_v59 = vsel %vm742_vm15, %v4648_v12, %v4647_v49  ;;  %v3553_v30 = vld [vmem:[#allocation2 + $0x21] ss:$8 sm:$0x3] }
 0x136   :  { %1691 = vrot.lane.b32.xlu1 %v2805_v3, %s2694_s10  ;;  %1689 = vrot.lane.b32.xlu0 %v2792_v62, %s2694_s10  ;;  %v750_v20 = vsel %vm742_vm15, %v4647_v49, %v4648_v12  ;;  %v900_v50 = vrot.slane %v3506_v7, %v2973_v44  ;;  %v904_v14 = vrot.slane %v3506_v7, %v2976_v45  ;;  %v4650_v39 = vld [vmem:[#allocation25_spill] sm:$0xff]  ;;  %vm1552_vm15 = vcmp.lt.s32.totalorder %v2969_v42, 113 }
 0x137   :  { %v721_v17 = vadd.f32 %v719_v55, %v689_v60  ;;  %v722_v18 = vadd.f32 %v720_v61, %v690_v52  ;;  %v766_v11 = vmul.f32 %v759_v23, %v744_v35  ;;  %v767_v33 = vmul.f32 %v763_v46, %v743_v6  ;;  %v3577_v52 = vld [vmem:[#allocation2 + $0x82] ss:$8 sm:$0x3] }
 0x138   :  { %v3521_v24 = vpop.permute.xlu1 %975  ;;  %v3532_v48 = vpop.permute.xlu0 %973  ;;  %v790_v49 = vsel %vm789_vm0, %v4650_v39, %v4649_v51  ;;  %v791_v55 = vsel %vm789_vm0, %v4649_v51, %v4650_v39  ;;  %v915_v23 = vrot.slane %v3530_v56, %v2973_v44  ;;  %v919_v2 = vrot.slane %v3530_v56, %v2976_v45 }
 0x139   :  { %v736_v61 = vadd.f32 %v734_v22, %v721_v17  ;;  %v737_v6 = vadd.f32 %v735_v1, %v722_v18  ;;  %v781_v35 = vmul.f32 %v774_v21, %v750_v20  ;;  %v782_v60 = vmul.f32 %v778_v25, %v749_v59 }
 0x13a   :  { %1698 = vrot.lane.b32.xlu1 %v2783_v58, %s2694_s10  ;;  %1696 = vrot.lane.b32.xlu0 %v2770_v54, %s2694_s10  ;;  %v796_v22 = vsel %vm789_vm0, %v3216_v15, %v3214_v47  ;;  %v797_v21 = vsel %vm789_vm0, %v3214_v47, %v3216_v15  ;;  %v947_v53 = vrot.slane %v3553_v30, %v2973_v44  ;;  %v3600_v15 = vld [vmem:[#allocation2 + $0x22] ss:$8 sm:$0x3]  ;;  %vm1599_vm0 = vcmp.lt.s32.totalorder %v2969_v42, 112 }
 0x13b   :  { %v951_v25 = vrot.slane %v3553_v30, %v2976_v45  ;;  %v768_v1 = vadd.f32 %v766_v11, %v736_v61  ;;  %v769_v59 = vadd.f32 %v767_v33, %v737_v6  ;;  %v813_v20 = vmul.f32 %v806_v29, %v791_v55 }
 0x13c   :  { %v3568_v46 = vpop.permute.xlu1 %982  ;;  %v3579_v12 = vpop.permute.xlu0 %980  ;;  %v814_v17 = vmul.f32 %v810_v19, %v790_v49  ;;  %v837_v47 = vsel %vm836_vm2, %v3253_v10, %v3251_v4  ;;  %v838_v18 = vsel %vm836_vm2, %v3251_v4, %v3253_v10  ;;  %v962_v29 = vrot.slane %v3577_v52, %v2973_v44  ;;  %v3624_v4 = vld [vmem:[#allocation2 + $0x83] ss:$8 sm:$0x3] }
 0x13d   :  { %v966_v8 = vrot.slane %v3577_v52, %v2976_v45  ;;  %v783_v11 = vadd.f32 %v781_v35, %v768_v1  ;;  %v784_v33 = vadd.f32 %v782_v60, %v769_v59  ;;  %v828_v51 = vmul.f32 %v821_v27, %v797_v21  ;;  %v3647_v60 = vld [vmem:[#allocation2 + $0x23] ss:$8 sm:$0x3] }
 0x13e   :  { %1738 = vrot.lane.b32.xlu1 %v2805_v3, %s2695_s11  ;;  %1736 = vrot.lane.b32.xlu0 %v2792_v62, %s2695_s11  ;;  %v829_v39 = vmul.f32 %v825_v28, %v796_v22  ;;  %v843_v49 = vsel %vm836_vm2, %v3288_v57, %v3286_v9  ;;  %v844_v27 = vsel %vm836_vm2, %v3286_v9, %v3288_v57  ;;  %vm1646_vm2 = vcmp.lt.s32.totalorder %v2969_v42, 111 }
 0x13f   :  { %v994_v63 = vrot.slane %v3600_v15, %v2973_v44  ;;  %v998_v28 = vrot.slane %v3600_v15, %v2976_v45  ;;  %v815_v55 = vadd.f32 %v813_v20, %v783_v11  ;;  %v816_v61 = vadd.f32 %v814_v17, %v784_v33 }
 0x140   :  { %v3615_v19 = vpop.permute.xlu1 %1022  ;;  %v3626_v10 = vpop.permute.xlu0 %1020  ;;  %v860_v6 = vmul.f32 %v853_v38, %v838_v18  ;;  %v861_v35 = vmul.f32 %v857_v32, %v837_v47  ;;  %v884_v9 = vsel %vm883_vm3, %v3335_v34, %v3333_v0  ;;  %v885_v57 = vsel %vm883_vm3, %v3333_v0, %v3335_v34  ;;  %v3671_v0 = vld [vmem:[#allocation2 + $0x84] ss:$8 sm:$0x3] }
 0x141   :  { %v1009_v38 = vrot.slane %v3624_v4, %v2973_v44  ;;  %v1013_v26 = vrot.slane %v3624_v4, %v2976_v45  ;;  %v830_v22 = vadd.f32 %v828_v51, %v815_v55  ;;  %v831_v21 = vadd.f32 %v829_v39, %v816_v61 }
 0x142   :  { %1745 = vrot.lane.b32.xlu1 %v2783_v58, %s2695_s11  ;;  %1743 = vrot.lane.b32.xlu0 %v2770_v54, %s2695_s11  ;;  %v875_v1 = vmul.f32 %v868_v37, %v844_v27  ;;  %v876_v59 = vmul.f32 %v872_v40, %v843_v49  ;;  %v890_v20 = vsel %vm883_vm3, %v3382_v41, %v3380_v31 }
 0x143   :  { %v891_v37 = vsel %vm883_vm3, %v3380_v31, %v3382_v41  ;;  %v1041_v36 = vrot.slane %v3647_v60, %v2973_v44  ;;  %v1045_v40 = vrot.slane %v3647_v60, %v2976_v45  ;;  %v862_v17 = vadd.f32 %v860_v6, %v830_v22  ;;  %v3695_v31 = vld [vmem:[#allocation2 + $0x24] ss:$8 sm:$0x3] }
 0x144   :  { %v3662_v32 = vpop.permute.xlu1 %1029  ;;  %v3673_v34 = vpop.permute.xlu0 %1027  ;;  %v863_v47 = vadd.f32 %v861_v35, %v831_v21  ;;  %v907_v18 = vmul.f32 %v900_v50, %v885_v57  ;;  %v908_v11 = vmul.f32 %v904_v14, %v884_v9  ;;  %v931_v41 = vsel %vm930_vm4, %v3429_v13, %v3427_v16 }
 0x145   :  { %v932_v33 = vsel %vm930_vm4, %v3427_v16, %v3429_v13  ;;  %v1056_v50 = vrot.slane %v3671_v0, %v2973_v44  ;;  %v1060_v7 = vrot.slane %v3671_v0, %v2976_v45  ;;  %v877_v51 = vadd.f32 %v875_v1, %v862_v17  ;;  %v3718_v13 = vld [vmem:[#allocation2 + $0x85] ss:$8 sm:$0x3] }
 0x146   :  { %1785 = vrot.lane.b32.xlu1 %v2805_v3, %s2696_s12  ;;  %1783 = vrot.lane.b32.xlu0 %v2792_v62, %s2696_s12  ;;  %v878_v39 = vadd.f32 %v876_v59, %v863_v47  ;;  %v922_v49 = vmul.f32 %v915_v23, %v891_v37  ;;  %v923_v27 = vmul.f32 %v919_v2, %v890_v20  ;;  %v3760_v37 = vld [vmem:[#allocation2 + $0x86] ss:$8 sm:$0x3]  ;;  %vm1693_vm3 = vcmp.lt.s32.totalorder %v2969_v42, 110 }
 0x147   :  { %v937_v55 = vsel %vm930_vm4, %v3485_v43, %v3474_v5  ;;  %v938_v61 = vsel %vm930_vm4, %v3474_v5, %v3485_v43  ;;  %v1088_v23 = vrot.slane %v3695_v31, %v2973_v44  ;;  %v1092_v56 = vrot.slane %v3695_v31, %v2976_v45  ;;  %v3740_v5 = vld [vmem:[#allocation2 + $0x25] ss:$8 sm:$0x3] }
 0x148   :  { %v3709_v14 = vpop.permute.xlu1 %1069  ;;  %v1068_v16 = vpop.permute.xlu0 %1067  ;;  %v909_v2 = vadd.f32 %v907_v18, %v877_v51  ;;  %v910_v6 = vadd.f32 %v908_v11, %v878_v39  ;;  %v954_v35 = vmul.f32 %v947_v53, %v932_v33  ;;  %v955_v9 = vmul.f32 %v951_v25, %v931_v41  ;;  %v3799_v39 = vld [vmem:[#allocation2 + $0x26] ss:$8 sm:$0x3] }
 0x149   :  { %v978_v43 = vsel %vm977_vm5, %v3532_v48, %v3521_v24  ;;  %v979_v57 = vsel %vm977_vm5, %v3521_v24, %v3532_v48  ;;  %v1103_v53 = vrot.slane %v3718_v13, %v2973_v44  ;;  %v1107_v30 = vrot.slane %v3718_v13, %v2976_v45 }
 0x14a   :  { %1792 = vrot.lane.b32.xlu1 %v2783_v58, %s2696_s12  ;;  %1790 = vrot.lane.b32.xlu0 %v2770_v54, %s2696_s12  ;;  %v924_v25 = vadd.f32 %v922_v49, %v909_v2  ;;  %v925_v21 = vadd.f32 %v923_v27, %v910_v6  ;;  %v969_v1 = vmul.f32 %v962_v29, %v938_v61  ;;  %vm1740_vm4 = vcmp.lt.s32.totalorder %v2969_v42, 109 }
 0x14b   :  { %v970_v59 = vmul.f32 %v966_v8, %v937_v55  ;;  %v984_v24 = vsel %vm977_vm5, %v3579_v12, %v3568_v46  ;;  %v985_v48 = vsel %vm977_vm5, %v3568_v46, %v3579_v12  ;;  %v1135_v52 = vrot.slane %v3740_v5, %v2973_v44 }
 0x14c   :  { %v1077_v22 = vpop.permute.xlu1 %1076  ;;  %v1075_v20 = vpop.permute.xlu0 %1074  ;;  %v956_v29 = vadd.f32 %v954_v35, %v924_v25  ;;  %v957_v8 = vadd.f32 %v955_v9, %v925_v21  ;;  %v1001_v17 = vmul.f32 %v994_v63, %v979_v57  ;;  %v1002_v47 = vmul.f32 %v998_v28, %v978_v43  ;;  %v3838_v43 = vld [vmem:[#allocation2 + $0x27] ss:$8 sm:$0x3] }
 0x14d   :  { %v1025_v46 = vsel %vm1024_vm6, %v3626_v10, %v3615_v19  ;;  %v1026_v12 = vsel %vm1024_vm6, %v3615_v19, %v3626_v10  ;;  %v1139_v63 = vrot.slane %v3740_v5, %v2976_v45  ;;  %v1150_v15 = vrot.slane %v3760_v37, %v2973_v44 }
 0x14e   :  { %1832 = vrot.lane.b32.xlu1 %v2805_v3, %s2697_s13  ;;  %1830 = vrot.lane.b32.xlu0 %v2792_v62, %s2697_s13  ;;  %v971_v28 = vadd.f32 %v969_v1, %v956_v29  ;;  %v972_v11 = vadd.f32 %v970_v59, %v957_v8  ;;  %v1016_v41 = vmul.f32 %v1009_v38, %v985_v48  ;;  %v3869_v8 = vld [vmem:[#allocation2 + $0x90] ss:$8 sm:$0x3]  ;;  %vm1787_vm5 = vcmp.lt.s32.totalorder %v2969_v42, 99 }
 0x14f   :  { %v1017_v33 = vmul.f32 %v1013_v26, %v984_v24  ;;  %v1031_v19 = vsel %vm1024_vm6, %v3673_v34, %v3662_v32  ;;  %v1032_v10 = vsel %vm1024_vm6, %v3662_v32, %v3673_v34  ;;  %v1154_v38 = vrot.slane %v3760_v37, %v2976_v45  ;;  %v3820_v32 = vld [vmem:[#allocation2 + $0x87] ss:$8 sm:$0x3] }
 0x150   :  { %v1117_v18 = vpop.permute.xlu1 %1116  ;;  %v1115_v51 = vpop.permute.xlu0 %1114  ;;  %v1003_v4 = vadd.f32 %v1001_v17, %v971_v28  ;;  %v1004_v26 = vadd.f32 %v1002_v47, %v972_v11  ;;  %v1048_v49 = vmul.f32 %v1041_v36, %v1026_v12  ;;  %v1049_v27 = vmul.f32 %v1045_v40, %v1025_v46  ;;  %v1258_v28 = vld [vmem:[#allocation2 + $0x91] ss:$8 sm:$0x3] }
 0x151   :  { %v1072_v34 = vsel %vm1071_vm7, %v1068_v16, %v3709_v14  ;;  %v1073_v55 = vsel %vm1071_vm7, %v3709_v14, %v1068_v16  ;;  %v1182_v36 = vrot.slane %v3799_v39, %v2973_v44  ;;  %v1186_v60 = vrot.slane %v3799_v39, %v2976_v45 }
 0x152   :  { %1839 = vrot.lane.b32.xlu1 %v2783_v58, %s2697_s13  ;;  %1837 = vrot.lane.b32.xlu0 %v2770_v54, %s2697_s13  ;;  %v1018_v40 = vadd.f32 %v1016_v41, %v1003_v4  ;;  %v1019_v2 = vadd.f32 %v1017_v33, %v1004_v26  ;;  %v1063_v6 = vmul.f32 %v1056_v50, %v1032_v10  ;;  %vm1834_vm6 = vcmp.lt.s32.totalorder %v2969_v42, 98 }
 0x153   :  { %v1064_v35 = vmul.f32 %v1060_v7, %v1031_v19  ;;  %v1078_v14 = vsel %vm1071_vm7, %v1075_v20, %v1077_v22  ;;  %v1079_v16 = vsel %vm1071_vm7, %v1077_v22, %v1075_v20  ;;  %v1197_v57 = vrot.slane %v3820_v32, %v2973_v44  ;;  %v1256_v22 = vld [vmem:[#allocation2 + $0x30] ss:$8 sm:$0x3] }
 0x154   :  { %v1124_v61 = vpop.permute.xlu1 %1123  ;;  %v1122_v9 = vpop.permute.xlu0 %1121  ;;  %v1201_v50 = vrot.slane %v3820_v32, %v2976_v45  ;;  %v1050_v0 = vadd.f32 %v1048_v49, %v1018_v40  ;;  %v1051_v7 = vadd.f32 %v1049_v27, %v1019_v2  ;;  %v1095_v25 = vmul.f32 %v1088_v23, %v1073_v55  ;;  %v4652_v2 = vld [vmem:[#allocation16_spill] sm:$0xff] }
 0x155   :  { %v1096_v21 = vmul.f32 %v1092_v56, %v1072_v34  ;;  %v1119_v1 = vsel %vm1118_vm8, %v1115_v51, %v1117_v18  ;;  %v1120_v59 = vsel %vm1118_vm8, %v1117_v18, %v1115_v51  ;;  %v1229_v24 = vrot.slane %v3838_v43, %v2973_v44 }
 0x156   :  { %1879 = vrot.lane.b32.xlu1 %v2805_v3, %s2698_s14  ;;  %1877 = vrot.lane.b32.xlu0 %v2792_v62, %s2698_s14  ;;  %v1065_v23 = vadd.f32 %v1063_v6, %v1050_v0  ;;  %v1066_v48 = vadd.f32 %v1064_v35, %v1051_v7  ;;  %v1110_v31 = vmul.f32 %v1103_v53, %v1079_v16  ;;  %v4653_v35 = vld [vmem:[#allocation18_spill] sm:$0xff]  ;;  %vm1881_vm7 = vcmp.lt.s32.totalorder %v2969_v42, 97 }
 0x157   :  { %v1111_v56 = vmul.f32 %v1107_v30, %v1078_v14  ;;  %v1125_v17 = vsel %vm1118_vm8, %v1122_v9, %v1124_v61  ;;  %v1126_v47 = vsel %vm1118_vm8, %v1124_v61, %v1122_v9  ;;  %v1233_v46 = vrot.slane %v3838_v43, %v2976_v45  ;;  %v4651_v61 = vld [vmem:[#allocation15_spill] sm:$0xff] }
 0x158   :  { %v1164_v20 = vpop.permute.xlu1 %1163  ;;  %v1162_v29 = vpop.permute.xlu0 %1161  ;;  %v1263_v53 = vrot.slane %v1256_v22, %v2973_v44  ;;  %v1097_v12 = vadd.f32 %v1095_v25, %v1065_v23  ;;  %v1098_v18 = vadd.f32 %v1096_v21, %v1066_v48  ;;  %v1142_v13 = vmul.f32 %v1135_v52, %v1120_v59  ;;  %v4654_v25 = vld [vmem:[#allocation12_spill] sm:$0xff] }
 0x159   :  { %v1143_v30 = vmul.f32 %v1139_v63, %v1119_v1  ;;  %v1166_v11 = vsel %vm1165_vm9, %v1162_v29, %v1164_v20  ;;  %v1167_v41 = vsel %vm1165_vm9, %v1164_v20, %v1162_v29  ;;  %v1244_v51 = vrot.slane %v3869_v8, %v2973_v44 }
 0x15a   :  { %1886 = vrot.lane.b32.xlu1 %v2783_v58, %s2698_s14  ;;  %1884 = vrot.lane.b32.xlu0 %v2770_v54, %s2698_s14  ;;  %v1267_v39 = vrot.slane %v1256_v22, %v2976_v45  ;;  %v1112_v19 = vadd.f32 %v1110_v31, %v1097_v12  ;;  %v1113_v10 = vadd.f32 %v1111_v56, %v1098_v18  ;;  %v4655_v22 = vld [vmem:[#allocation14_spill] sm:$0xff]  ;;  %v4658_v12 = vld [vmem:[#allocation13_spill] sm:$0xff]  ;;  %vm1928_vm8 = vcmp.lt.s32.totalorder %v2969_v42, 96 }
 0x15b   :  { %v1157_v5 = vmul.f32 %v1150_v15, %v1126_v47  ;;  %v1158_v52 = vmul.f32 %v1154_v38, %v1125_v17  ;;  %v1290_v49 = vrot.slane %v1258_v28, %v2973_v44  ;;  %v1294_v27 = vrot.slane %v1258_v28, %v2976_v45 }
 0x15c   :  { %v1171_v33 = vpop.permute.xlu1 %1170  ;;  %v1169_v63 = vpop.permute.xlu0 %1168  ;;  %v1144_v32 = vadd.f32 %v1142_v13, %v1112_v19  ;;  %v1145_v34 = vadd.f32 %v1143_v30, %v1113_v10  ;;  %v1189_v55 = vmul.f32 %v1182_v36, %v1167_v41  ;;  %v1190_v37 = vmul.f32 %v1186_v60, %v1166_v11  ;;  %v1327_v11 = vld [vmem:[#allocation2 + $0x31] ss:$8 sm:$0x3] }
 0x15d   :  { %v1172_v4 = vsel %vm1165_vm9, %v1169_v63, %v1171_v33  ;;  %v1173_v26 = vsel %vm1165_vm9, %v1171_v33, %v1169_v63  ;;  %v1248_v38 = vrot.slane %v3869_v8, %v2976_v45  ;;  %v1270_v40 = vmul.f32 %v1263_v53, %v4651_v61  ;;  %v4657_v8 = vld [vmem:[#allocation11_spill] sm:$0xff] }
 0x15e   :  { %1926 = vrot.lane.b32.xlu1 %v2805_v3, %s2699_s15  ;;  %1924 = vrot.lane.b32.xlu0 %v2792_v62, %s2699_s15  ;;  %v1272_v6 = vmul.f32 %v1263_v53, %v4652_v2  ;;  %v1273_v9 = vmul.f32 %v1267_v39, %v4653_v35  ;;  %v1159_v43 = vadd.f32 %v1157_v5, %v1144_v32  ;;  %v1329_v63 = vld [vmem:[#allocation2 + $0x92] ss:$8 sm:$0x3]  ;;  %vm1975_vm9 = vcmp.lt.s32.totalorder %v2969_v42, 95 }
 0x15f   :  { %v1160_v14 = vadd.f32 %v1158_v52, %v1145_v34  ;;  %v1204_v16 = vmul.f32 %v1197_v57, %v1173_v26  ;;  %v1205_v0 = vmul.f32 %v1201_v50, %v1172_v4  ;;  %v1299_v21 = vmul.f32 %v1290_v49, %v4654_v25  ;;  %v4656_v50 = vld [vmem:[#allocation17_spill] sm:$0xff]  ;;  %v1374_v2 = vld [vmem:[#allocation2 + $0x32] ss:$8 sm:$0x3] }
 0x160   :  { %v1211_v15 = vpop.permute.xlu1 %1210  ;;  %v1209_v7 = vpop.permute.xlu0 %1208  ;;  %v1300_v1 = vmul.f32 %v1294_v27, %v4655_v22  ;;  %v1191_v59 = vadd.f32 %v1189_v55, %v1159_v43  ;;  %v1271_v31 = vmul.f32 %v1267_v39, %v4656_v50  ;;  %v1278_v56 = vrot.slane %v1272_v6, 7 }
 0x161   :  { %v1213_v36 = vsel %vm1212_vm10, %v1209_v7, %v1211_v15  ;;  %v1214_v60 = vsel %vm1212_vm10, %v1211_v15, %v1209_v7  ;;  %v1192_v20 = vadd.f32 %v1190_v37, %v1160_v14  ;;  %v1280_v29 = vrot.slane %v1273_v9, 7 }
 0x162   :  { %1933 = vrot.lane.b32.xlu1 %v2783_v58, %s2699_s15  ;;  %v1236_v23 = vmul.f32 %v1229_v24, %v1214_v60  ;;  %v1237_v48 = vmul.f32 %v1233_v46, %v1213_v36  ;;  %1931 = vrot.lane.b32.xlu0 %v2770_v54, %s2699_s15  ;;  %v1297_v17 = vmul.f32 %v1290_v49, %v4657_v8  ;;  %v1305_v30 = vrot.slane %v1299_v21, 7 }
 0x163   :  { %v1206_v47 = vadd.f32 %v1204_v16, %v1191_v59  ;;  %v1207_v53 = vadd.f32 %v1205_v0, %v1192_v20  ;;  %v1298_v18 = vmul.f32 %v1294_v27, %v4658_v12  ;;  %v1307_v28 = vrot.slane %v1300_v1, 7  ;;  %v1376_v20 = vld [vmem:[#allocation2 + $0x93] ss:$8 sm:$0x3] }
 0x164   :  { %v1218_v57 = vpop.permute.xlu1 %1217  ;;  %v1216_v13 = vpop.permute.xlu0 %1215  ;;  %v1279_v10 = vsel %vm113_vm1, %v1278_v56, %v1270_v40  ;;  %v1281_v5 = vsel %vm113_vm1, %v1280_v29, %v1271_v31  ;;  %v1334_v49 = vrot.slane %v1327_v11, %v2973_v44  ;;  %v1338_v27 = vrot.slane %v1327_v11, %v2976_v45 }
 0x165   :  { %v1219_v24 = vsel %vm1212_vm10, %v1216_v13, %v1218_v57  ;;  %v1220_v46 = vsel %vm1212_vm10, %v1218_v57, %v1216_v13  ;;  %v1238_v41 = vadd.f32 %v1236_v23, %v1206_v47  ;;  %v1239_v33 = vadd.f32 %v1237_v48, %v1207_v53  ;;  %v1421_v53 = vld [vmem:[#allocation2 + $0x33] ss:$8 sm:$0x3] }
 0x166   :  { %1973 = vrot.lane.b32.xlu1 %v2805_v3, %s2700_s16  ;;  %v1251_v39 = vmul.f32 %v1244_v51, %v1220_v46  ;;  %v1252_v19 = vmul.f32 %v1248_v38, %v1219_v24  ;;  %1971 = vrot.lane.b32.xlu0 %v2792_v62, %s2700_s16  ;;  %v1306_v34 = vsel %vm113_vm1, %v1305_v30, %v1297_v17  ;;  %vm2022_vm10 = vcmp.lt.s32.totalorder %v2969_v42, 94 }
 0x167   :  { %v1308_v51 = vsel %vm113_vm1, %v1307_v28, %v1298_v18  ;;  %v1349_v61 = vrot.slane %v1329_v63, %v2973_v44  ;;  %v1353_v40 = vrot.slane %v1329_v63, %v2976_v45  ;;  %vm1364_vm1 = vcmp.lt.s32.totalorder %v2969_v42, 126 }
 0x168   :  { %v1316_v52 = vpop.permute.xlu1 %1315  ;;  %v1253_v4 = vadd.f32 %v1251_v39, %v1238_v41  ;;  %v1254_v26 = vadd.f32 %v1252_v19, %v1239_v33  ;;  %v1314_v32 = vpop.permute.xlu0 %1313  ;;  %v1381_v36 = vrot.slane %v1374_v2, %v2973_v44  ;;  %v1385_v60 = vrot.slane %v1374_v2, %v2976_v45  ;;  %v1423_v39 = vld [vmem:[#allocation2 + $0x94] ss:$8 sm:$0x3] }
 0x169   :  { %v1318_v55 = vsel %vm1317_vm11, %v1314_v32, %v1316_v52  ;;  %v1319_v37 = vsel %vm1317_vm11, %v1316_v52, %v1314_v32  ;;  %v1396_v8 = vrot.slane %v1376_v20, %v2973_v44  ;;  %v1400_v17 = vrot.slane %v1376_v20, %v2976_v45 }
 0x16a   :  { %1980 = vrot.lane.b32.xlu1 %v2783_v58, %s2700_s16  ;;  %v1284_v15 = vadd.f32 %v1279_v10, %v1253_v4  ;;  %v1285_v38 = vadd.f32 %v1281_v5, %v1254_v26  ;;  %1978 = vrot.lane.b32.xlu0 %v2770_v54, %s2700_s16  ;;  %v1341_v43 = vmul.f32 %v1334_v49, %v1318_v55 }
 0x16b   :  { %v1342_v14 = vmul.f32 %v1338_v27, %v1319_v37  ;;  %v1428_v11 = vrot.slane %v1421_v53, %v2973_v44  ;;  %v1432_v41 = vrot.slane %v1421_v53, %v2976_v45  ;;  %v1443_v49 = vrot.slane %v1423_v39, %v2973_v44 }
 0x16c   :  { %v1323_v6 = vpop.permute.xlu1 %1322  ;;  %v1311_v35 = vadd.f32 %v1306_v34, %v1284_v15  ;;  %v1312_v9 = vadd.f32 %v1308_v51, %v1285_v38  ;;  %v1321_v16 = vpop.permute.xlu0 %1320  ;;  %v1447_v27 = vrot.slane %v1423_v39, %v2976_v45  ;;  %v1468_v34 = vld [vmem:[#allocation2 + $0x34] ss:$8 sm:$0x3] }
 0x16d   :  { %v1324_v0 = vsel %vm1317_vm11, %v1321_v16, %v1323_v6  ;;  %v1325_v7 = vsel %vm1317_vm11, %v1323_v6, %v1321_v16  ;;  %v1475_v2 = vrot.slane %v1468_v34, %v2973_v44  ;;  %v1479_v6 = vrot.slane %v1468_v34, %v2976_v45 }
 0x16e   :  { %2020 = vrot.lane.b32.xlu1 %v2805_v3, %s2701_s17  ;;  %v1343_v25 = vadd.f32 %v1341_v43, %v1311_v35  ;;  %v1344_v21 = vadd.f32 %v1342_v14, %v1312_v9  ;;  %v1356_v22 = vmul.f32 %v1349_v61, %v1324_v0  ;;  %v1357_v1 = vmul.f32 %v1353_v40, %v1325_v7  ;;  %v1470_v9 = vld [vmem:[#allocation2 + $0x95] ss:$8 sm:$0x3] }
 0x16f   :  { %2018 = vrot.lane.b32.xlu0 %v2792_v62, %s2701_s17  ;;  %vm2069_vm11 = vcmp.lt.s32.totalorder %v2969_v42, 93 }
 0x170   :  { %v1363_v59 = vpop.permute.xlu1 %1362  ;;  %v1358_v23 = vadd.f32 %v1356_v22, %v1343_v25  ;;  %v1359_v48 = vadd.f32 %v1357_v1, %v1344_v21  ;;  %v1361_v57 = vpop.permute.xlu0 %1360  ;;  %v1490_v25 = vrot.slane %v1470_v9, %v2973_v44  ;;  %v1494_v21 = vrot.slane %v1470_v9, %v2976_v45  ;;  %v1515_v1 = vld [vmem:[#allocation2 + $0x35] ss:$8 sm:$0x3] }
 0x171   :  { %v1365_v50 = vsel %vm1364_vm1, %v1361_v57, %v1363_v59  ;;  %v1366_v31 = vsel %vm1364_vm1, %v1363_v59, %v1361_v57 }
 0x172   :  { %2027 = vrot.lane.b32.xlu1 %v2783_v58, %s2701_s17  ;;  %v1388_v56 = vmul.f32 %v1381_v36, %v1365_v50  ;;  %v1389_v29 = vmul.f32 %v1385_v60, %v1366_v31 }
 0x173   :  { %2025 = vrot.lane.b32.xlu0 %v2770_v54, %s2701_s17 }
 0x174   :  { %v1370_v47 = vpop.permute.xlu1 %1369  ;;  %v1390_v12 = vadd.f32 %v1388_v56, %v1358_v23  ;;  %v1391_v18 = vadd.f32 %v1389_v29, %v1359_v48  ;;  %v1368_v13 = vpop.permute.xlu0 %1367  ;;  %v1522_v56 = vrot.slane %v1515_v1, %v2973_v44  ;;  %v1526_v29 = vrot.slane %v1515_v1, %v2976_v45 }
 0x175   :  { %v1371_v30 = vsel %vm1364_vm1, %v1368_v13, %v1370_v47  ;;  %v1372_v28 = vsel %vm1364_vm1, %v1370_v47, %v1368_v13  ;;  %vm2116_vm1 = vcmp.lt.s32.totalorder %v2969_v42, 83 }
 0x176   :  { %2067 = vrot.lane.b32.xlu1 %v2805_v3, %s2702_s18  ;;  %v1403_v24 = vmul.f32 %v1396_v8, %v1371_v30  ;;  %v1404_v46 = vmul.f32 %v1400_v17, %v1372_v28  ;;  %v1517_v17 = vld [vmem:[#allocation2 + $0x96] ss:$8 sm:$0x3] }
 0x177   :  { %2065 = vrot.lane.b32.xlu0 %v2792_v62, %s2702_s18 }
 0x178   :  { %v1410_v33 = vpop.permute.xlu1 %1409  ;;  %v1405_v19 = vadd.f32 %v1403_v24, %v1390_v12  ;;  %v1406_v10 = vadd.f32 %v1404_v46, %v1391_v18  ;;  %v1408_v5 = vpop.permute.xlu0 %1407  ;;  %v1537_v24 = vrot.slane %v1517_v17, %v2973_v44  ;;  %v1541_v46 = vrot.slane %v1517_v17, %v2976_v45 }
 0x179   :  { %v1412_v52 = vsel %vm1411_vm12, %v1408_v5, %v1410_v33  ;;  %v1413_v63 = vsel %vm1411_vm12, %v1410_v33, %v1408_v5 }
 0x17a   :  { %2074 = vrot.lane.b32.xlu1 %v2783_v58, %s2702_s18  ;;  %v1435_v4 = vmul.f32 %v1428_v11, %v1412_v52  ;;  %v1436_v26 = vmul.f32 %v1432_v41, %v1413_v63  ;;  %v1562_v41 = vld [vmem:[#allocation2 + $0x36] ss:$8 sm:$0x3] }
 0x17b   :  { %2072 = vrot.lane.b32.xlu0 %v2770_v54, %s2702_s18 }
 0x17c   :  { %v1417_v32 = vpop.permute.xlu1 %1416  ;;  %v1437_v51 = vadd.f32 %v1435_v4, %v1405_v19  ;;  %v1438_v55 = vadd.f32 %v1436_v26, %v1406_v10  ;;  %v1415_v37 = vpop.permute.xlu0 %1414  ;;  %v1569_v4 = vrot.slane %v1562_v41, %v2973_v44  ;;  %v1573_v26 = vrot.slane %v1562_v41, %v2976_v45 }
 0x17d   :  { %v1418_v15 = vsel %vm1411_vm12, %v1415_v37, %v1417_v32  ;;  %v1419_v38 = vsel %vm1411_vm12, %v1417_v32, %v1415_v37  ;;  %vm2163_vm12 = vcmp.lt.s32.totalorder %v2969_v42, 82 }
 0x17e   :  { %2114 = vrot.lane.b32.xlu1 %v2805_v3, %s2703_s19  ;;  %v1450_v61 = vmul.f32 %v1443_v49, %v1418_v15  ;;  %v1451_v40 = vmul.f32 %v1447_v27, %v1419_v38  ;;  %v1564_v27 = vld [vmem:[#allocation2 + $0x97] ss:$8 sm:$0x3] }
 0x17f   :  { %2112 = vrot.lane.b32.xlu0 %v2792_v62, %s2703_s19 }
 0x180   :  { %v1457_v35 = vpop.permute.xlu1 %1456  ;;  %v1452_v43 = vadd.f32 %v1450_v61, %v1437_v51  ;;  %v1453_v14 = vadd.f32 %v1451_v40, %v1438_v55  ;;  %v1455_v16 = vpop.permute.xlu0 %1454  ;;  %v1584_v61 = vrot.slane %v1564_v27, %v2973_v44  ;;  %v1588_v40 = vrot.slane %v1564_v27, %v2976_v45 }
 0x181   :  { %v1459_v0 = vsel %vm1458_vm13, %v1455_v16, %v1457_v35  ;;  %v1460_v7 = vsel %vm1458_vm13, %v1457_v35, %v1455_v16 }
 0x182   :  { %2121 = vrot.lane.b32.xlu1 %v2783_v58, %s2703_s19  ;;  %v1482_v36 = vmul.f32 %v1475_v2, %v1459_v0  ;;  %v1483_v60 = vmul.f32 %v1479_v6, %v1460_v7  ;;  %v1609_v6 = vld [vmem:[#allocation2 + $0x37] ss:$8 sm:$0x3] }
 0x183   :  { %2119 = vrot.lane.b32.xlu0 %v2770_v54, %s2703_s19 }
 0x184   :  { %v1464_v22 = vpop.permute.xlu1 %1463  ;;  %v1484_v59 = vadd.f32 %v1482_v36, %v1452_v43  ;;  %v1485_v20 = vadd.f32 %v1483_v60, %v1453_v14  ;;  %v1462_v23 = vpop.permute.xlu0 %1461  ;;  %v1616_v36 = vrot.slane %v1609_v6, %v2973_v44  ;;  %v1620_v60 = vrot.slane %v1609_v6, %v2976_v45 }
 0x185   :  { %v1465_v48 = vsel %vm1458_vm13, %v1462_v23, %v1464_v22  ;;  %v1466_v57 = vsel %vm1458_vm13, %v1464_v22, %v1462_v23  ;;  %vm2210_vm13 = vcmp.lt.s32.totalorder %v2969_v42, 81 }
 0x186   :  { %2161 = vrot.lane.b32.xlu1 %v2805_v3, %s2704_s21  ;;  %v1497_v50 = vmul.f32 %v1490_v25, %v1465_v48  ;;  %v1498_v31 = vmul.f32 %v1494_v21, %v1466_v57  ;;  %v1611_v21 = vld [vmem:[#allocation2 + $0xa0] ss:$8 sm:$0x3] }
 0x187   :  { %2159 = vrot.lane.b32.xlu0 %v2792_v62, %s2704_s21 }
 0x188   :  { %v1504_v8 = vpop.permute.xlu1 %1503  ;;  %v1499_v47 = vadd.f32 %v1497_v50, %v1484_v59  ;;  %v1500_v53 = vadd.f32 %v1498_v31, %v1485_v20  ;;  %v1502_v12 = vpop.permute.xlu0 %1501  ;;  %v1631_v50 = vrot.slane %v1611_v21, %v2973_v44  ;;  %v1635_v31 = vrot.slane %v1611_v21, %v2976_v45 }
 0x189   :  { %v1506_v18 = vsel %vm1505_vm14, %v1502_v12, %v1504_v8  ;;  %v1507_v13 = vsel %vm1505_vm14, %v1504_v8, %v1502_v12 }
 0x18a   :  { %2168 = vrot.lane.b32.xlu1 %v2783_v58, %s2704_s21  ;;  %v1529_v30 = vmul.f32 %v1522_v56, %v1506_v18  ;;  %v1530_v28 = vmul.f32 %v1526_v29, %v1507_v13  ;;  %v1656_v29 = vld [vmem:[#allocation2 + $0x40] ss:$8 sm:$0x3] }
 0x18b   :  { %2166 = vrot.lane.b32.xlu0 %v2770_v54, %s2704_s21 }
 0x18c   :  { %v1511_v11 = vpop.permute.xlu1 %1510  ;;  %v1531_v33 = vadd.f32 %v1529_v30, %v1499_v47  ;;  %v1532_v39 = vadd.f32 %v1530_v28, %v1500_v53  ;;  %v1509_v19 = vpop.permute.xlu0 %1508  ;;  %v1663_v30 = vrot.slane %v1656_v29, %v2973_v44  ;;  %v1667_v28 = vrot.slane %v1656_v29, %v2976_v45  ;;  %v1750_v29 = vld [vmem:[#allocation2 + $0x42] ss:$8 sm:$0x3] }
 0x18d   :  { %v1512_v10 = vsel %vm1505_vm14, %v1509_v19, %v1511_v11  ;;  %v1513_v5 = vsel %vm1505_vm14, %v1511_v11, %v1509_v19  ;;  %vm2257_vm14 = vcmp.lt.s32.totalorder %v2969_v42, 80 }
 0x18e   :  { %2208 = vrot.lane.b32.xlu1 %v2805_v3, %s2705_s22  ;;  %v1544_v52 = vmul.f32 %v1537_v24, %v1512_v10  ;;  %v1545_v63 = vmul.f32 %v1541_v46, %v1513_v5  ;;  %v1658_v46 = vld [vmem:[#allocation2 + $0xa1] ss:$8 sm:$0x3] }
 0x18f   :  { %2206 = vrot.lane.b32.xlu0 %v2792_v62, %s2705_s22 }
 0x190   :  { %v1551_v49 = vpop.permute.xlu1 %1550  ;;  %v1546_v32 = vadd.f32 %v1544_v52, %v1531_v33  ;;  %v1547_v34 = vadd.f32 %v1545_v63, %v1532_v39  ;;  %v1549_v51 = vpop.permute.xlu0 %1548  ;;  %v1678_v52 = vrot.slane %v1658_v46, %v2973_v44  ;;  %v1682_v63 = vrot.slane %v1658_v46, %v2976_v45 }
 0x191   :  { %v1553_v55 = vsel %vm1552_vm15, %v1549_v51, %v1551_v49  ;;  %v1554_v37 = vsel %vm1552_vm15, %v1551_v49, %v1549_v51 }
 0x192   :  { %2215 = vrot.lane.b32.xlu1 %v2783_v58, %s2705_s22  ;;  %v1576_v15 = vmul.f32 %v1569_v4, %v1553_v55  ;;  %v1577_v38 = vmul.f32 %v1573_v26, %v1554_v37 }
 0x193   :  { %2213 = vrot.lane.b32.xlu0 %v2770_v54, %s2705_s22 }
 0x194   :  { %v1558_v2 = vpop.permute.xlu1 %1557  ;;  %v1578_v35 = vadd.f32 %v1576_v15, %v1546_v32  ;;  %v1579_v9 = vadd.f32 %v1577_v38, %v1547_v34  ;;  %v1556_v43 = vpop.permute.xlu0 %1555 }
 0x195   :  { %v1559_v14 = vsel %vm1552_vm15, %v1556_v43, %v1558_v2  ;;  %v1560_v16 = vsel %vm1552_vm15, %v1558_v2, %v1556_v43  ;;  %vm2304_vm15 = vcmp.lt.s32.totalorder %v2969_v42, 79 }
 0x196   :  { %2255 = vrot.lane.b32.xlu1 %v2805_v3, %s2706_s23  ;;  %v1591_v0 = vmul.f32 %v1584_v61, %v1559_v14  ;;  %v1592_v7 = vmul.f32 %v1588_v40, %v1560_v16 }
 0x197   :  { %2253 = vrot.lane.b32.xlu0 %v2792_v62, %s2706_s23 }
 0x198   :  { %v1598_v25 = vpop.permute.xlu1 %1597  ;;  %v1593_v22 = vadd.f32 %v1591_v0, %v1578_v35  ;;  %v1594_v1 = vadd.f32 %v1592_v7, %v1579_v9  ;;  %v1596_v59 = vpop.permute.xlu0 %1595 }
 0x199   :  { %v1600_v20 = vsel %vm1599_vm0, %v1596_v59, %v1598_v25  ;;  %v1601_v23 = vsel %vm1599_vm0, %v1598_v25, %v1596_v59 }
 0x19a   :  { %2262 = vrot.lane.b32.xlu1 %v2783_v58, %s2706_s23  ;;  %v1623_v48 = vmul.f32 %v1616_v36, %v1600_v20  ;;  %v1624_v57 = vmul.f32 %v1620_v60, %v1601_v23 }
 0x19b   :  { %2260 = vrot.lane.b32.xlu0 %v2770_v54, %s2706_s23 }
 0x19c   :  { %v1605_v56 = vpop.permute.xlu1 %1604  ;;  %v1625_v8 = vadd.f32 %v1623_v48, %v1593_v22  ;;  %v1626_v17 = vadd.f32 %v1624_v57, %v1594_v1  ;;  %v1603_v47 = vpop.permute.xlu0 %1602 }
 0x19d   :  { %v1606_v53 = vsel %vm1599_vm0, %v1603_v47, %v1605_v56  ;;  %v1607_v12 = vsel %vm1599_vm0, %v1605_v56, %v1603_v47  ;;  %v1705_v56 = vld [vmem:[#allocation2 + $0xa2] ss:$8 sm:$0x3]  ;;  %vm2351_vm0 = vcmp.lt.s32.totalorder %v2969_v42, 78 }
 0x19e   :  { %2302 = vrot.lane.b32.xlu1 %v2805_v3, %s2707_s24  ;;  %v1638_v18 = vmul.f32 %v1631_v50, %v1606_v53  ;;  %v1639_v13 = vmul.f32 %v1635_v31, %v1607_v12  ;;  %v1703_v31 = vld [vmem:[#allocation2 + $0x41] ss:$8 sm:$0x3] }
 0x19f   :  { %2300 = vrot.lane.b32.xlu0 %v2792_v62, %s2707_s24  ;;  %v1710_v53 = vrot.slane %v1703_v31, %v2973_v44  ;;  %v1714_v12 = vrot.slane %v1703_v31, %v2976_v45 }
 0x1a0   :  { %v1645_v24 = vpop.permute.xlu1 %1644  ;;  %v1640_v11 = vadd.f32 %v1638_v18, %v1625_v8  ;;  %v1641_v41 = vadd.f32 %v1639_v13, %v1626_v17  ;;  %v1643_v33 = vpop.permute.xlu0 %1642  ;;  %v1752_v17 = vld [vmem:[#allocation2 + $0xa3] ss:$8 sm:$0x3]  ;;  %v1725_v13 = vrot.slane %v1705_v56, %v2973_v44 }
 0x1a1   :  { %v1647_v39 = vsel %vm1646_vm2, %v1643_v33, %v1645_v24  ;;  %v1648_v19 = vsel %vm1646_vm2, %v1645_v24, %v1643_v33  ;;  %v4128_v18 = vld [vmem:[#allocation2 + $0x43] ss:$8 sm:$0x3]  ;;  %v4134_v24 = vld [vmem:[#allocation2 + $0xa4] ss:$8 sm:$0x3]  ;;  %v1772_v33 = vrot.slane %v1752_v17, %v2973_v44 }
 0x1a2   :  { %2309 = vrot.lane.b32.xlu1 %v2783_v58, %s2707_s24  ;;  %v1670_v10 = vmul.f32 %v1663_v30, %v1647_v39  ;;  %v1671_v5 = vmul.f32 %v1667_v28, %v1648_v19  ;;  %v1729_v30 = vrot.slane %v1705_v56, %v2976_v45  ;;  %v1757_v28 = vrot.slane %v1750_v29, %v2973_v44  ;;  %v4142_v39 = vld [vmem:[#allocation2 + $0x44] ss:$8 sm:$0x3] }
 0x1a3   :  { %2307 = vrot.lane.b32.xlu0 %v2770_v54, %s2707_s24 }
 0x1a4   :  { %v1652_v4 = vpop.permute.xlu1 %1651  ;;  %v1672_v26 = vadd.f32 %v1670_v10, %v1640_v11  ;;  %v1673_v49 = vadd.f32 %v1671_v5, %v1641_v41  ;;  %v1650_v27 = vpop.permute.xlu0 %1649  ;;  %v1761_v41 = vrot.slane %v1750_v29, %v2976_v45  ;;  %v1776_v10 = vrot.slane %v1752_v17, %v2976_v45 }
 0x1a5   :  { %v1653_v32 = vsel %vm1646_vm2, %v1650_v27, %v1652_v4  ;;  %v1654_v34 = vsel %vm1646_vm2, %v1652_v4, %v1650_v27  ;;  %v1804_v5 = vrot.slane %v4128_v18, %v2973_v44  ;;  %v1819_v27 = vrot.slane %v4134_v24, %v2973_v44 }
 0x1a6   :  { %2349 = vrot.lane.b32.xlu1 %v2805_v3, %s2708_s25  ;;  %v1685_v51 = vmul.f32 %v1678_v52, %v1653_v32  ;;  %v1686_v55 = vmul.f32 %v1682_v63, %v1654_v34  ;;  %v1808_v52 = vrot.slane %v4128_v18, %v2976_v45  ;;  %v4152_v63 = vld [vmem:[#allocation2 + $0xa5] ss:$8 sm:$0x3]  ;;  %v1823_v32 = vrot.slane %v4134_v24, %v2976_v45 }
 0x1a7   :  { %2347 = vrot.lane.b32.xlu0 %v2792_v62, %s2708_s25  ;;  %v1866_v31 = vrot.slane %v4152_v63, %v2973_v44  ;;  %vm2398_vm2 = vcmp.lt.s32.totalorder %v2969_v42, 77  ;;  %v2710_v42 = vmov 1966171168  }
 0x1a8   :  { %v1692_v37 = vpop.permute.xlu1 %1691  ;;  %v4063_v15 = vadd.f32 %v1685_v51, %v1672_v26  ;;  %v4065_v38 = vadd.f32 %v1686_v55, %v1673_v49  ;;  %v1690_v61 = vpop.permute.xlu0 %1689  ;;  %v1851_v55 = vrot.slane %v4142_v39, %v2973_v44 }
 0x1a9   :  { %v1694_v46 = vsel %vm1693_vm3, %v1690_v61, %v1692_v37  ;;  %v1695_v11 = vsel %vm1693_vm3, %v1692_v37, %v1690_v61  ;;  %v4167_v37 = vld [vmem:[#allocation2 + $0x45] ss:$8 sm:$0x3] }
 0x1aa   :  { %2356 = vrot.lane.b32.xlu1 %v2783_v58, %s2708_s25  ;;  %v1717_v34 = vmul.f32 %v1710_v53, %v1694_v46  ;;  %v1718_v51 = vmul.f32 %v1714_v12, %v1695_v11  ;;  %v1870_v53 = vrot.slane %v4152_v63, %v2976_v45  ;;  %v4186_v12 = vld [vmem:[#allocation2 + $0xa6] ss:$8 sm:$0x3] }
 0x1ab   :  { %2354 = vrot.lane.b32.xlu0 %v2770_v54, %s2708_s25 }
 0x1ac   :  { %v1699_v40 = vpop.permute.xlu1 %1698  ;;  %v1697_v2 = vpop.permute.xlu0 %1696  ;;  %v1719_v24 = vadd.f32 %v1717_v34, %v4063_v15  ;;  %v1720_v46 = vadd.f32 %v1718_v51, %v4065_v38  ;;  %v1917_v15 = vrot.slane %v4186_v12, %v2976_v45 }
 0x1ad   :  { %v1700_v26 = vsel %vm1693_vm3, %v1697_v2, %v1699_v40  ;;  %v1701_v49 = vsel %vm1693_vm3, %v1699_v40, %v1697_v2  ;;  %v1855_v2 = vrot.slane %v4142_v39, %v2976_v45 }
 0x1ae   :  { %2396 = vrot.lane.b32.xlu1 %v2805_v3, %s2709_s20  ;;  %v1732_v29 = vmul.f32 %v1725_v13, %v1700_v26  ;;  %v1733_v17 = vmul.f32 %v1729_v30, %v1701_v49  ;;  %v1898_v13 = vrot.slane %v4167_v37, %v2973_v44  ;;  %v1902_v30 = vrot.slane %v4167_v37, %v2976_v45  ;;  %v4204_v26 = vld [vmem:[#allocation2 + $0x46] ss:$8 sm:$0x3] }
 0x1af   :  { %2394 = vrot.lane.b32.xlu0 %v2792_v62, %s2709_s20 }
 0x1b0   :  { %v4071_v6 = vpop.permute.xlu1 %1738  ;;  %v4073_v35 = vpop.permute.xlu0 %1736 }
 0x1b1   :  { %v1741_v61 = vsel %vm1740_vm4, %v4073_v35, %v4071_v6  ;;  %v1742_v40 = vsel %vm1740_vm4, %v4071_v6, %v4073_v35 }
 0x1b2   :  { %2403 = vrot.lane.b32.xlu1 %v2783_v58, %s2709_s20  ;;  %v1764_v11 = vmul.f32 %v1757_v28, %v1741_v61  ;;  %v1765_v39 = vmul.f32 %v1761_v41, %v1742_v40  ;;  %v1734_v28 = vadd.f32 %v1732_v29, %v1719_v24  ;;  %v1735_v41 = vadd.f32 %v1733_v17, %v1720_v46  ;;  %v4221_v61 = vld [vmem:[#allocation2 + $0xa7] ss:$8 sm:$0x3] }
 0x1b3   :  { %2401 = vrot.lane.b32.xlu0 %v2770_v54, %s2709_s20  ;;  %v4237_v24 = vld [vmem:[#allocation2 + $0x47] ss:$8 sm:$0x3] }
 0x1b4   :  { %v4077_v9 = vpop.permute.xlu1 %1745  ;;  %v4079_v43 = vpop.permute.xlu0 %1743  ;;  %v1766_v29 = vadd.f32 %v1764_v11, %v1734_v28  ;;  %v1767_v17 = vadd.f32 %v1765_v39, %v1735_v41  ;;  %v1964_v11 = vrot.slane %v4221_v61, %v2976_v45  ;;  %v4254_v28 = vld [vmem:[#allocation2 + $0xb0] ss:$8 sm:$0x3] }
 0x1b5   :  { %v1747_v6 = vsel %vm1740_vm4, %v4079_v43, %v4077_v9  ;;  %v1748_v35 = vsel %vm1740_vm4, %v4077_v9, %v4079_v43  ;;  %v1913_v43 = vrot.slane %v4186_v12, %v2973_v44 }
 0x1b6   :  { %v1779_v34 = vmul.f32 %v1772_v33, %v1747_v6  ;;  %v1780_v51 = vmul.f32 %v1776_v10, %v1748_v35  ;;  %v1945_v33 = vrot.slane %v4204_v26, %v2973_v44  ;;  %v1949_v10 = vrot.slane %v4204_v26, %v2976_v45 }
 0x1b8   :  { %v4081_v14 = vpop.permute.xlu1 %1785  ;;  %v4083_v16 = vpop.permute.xlu0 %1783  ;;  %v1782_v39 = vadd.f32 %v1780_v51, %v1767_v17 }
 0x1b9   :  { %v1788_v49 = vsel %vm1787_vm5, %v4083_v16, %v4081_v14  ;;  %v1789_v9 = vsel %vm1787_vm5, %v4081_v14, %v4083_v16 }
 0x1ba   :  { %v1811_v6 = vmul.f32 %v1804_v5, %v1788_v49  ;;  %v1812_v35 = vmul.f32 %v1808_v52, %v1789_v9  ;;  %v1781_v52 = vadd.f32 %v1779_v34, %v1766_v29  ;;  %v4270_v29 = vld [vmem:[#allocation2 + $0x50] ss:$8 sm:$0x3] }
 0x1bb   :  { %v2039_v63 = vrot.slane %v4270_v29, %v2973_v44 }
 0x1bc   :  { %v4085_v0 = vpop.permute.xlu1 %1792  ;;  %v4087_v3 = vpop.permute.xlu0 %1790  ;;  %v1813_v34 = vadd.f32 %v1811_v6, %v1781_v52  ;;  %v1814_v51 = vadd.f32 %v1812_v35, %v1782_v39  ;;  %v2011_v6 = vrot.slane %v4254_v28, %v2976_v45 }
 0x1bd   :  { %v1794_v14 = vsel %vm1787_vm5, %v4087_v3, %v4085_v0  ;;  %v1795_v16 = vsel %vm1787_vm5, %v4085_v0, %v4087_v3  ;;  %v1960_v3 = vrot.slane %v4221_v61, %v2973_v44 }
 0x1be   :  { %v1826_v49 = vmul.f32 %v1819_v27, %v1794_v14  ;;  %v1827_v9 = vmul.f32 %v1823_v32, %v1795_v16  ;;  %v1992_v27 = vrot.slane %v4237_v24, %v2973_v44  ;;  %v1996_v32 = vrot.slane %v4237_v24, %v2976_v45 }
 0x1c0   :  { %v4089_v62 = vpop.permute.xlu1 %1832  ;;  %v4091_v7 = vpop.permute.xlu0 %1830  ;;  %v1829_v35 = vadd.f32 %v1827_v9, %v1814_v51 }
 0x1c1   :  { %v1835_v46 = vsel %vm1834_vm6, %v4091_v7, %v4089_v62  ;;  %v1836_v0 = vsel %vm1834_vm6, %v4089_v62, %v4091_v7 }
 0x1c2   :  { %v1858_v14 = vmul.f32 %v1851_v55, %v1835_v46  ;;  %v1859_v16 = vmul.f32 %v1855_v2, %v1836_v0  ;;  %v1828_v2 = vadd.f32 %v1826_v49, %v1813_v34 }
 0x1c4   :  { %v4093_v36 = vpop.permute.xlu1 %1839  ;;  %v4095_v58 = vpop.permute.xlu0 %1837  ;;  %v1860_v39 = vadd.f32 %v1858_v14, %v1828_v2  ;;  %v1861_v49 = vadd.f32 %v1859_v16, %v1829_v35 }
 0x1c5   :  { %v1841_v62 = vsel %vm1834_vm6, %v4095_v58, %v4093_v36  ;;  %v1842_v7 = vsel %vm1834_vm6, %v4093_v36, %v4095_v58  ;;  %v2007_v58 = vrot.slane %v4254_v28, %v2973_v44 }
 0x1c6   :  { %v1873_v46 = vmul.f32 %v1866_v31, %v1841_v62  ;;  %v1874_v0 = vmul.f32 %v1870_v53, %v1842_v7  ;;  %v2043_v53 = vrot.slane %v4270_v29, %v2976_v45  ;;  %v4315_v7 = vld [vmem:[#allocation2 + $0x51] ss:$8 sm:$0x3] }
 0x1c7   :  { %v2086_v12 = vrot.slane %v4315_v7, %v2973_v44 }
 0x1c8   :  { %v4097_v54 = vpop.permute.xlu1 %1879  ;;  %v4099_v60 = vpop.permute.xlu0 %1877  ;;  %v1876_v51 = vadd.f32 %v1874_v0, %v1861_v49 }
 0x1c9   :  { %v1882_v17 = vsel %vm1881_vm7, %v4099_v60, %v4097_v54  ;;  %v1883_v36 = vsel %vm1881_vm7, %v4097_v54, %v4099_v60  ;;  %v4293_v54 = vld [vmem:[#allocation2 + $0xb1] ss:$8 sm:$0x3] }
 0x1ca   :  { %v1905_v9 = vmul.f32 %v1898_v13, %v1882_v17  ;;  %v1906_v62 = vmul.f32 %v1902_v30, %v1883_v36  ;;  %v2054_v34 = vrot.slane %v4293_v54, %v2973_v44  ;;  %v2058_v13 = vrot.slane %v4293_v54, %v2976_v45  ;;  %v4337_v17 = vld [vmem:[#allocation2 + $0xb2] ss:$8 sm:$0x3] }
 0x1cb   :  { %v1875_v30 = vadd.f32 %v1873_v46, %v1860_v39  ;;  %v2090_v46 = vrot.slane %v4315_v7, %v2976_v45  ;;  %v4378_v39 = vld [vmem:[#allocation2 + $0x52] ss:$8 sm:$0x3]  ;;  %v4399_v7 = vld [vmem:[#allocation2 + $0xb3] ss:$8 sm:$0x3] }
 0x1cc   :  { %v4101_v25 = vpop.permute.xlu1 %1886  ;;  %v4103_v21 = vpop.permute.xlu0 %1884  ;;  %v2152_v28 = vrot.slane %v4399_v7, %v2976_v45 }
 0x1cd   :  { %v1888_v52 = vsel %vm1881_vm7, %v4103_v21, %v4101_v25  ;;  %v1889_v31 = vsel %vm1881_vm7, %v4101_v25, %v4103_v21 }
 0x1ce   :  { %v1920_v14 = vmul.f32 %v1913_v43, %v1888_v52  ;;  %v1921_v16 = vmul.f32 %v1917_v15, %v1889_v31  ;;  %v1907_v43 = vadd.f32 %v1905_v9, %v1875_v30  ;;  %v1908_v15 = vadd.f32 %v1906_v62, %v1876_v51 }
 0x1d0   :  { %v4105_v22 = vpop.permute.xlu1 %1926  ;;  %v4107_v1 = vpop.permute.xlu0 %1924  ;;  %v1922_v26 = vadd.f32 %v1920_v14, %v1907_v43  ;;  %v4421_v14 = vld [vmem:[#allocation2 + $0x53] ss:$8 sm:$0x3] }
 0x1d1   :  { %v1929_v25 = vsel %vm1928_vm8, %v4107_v1, %v4105_v22  ;;  %v1930_v21 = vsel %vm1928_vm8, %v4105_v22, %v4107_v1 }
 0x1d2   :  { %v1952_v2 = vmul.f32 %v1945_v33, %v1929_v25  ;;  %v1953_v35 = vmul.f32 %v1949_v10, %v1930_v21  ;;  %v2101_v33 = vrot.slane %v4337_v17, %v2973_v44  ;;  %v1923_v10 = vadd.f32 %v1921_v16, %v1908_v15  ;;  %v4443_v15 = vld [vmem:[#allocation2 + $0xb4] ss:$8 sm:$0x3] }
 0x1d3   :  { %v2133_v25 = vrot.slane %v4378_v39, %v2973_v44 }
 0x1d4   :  { %v4109_v59 = vpop.permute.xlu1 %1933  ;;  %v4111_v20 = vpop.permute.xlu0 %1931  ;;  %v1954_v61 = vadd.f32 %v1952_v2, %v1922_v26  ;;  %v2184_v26 = vrot.slane %v4421_v14, %v2976_v45 }
 0x1d5   :  { %v1935_v1 = vsel %vm1928_vm8, %v4111_v20, %v4109_v59  ;;  %v1936_v36 = vsel %vm1928_vm8, %v4109_v59, %v4111_v20 }
 0x1d6   :  { %v1967_v52 = vmul.f32 %v1960_v3, %v1935_v1  ;;  %v1968_v31 = vmul.f32 %v1964_v11, %v1936_v36  ;;  %v2105_v3 = vrot.slane %v4337_v17, %v2976_v45  ;;  %v1955_v11 = vadd.f32 %v1953_v35, %v1923_v10 }
 0x1d8   :  { %v4113_v23 = vpop.permute.xlu1 %1973  ;;  %v4115_v48 = vpop.permute.xlu0 %1971  ;;  %v1970_v21 = vadd.f32 %v1968_v31, %v1955_v11  ;;  %v2220_v31 = vld [vmem:[#allocation2 + $0x54] ss:$8 sm:$0x3]  ;;  %v2222_v11 = vld [vmem:[#allocation2 + $0xb5] ss:$8 sm:$0x3] }
 0x1d9   :  { %v1976_v59 = vsel %vm1975_vm9, %v4115_v48, %v4113_v23  ;;  %v1977_v20 = vsel %vm1975_vm9, %v4113_v23, %v4115_v48 }
 0x1da   :  { %v1999_v9 = vmul.f32 %v1992_v27, %v1976_v59  ;;  %v2000_v62 = vmul.f32 %v1996_v32, %v1977_v20  ;;  %v2137_v27 = vrot.slane %v4378_v39, %v2976_v45  ;;  %v1969_v32 = vadd.f32 %v1967_v52, %v1954_v61 }
 0x1dc   :  { %v4117_v57 = vpop.permute.xlu1 %1980  ;;  %v4119_v50 = vpop.permute.xlu0 %1978  ;;  %v2002_v1 = vadd.f32 %v2000_v62, %v1970_v21  ;;  %v2227_v62 = vrot.slane %v2220_v31, %v2973_v44 }
 0x1dd   :  { %v1982_v48 = vsel %vm1975_vm9, %v4119_v50, %v4117_v57  ;;  %v1983_v49 = vsel %vm1975_vm9, %v4117_v57, %v4119_v50 }
 0x1de   :  { %v2014_v30 = vmul.f32 %v2007_v58, %v1982_v48  ;;  %v2015_v51 = vmul.f32 %v2011_v6, %v1983_v49  ;;  %v2148_v58 = vrot.slane %v4399_v7, %v2973_v44  ;;  %v2001_v6 = vadd.f32 %v1999_v9, %v1969_v32 }
 0x1df   :  { %v2231_v7 = vrot.slane %v2220_v31, %v2976_v45 }
 0x1e0   :  { %v4121_v8 = vpop.permute.xlu1 %2020  ;;  %v2016_v29 = vadd.f32 %v2014_v30, %v2001_v6 }
 0x1e1   :  { %v4124_v47 = vpop.permute.xlu0 %2018 }
 0x1e2   :  { %v2023_v57 = vsel %vm2022_vm10, %v4124_v47, %v4121_v8  ;;  %v2024_v50 = vsel %vm2022_vm10, %v4121_v8, %v4124_v47 }
 0x1e3   :  { %v2046_v36 = vmul.f32 %v2039_v63, %v2023_v57  ;;  %v2047_v43 = vmul.f32 %v2043_v53, %v2024_v50  ;;  %v2180_v63 = vrot.slane %v4421_v14, %v2973_v44  ;;  %v2017_v53 = vadd.f32 %v2015_v51, %v2002_v1  ;;  %v2267_v50 = vld [vmem:[#allocation2 + $0x55] ss:$8 sm:$0x3] }
 0x1e4   :  { %v4144_v19 = vpop.permute.xlu1 %2027 }
 0x1e5   :  { %v4154_v4 = vpop.permute.xlu0 %2025  ;;  %v2048_v10 = vadd.f32 %v2046_v36, %v2016_v29  ;;  %v2049_v54 = vadd.f32 %v2047_v43, %v2017_v53 }
 0x1e6   :  { %v2029_v47 = vsel %vm2022_vm10, %v4154_v4, %v4144_v19  ;;  %v2030_v16 = vsel %vm2022_vm10, %v4144_v19, %v4154_v4 }
 0x1e7   :  { %v2061_v35 = vmul.f32 %v2054_v34, %v2029_v47  ;;  %v2062_v59 = vmul.f32 %v2058_v13, %v2030_v16  ;;  %v2195_v34 = vrot.slane %v4443_v15, %v2973_v44  ;;  %v2269_v47 = vld [vmem:[#allocation2 + $0xb6] ss:$8 sm:$0x3] }
 0x1e8   :  { %v4181_v56 = vpop.permute.xlu1 %2067 }
 0x1e9   :  { %v4188_v18 = vpop.permute.xlu0 %2065  ;;  %v2063_v49 = vadd.f32 %v2061_v35, %v2048_v10  ;;  %v2314_v35 = vld [vmem:[#allocation2 + $0x56] ss:$8 sm:$0x3] }
 0x1ea   :  { %v2070_v19 = vsel %vm2069_vm11, %v4188_v18, %v4181_v56  ;;  %v2071_v4 = vsel %vm2069_vm11, %v4181_v56, %v4188_v18  ;;  %v2321_v31 = vrot.slane %v2314_v35, %v2973_v44 }
 0x1eb   :  { %v2093_v13 = vmul.f32 %v2086_v12, %v2070_v19  ;;  %v2094_v52 = vmul.f32 %v2090_v46, %v2071_v4  ;;  %v2064_v12 = vadd.f32 %v2062_v59, %v2049_v54 }
 0x1ec   :  { %v4218_v38 = vpop.permute.xlu1 %2074 }
 0x1ed   :  { %v4223_v40 = vpop.permute.xlu0 %2072  ;;  %v2095_v57 = vadd.f32 %v2093_v13, %v2063_v49  ;;  %v2096_v17 = vadd.f32 %v2094_v52, %v2064_v12 }
 0x1ee   :  { %v2076_v56 = vsel %vm2069_vm11, %v4223_v40, %v4218_v38  ;;  %v2077_v18 = vsel %vm2069_vm11, %v4218_v38, %v4223_v40  ;;  %v2199_v40 = vrot.slane %v4443_v15, %v2976_v45 }
 0x1ef   :  { %v2108_v46 = vmul.f32 %v2101_v33, %v2076_v56  ;;  %v2109_v61 = vmul.f32 %v2105_v3, %v2077_v18 }
 0x1f0   :  { %v4251_v5 = vpop.permute.xlu1 %2114 }
 0x1f1   :  { %v4256_v41 = vpop.permute.xlu0 %2112  ;;  %v2110_v51 = vadd.f32 %v2108_v46, %v2095_v57  ;;  %v2111_v14 = vadd.f32 %v2109_v61, %v2096_v17  ;;  %v2361_v46 = vld [vmem:[#allocation2 + $0x57] ss:$8 sm:$0x3]  ;;  %v2363_v57 = vld [vmem:[#allocation2 + $0xc0] ss:$8 sm:$0x3] }
 0x1f2   :  { %v2117_v39 = vsel %vm2116_vm1, %v4256_v41, %v4251_v5  ;;  %v2118_v38 = vsel %vm2116_vm1, %v4251_v5, %v4256_v41 }
 0x1f3   :  { %v2140_v33 = vmul.f32 %v2133_v25, %v2117_v39  ;;  %v2141_v3 = vmul.f32 %v2137_v27, %v2118_v38  ;;  %v2325_v39 = vrot.slane %v2314_v35, %v2976_v45 }
 0x1f4   :  { %v4284_v55 = vpop.permute.xlu1 %2121 }
 0x1f5   :  { %v4295_v60 = vpop.permute.xlu0 %2119  ;;  %v2142_v1 = vadd.f32 %v2140_v33, %v2110_v51  ;;  %v2143_v36 = vadd.f32 %v2141_v3, %v2111_v14 }
 0x1f6   :  { %v2123_v5 = vsel %vm2116_vm1, %v4295_v60, %v4284_v55  ;;  %v2124_v41 = vsel %vm2116_vm1, %v4284_v55, %v4295_v60  ;;  %v2242_v55 = vrot.slane %v2222_v11, %v2973_v44  ;;  %v2246_v60 = vrot.slane %v2222_v11, %v2976_v45 }
 0x1f7   :  { %v2155_v25 = vmul.f32 %v2148_v58, %v2123_v5  ;;  %v2156_v27 = vmul.f32 %v2152_v28, %v2124_v41 }
 0x1f8   :  { %v4329_v37 = vpop.permute.xlu1 %2161 }
 0x1f9   :  { %v4339_v22 = vpop.permute.xlu0 %2159  ;;  %v2157_v4 = vadd.f32 %v2155_v25, %v2142_v1  ;;  %v2158_v29 = vadd.f32 %v2156_v27, %v2143_v36  ;;  %v2372_v25 = vrot.slane %v2361_v46, %v2976_v45  ;;  %v2383_v27 = vrot.slane %v2363_v57, %v2973_v44 }
 0x1fa   :  { %v2164_v32 = vsel %vm2163_vm12, %v4339_v22, %v4329_v37  ;;  %v2165_v21 = vsel %vm2163_vm12, %v4329_v37, %v4339_v22  ;;  %v2274_v22 = vrot.slane %v2267_v50, %v2973_v44 }
 0x1fb   :  { %v2187_v58 = vmul.f32 %v2180_v63, %v2164_v32  ;;  %v2188_v28 = vmul.f32 %v2184_v26, %v2165_v21 }
 0x1fc   :  { %v4370_v0 = vpop.permute.xlu1 %2168 }
 0x1fd   :  { %v4380_v23 = vpop.permute.xlu0 %2166  ;;  %v2190_v26 = vadd.f32 %v2188_v28, %v2158_v29  ;;  %v2387_v28 = vrot.slane %v2363_v57, %v2976_v45 }
 0x1fe   :  { %v2170_v6 = vsel %vm2163_vm12, %v4380_v23, %v4370_v0  ;;  %v2171_v37 = vsel %vm2163_vm12, %v4370_v0, %v4380_v23  ;;  %v2278_v0 = vrot.slane %v2267_v50, %v2976_v45  ;;  %v2289_v23 = vrot.slane %v2269_v47, %v2973_v44 }
 0x1ff   :  { %v2202_v53 = vmul.f32 %v2195_v34, %v2170_v6  ;;  %v2203_v63 = vmul.f32 %v2199_v40, %v2171_v37  ;;  %v2316_v34 = vld [vmem:[#allocation2 + $0xb7] ss:$8 sm:$0x3]  ;;  %v2368_v50 = vrot.slane %v2361_v46, %v2973_v44 }
 0x200   :  { %v4413_v24 = vpop.permute.xlu1 %2208  ;;  %v2336_v5 = vrot.slane %v2316_v34, %v2973_v44 }
 0x201   :  { %v4423_v8 = vpop.permute.xlu0 %2206  ;;  %v2205_v38 = vadd.f32 %v2203_v63, %v2190_v26 }
 0x202   :  { %v2211_v43 = vsel %vm2210_vm13, %v4423_v8, %v4413_v24  ;;  %v2212_v15 = vsel %vm2210_vm13, %v4413_v24, %v4423_v8  ;;  %v2293_v24 = vrot.slane %v2269_v47, %v2976_v45  ;;  %v2189_v8 = vadd.f32 %v2187_v58, %v2157_v4 }
 0x203   :  { %v2234_v10 = vmul.f32 %v2227_v62, %v2211_v43  ;;  %v2235_v54 = vmul.f32 %v2231_v7, %v2212_v15 }
 0x204   :  { %v4456_v2 = vpop.permute.xlu1 %2215 }
 0x205   :  { %v2214_v20 = vpop.permute.xlu0 %2213  ;;  %v2237_v41 = vadd.f32 %v2235_v54, %v2205_v38 }
 0x206   :  { %v2217_v56 = vsel %vm2210_vm13, %v2214_v20, %v4456_v2  ;;  %v2218_v18 = vsel %vm2210_vm13, %v4456_v2, %v2214_v20  ;;  %v2204_v20 = vadd.f32 %v2202_v53, %v2189_v8 }
 0x207   :  { %v2249_v40 = vmul.f32 %v2242_v55, %v2217_v56  ;;  %v2250_v49 = vmul.f32 %v2246_v60, %v2218_v18 }
 0x208   :  { %v2256_v48 = vpop.permute.xlu1 %2255 }
 0x209   :  { %v2254_v9 = vpop.permute.xlu0 %2253  ;;  %v2252_v21 = vadd.f32 %v2250_v49, %v2237_v41 }
 0x20a   :  { %v2258_v13 = vsel %vm2257_vm14, %v2254_v9, %v2256_v48  ;;  %v2259_v52 = vsel %vm2257_vm14, %v2256_v48, %v2254_v9  ;;  %v2340_v48 = vrot.slane %v2316_v34, %v2976_v45  ;;  %v2236_v9 = vadd.f32 %v2234_v10, %v2204_v20 }
 0x20b   :  { %v2281_v62 = vmul.f32 %v2274_v22, %v2258_v13  ;;  %v2282_v7 = vmul.f32 %v2278_v0, %v2259_v52  ;;  %v2408_v22 = vld [vmem:[#allocation2 + $0x60] ss:$8 sm:$0x3] }
 0x20c   :  { %v2263_v30 = vpop.permute.xlu1 %2262  ;;  %v2251_v32 = vadd.f32 %v2249_v40, %v2236_v9  ;;  %v2415_v53 = vrot.slane %v2408_v22, %v2973_v44  ;;  %v2419_v63 = vrot.slane %v2408_v22, %v2976_v45 }
 0x20d   :  { %v2261_v16 = vpop.permute.xlu0 %2260 }
 0x20e   :  { %v2264_v61 = vsel %vm2257_vm14, %v2261_v16, %v2263_v30  ;;  %v2265_v11 = vsel %vm2257_vm14, %v2263_v30, %v2261_v16  ;;  %v2283_v47 = vadd.f32 %v2281_v62, %v2251_v32  ;;  %v2284_v16 = vadd.f32 %v2282_v7, %v2252_v21 }
 0x20f   :  { %v2296_v55 = vmul.f32 %v2289_v23, %v2264_v61  ;;  %v2297_v60 = vmul.f32 %v2293_v24, %v2265_v11  ;;  %v2410_v24 = vld [vmem:[#allocation2 + $0xc1] ss:$8 sm:$0x3] }
 0x210   :  { %v2303_v19 = vpop.permute.xlu1 %2302 }
 0x211   :  { %v2301_v59 = vpop.permute.xlu0 %2300  ;;  %v2298_v43 = vadd.f32 %v2296_v55, %v2283_v47  ;;  %v2299_v15 = vadd.f32 %v2297_v60, %v2284_v16 }
 0x212   :  { %v2305_v17 = vsel %vm2304_vm15, %v2301_v59, %v2303_v19  ;;  %v2306_v33 = vsel %vm2304_vm15, %v2303_v19, %v2301_v59 }
 0x213   :  { %v2328_v6 = vmul.f32 %v2321_v31, %v2305_v17  ;;  %v2329_v37 = vmul.f32 %v2325_v39, %v2306_v33  ;;  %v2430_v39 = vrot.slane %v2410_v24, %v2973_v44 }
 0x214   :  { %v2310_v2 = vpop.permute.xlu1 %2309 }
 0x215   :  { %v2308_v12 = vpop.permute.xlu0 %2307  ;;  %v2330_v35 = vadd.f32 %v2328_v6, %v2298_v43  ;;  %v2331_v59 = vadd.f32 %v2329_v37, %v2299_v15 }
 0x216   :  { %v2311_v51 = vsel %vm2304_vm15, %v2308_v12, %v2310_v2  ;;  %v2312_v14 = vsel %vm2304_vm15, %v2310_v2, %v2308_v12  ;;  %v2434_v2 = vrot.slane %v2410_v24, %v2976_v45 }
 0x217   :  { %v2343_v0 = vmul.f32 %v2336_v5, %v2311_v51  ;;  %v2344_v23 = vmul.f32 %v2340_v48, %v2312_v14  ;;  %v2455_v51 = vunpack.c.l.s4 %v2710_v42 }
 0x218   :  { %v2350_v3 = vpop.permute.xlu1 %2349 }
 0x219   :  { %v2348_v30 = vpop.permute.xlu0 %2347  ;;  %v2345_v26 = vadd.f32 %v2343_v0, %v2330_v35  ;;  %v2346_v10 = vadd.f32 %v2344_v23, %v2331_v59  ;;  %v2456_v14 = vunpack.c.0.s8 %v2455_v51 }
 0x21a   :  { %v2352_v1 = vsel %vm2351_vm0, %v2348_v30, %v2350_v3  ;;  %v2353_v36 = vsel %vm2351_vm0, %v2350_v3, %v2348_v30 }
 0x21b   :  { %v2375_v56 = vmul.f32 %v2368_v50, %v2352_v1  ;;  %v2376_v18 = vmul.f32 %v2372_v25, %v2353_v36 }
 0x21c   :  { %v2357_v58 = vpop.permute.xlu1 %2356 }
 0x21d   :  { %v2355_v19 = vpop.permute.xlu0 %2354  ;;  %v2377_v20 = vadd.f32 %v2375_v56, %v2345_v26  ;;  %v2378_v38 = vadd.f32 %v2376_v18, %v2346_v10 }
 0x21e   :  { %v2358_v4 = vsel %vm2351_vm0, %v2355_v19, %v2357_v58  ;;  %v2359_v29 = vsel %vm2351_vm0, %v2357_v58, %v2355_v19  ;;  %v2583_v19 = vld [vmem:[#allocation5] sm:$0xff] }
 0x21f   :  { %v2390_v54 = vmul.f32 %v2383_v27, %v2358_v4  ;;  %v2391_v34 = vmul.f32 %v2387_v28, %v2359_v29  ;;  %v4659_v27 = vld [vmem:[#allocation19_spill] sm:$0xff]  ;;  %v2584_v29 = vld [vmem:[#allocation5 + $0x8] sm:$0xff] }
 0x220   :  { %v2397_v8 = vpop.permute.xlu1 %2396  ;;  %v2459_v47 = vsub.s32 %v2456_v14, %v4659_v27 }
 0x221   :  { %v2395_v13 = vpop.permute.xlu0 %2394  ;;  %v2392_v46 = vadd.f32 %v2390_v54, %v2377_v20  ;;  %v2393_v61 = vadd.f32 %v2391_v34, %v2378_v38 }
 0x222   :  { %v2399_v52 = vsel %vm2398_vm2, %v2395_v13, %v2397_v8  ;;  %v2400_v31 = vsel %vm2398_vm2, %v2397_v8, %v2395_v13 }
 0x223   :  { %v2422_v40 = vmul.f32 %v2415_v53, %v2399_v52  ;;  %v2423_v49 = vmul.f32 %v2419_v63, %v2400_v31 }
 0x224   :  { %v2404_v12 = vpop.permute.xlu1 %2403 }
 0x225   :  { %v2402_v11 = vpop.permute.xlu0 %2401  ;;  %v2424_v9 = vadd.f32 %v2422_v40, %v2392_v46  ;;  %v2425_v41 = vadd.f32 %v2423_v49, %v2393_v61 }
 0x226   :  { %v2405_v5 = vsel %vm2398_vm2, %v2402_v11, %v2404_v12  ;;  %v2406_v48 = vsel %vm2398_vm2, %v2404_v12, %v2402_v11 }
 0x227   :  { %v2437_v62 = vmul.f32 %v2430_v39, %v2405_v5  ;;  %v2438_v7 = vmul.f32 %v2434_v2, %v2406_v48 }
 0x229   :  { %v2439_v57 = vadd.f32 %v2437_v62, %v2424_v9  ;;  %v2440_v17 = vadd.f32 %v2438_v7, %v2425_v41 }
 0x22b   :  { %v2441_v33 = vsub.f32 0.0, %v2439_v57  ;;  %v2442_v3 = vsub.f32 0.0, %v2440_v17 }
 0x22d   :  { %v2443_v50 = vmul.f32 1.442695, %v2441_v33  ;;  %v2445_v32 = vmul.f32 1.442695, %v2442_v3 }
 0x22f   :  { %2575 = vpow2.f32 %v2443_v50 }
 0x230   :  { %2577 = vpow2.f32 %v2445_v32 }
 0x239   :  { %v2576_v21 = vpop.eup %2575 }
 0x23a   :  { %v2578_v55 = vpop.eup %2577  ;;  %v2447_v60 = vadd.f32 1.0, %v2576_v21 }
 0x23b   :  { %v2448_v30 = vadd.f32 1.0, %v2578_v55 }
 0x23c   :  { %2579 = vrcp.f32 %v2447_v60 }
 0x23d   :  { %2581 = vrcp.f32 %v2448_v30 }
 0x246   :  { %v2580_v25 = vpop.eup %2579 }
 0x247   :  { %v2582_v16 = vpop.eup %2581 }
 0x248   :  { %v2453_v6 = vcombine.low %v2580_v25, %v2582_v16 }
 0x24a   :  { %v2460_v37 = vrot.slane %v2453_v6, %v2459_v47 }
 0x24c   :  { %v2461_v22 = vcombine.high %v2460_v37, %v2460_v37  ;;  %v2468_v1 = vrot.slane %v2460_v37, %v2459_v47 }
 0x24e   :  { %v2475_v36 = vrot.slane %v2461_v22, %v2459_v47  ;;  %v2479_v58 = vrot.slane %v2468_v1, %v2973_v44  ;;  %v2483_v28 = vrot.slane %v2468_v1, %v2976_v45 }
 0x250   :  { %v2487_v43 = vrot.slane %v2475_v36, %v2973_v44  ;;  %v2491_v15 = vrot.slane %v2475_v36, %v2976_v45  ;;  %v2492_v0 = vcombine.low %v2479_v58, %v2483_v28 }
 0x252   :  { %v2493_v23 = vcombine.low %v2487_v43, %v2491_v15  ;;  %v2496_v4 = vmul.f32 %v2583_v19, %v2492_v0 }
 0x254   :  { %v2497_v53 = vmul.f32 %v2584_v29, %v2493_v23  ;;  %2498 = vst [vmem:[#allocation7] sm:$0xff] %v2496_v4 }
 0x256   :  { %2499 = vst [vmem:[#allocation7 + $0x8] sm:$0xff] %v2497_v53 }
 0x257   :  { %2640 = shalt.err (!%p2637_p6)
}
 0x258   :  { %s2641_s3 = scalar_lea.hbm %s4606_s2, 256 }
 0x259   :  { %p2642_p7 = scmp.ne.s32.totalorder %s4606_s2, %s2641_s3  ;;  %p2645_p8 = scmp.lt.u32.totalorder %s2641_s3, %s4606_s2 }
 0x25b   :  { %p2647_p9 = pnand %p2645_p8, %p2642_p7 }
 0x25d   :  { %2650 = shalt.err (!%p2647_p9)
}
 0x25e   :  { %2511 = dma.vmem_to_hbm [thread:$0]  %s2506_s27, 256, %s4606_s2, [#allocation4], %s2661_s0, %s2661_s0, %s2662_s5  }
 0x25f   :  { %2655 = dma.done.wait [#allocation4], 256  }
 0x260   :  { %2656 = vsyncadd [#allocation4], 4294967040 }
 0x261   :  { %2515 = vsyncpa [#allocation3], 1 }
 0x262   :  { %2516 = vsyncpa [#allocation6], 1 }
 0x263   :  { %2517 = vsyncpa [#allocation4], 1 }

</bundles_post_ra>
